<compile_context>
chip_gen: v7x
topology: tpu7x:2x2x1
jax: 0.10.0
libtpu: 0.0.40
codegen_flags: <defaults>
</compile_context>

<pallas_src>
import functools
import math

import numpy as np
import jax
import jax.numpy as jnp
from jax.experimental import pallas as pl
from jax.experimental.pallas import tpu as pltpu


# ---------------------------------------------------------------------------
# In-kernel helpers
# ---------------------------------------------------------------------------

def _layer_norm(x, g, b, eps):
    """Row-wise LayerNorm over the last dim (g/b broadcast as [..., W])."""
    mu = jnp.mean(x, axis=-1, keepdims=True)
    xc = x - mu
    var = jnp.mean(xc * xc, axis=-1, keepdims=True)
    return xc * jax.lax.rsqrt(var + eps) * g + b


# ---------------------------------------------------------------------------
# Fused transformer-stack kernel.
# grid = (n_layers,).  The whole [B, L, W] residual stream is the resident
# output block across the layer axis; weights are fetched once per layer.
# ---------------------------------------------------------------------------

def _transformer_kernel(x_ref, vecs_ref, wqkv_ref, wo_ref, w1_ref, b1_ref,
                        w2_ref, o_ref, *scratch, heads, causal, eps=1e-5):
    layer = pl.program_id(0)
    B, L, W = o_ref.shape
    R = B * L
    Dh = W // heads
    scale = 1.0 / math.sqrt(Dh)
    mask_ref = scratch[0] if causal else None

    @pl.when(layer == 0)
    def _():
        # Seed the resident residual stream and (for the text branch) build the
        # causal mask once; both persist across the layer grid axis.
        o_ref[...] = x_ref[...]
        if causal:
            row = jax.lax.broadcasted_iota(jnp.int32, (L, L), 0)
            col = jax.lax.broadcasted_iota(jnp.int32, (L, L), 1)
            # matches gemm_base.build_attention_mask: -10000 above the diagonal
            mask_ref[...] = jnp.where(col > row, -10000.0, 0.0).astype(jnp.float32)

    # packed per-layer vectors: [9, W]
    vecs = vecs_ref[...]
    ln1_g, ln1_b = vecs[0:1], vecs[1:2]
    bq, bk, bv = vecs[2:3], vecs[3:4], vecs[4:5]
    bo = vecs[5:6]
    ln2_g, ln2_b = vecs[6:7], vecs[7:8]
    b2 = vecs[8:9]

    x = o_ref[...]                       # [B, L, W] fp32 residual (VMEM resident)
    xf = x.reshape(R, W)                 # flatten batch into matmul rows

    # ---- attention branch --------------------------------------------------
    h = _layer_norm(xf, ln1_g, ln1_b, eps).astype(jnp.bfloat16)   # one bf16 cast
    qkv = jnp.dot(h, wqkv_ref[...], preferred_element_type=jnp.float32)  # [R, 3W]
    q = (((qkv[:, 0 * W:1 * W] + bq) * scale)
         .reshape(B, L, W).astype(jnp.bfloat16))                  # scale folded in q
    k = (qkv[:, 1 * W:2 * W] + bk).reshape(B, L, W).astype(jnp.bfloat16)
    v = (qkv[:, 2 * W:3 * W] + bv).reshape(B, L, W).astype(jnp.bfloat16)

    # Per-head attention, batched over B via 3-D einsums (heads is tiny & static
    # here; the out-projection below is merged to a single K=W matmul).
    ohs = []
    for hh in range(heads):
        sl = slice(hh * Dh, (hh + 1) * Dh)
        qh, kh, vh = q[:, :, sl], k[:, :, sl], v[:, :, sl]        # [B, L, Dh]
        s = jnp.einsum("bld,bmd->blm", qh, kh,
                       preferred_element_type=jnp.float32)        # [B, L, L]
        if causal:
            s = s + mask_ref[...]
        s = s - jnp.max(s, axis=-1, keepdims=True)
        p = jnp.exp(s)
        p = p * pl.reciprocal(jnp.sum(p, axis=-1, keepdims=True), approx=True)
        oh = jnp.einsum("blm,bmd->bld", p.astype(jnp.bfloat16), vh,
                        preferred_element_type=jnp.float32)       # [B, L, Dh]
        ohs.append(oh)
    o_all = ohs[0] if heads == 1 else jnp.concatenate(ohs, axis=-1)   # [B, L, W]

    attn = jnp.dot(o_all.reshape(R, W).astype(jnp.bfloat16), wo_ref[...],
                   preferred_element_type=jnp.float32) + bo       # merged out-proj, K=W
    xf = xf + attn                                                # residual add

    # ---- MLP branch ---------------------------------------------------------
    h2 = _layer_norm(xf, ln2_g, ln2_b, eps).astype(jnp.bfloat16)
    m = jnp.dot(h2, w1_ref[...], preferred_element_type=jnp.float32) + b1_ref[...]
    # TODO(synk): QuickGELU (CLIP/gemm_base convention); switch to erf GELU if the
    # reference gemm_base uses torch.nn.GELU instead.
    m = m * jax.nn.sigmoid(1.702 * m)
    m = jnp.dot(m.astype(jnp.bfloat16), w2_ref[...],
                preferred_element_type=jnp.float32) + b2

    o_ref[...] = (xf + m).reshape(B, L, W)   # residual add + resident store


def pl_transformer(x, blk, *, heads, causal):
    """Run the full residual-block stack in one pallas_call.  x: [B, L, W] fp32."""
    B, L, W = x.shape
    nl = blk["wqkv"].shape[0]
    H4 = blk["w1"].shape[-1]

    act_spec = pl.BlockSpec((B, L, W), lambda l: (0, 0, 0))   # whole batch in block

    def w_spec(r, c):
        return pl.BlockSpec((None, r, c), lambda l: (l, 0, 0))

    scratch_shapes = [pltpu.VMEM((L, L), jnp.float32)] if causal else []

    return pl.pallas_call(
        functools.partial(_transformer_kernel, heads=heads, causal=causal),
        out_shape=jax.ShapeDtypeStruct((B, L, W), jnp.float32),
        grid=(nl,),
        in_specs=[
            act_spec,                 # activation (read only at layer 0)
            w_spec(9, W),             # packed LN gammas/betas + attn/MLP biases
            w_spec(W, 3 * W),         # fused wqkv
            w_spec(W, W),             # wo
            w_spec(W, H4),            # w_fc1
            w_spec(1, H4),            # b_fc1
            w_spec(H4, W),            # w_fc2
        ],
        out_specs=act_spec,
        scratch_shapes=scratch_shapes,
        input_output_aliases={0: 0},  # reuse the activation HBM buffer (P8)
        compiler_params=pltpu.CompilerParams(
            dimension_semantics=("arbitrary",),
        ),
    )(x, blk["vecs"], blk["wqkv"], blk["wo"], blk["w1"], blk["b1"], blk["w2"])


# ---------------------------------------------------------------------------
# Fused ViT embedding: patch matmul + CLS token + positional embedding + ln_pre.
# ---------------------------------------------------------------------------

def _vis_embed_kernel(patch_ref, convw_ref, cls_ref, pos_ref, g_ref, b_ref,
                      o_ref, *, eps=1e-5):
    pe = jnp.dot(patch_ref[...].astype(jnp.bfloat16), convw_ref[...],
                 preferred_element_type=jnp.float32)          # [Np, W]
    x = jnp.concatenate([cls_ref[...], pe], axis=0) + pos_ref[...]   # [L, W]
    # single LayerNorm + one dense full-block store (no masked sub-row stores)
    o_ref[...] = _layer_norm(x, g_ref[...], b_ref[...], eps)


def pl_vis_embed(patches, conv_w, class_emb, pos_emb, g, b):
    B, Np, CPP = patches.shape
    W = conv_w.shape[1]
    L = Np + 1
    return pl.pallas_call(
        _vis_embed_kernel,
        out_shape=jax.ShapeDtypeStruct((B, L, W), jnp.float32),
        grid=(B,),
        in_specs=[
            pl.BlockSpec((None, Np, CPP), lambda i: (i, 0, 0)),
            pl.BlockSpec((CPP, W), lambda i: (0, 0)),
            pl.BlockSpec((1, W), lambda i: (0, 0)),
            pl.BlockSpec((L, W), lambda i: (0, 0)),
            pl.BlockSpec((1, W), lambda i: (0, 0)),
            pl.BlockSpec((1, W), lambda i: (0, 0)),
        ],
        out_specs=pl.BlockSpec((None, L, W), lambda i: (i, 0, 0)),
        compiler_params=pltpu.CompilerParams(
            dimension_semantics=("parallel",)),
    )(patches, conv_w, class_emb, pos_emb, g, b)


# ---------------------------------------------------------------------------
# Fused output head: LayerNorm -> projection -> L2 normalize.
# ---------------------------------------------------------------------------

def _head_kernel(x_ref, g_ref, b_ref, proj_ref, o_ref, *, eps=1e-5):
    h = _layer_norm(x_ref[...], g_ref[...], b_ref[...], eps)
    e = jnp.dot(h.astype(jnp.bfloat16), proj_ref[...],
                preferred_element_type=jnp.float32)           # [B, E]
    sq = jnp.sum(e * e, axis=-1, keepdims=True)
    # matches F.normalize(p=2, eps=1e-12): x / max(||x||, 1e-12)
    o_ref[...] = e * jax.lax.rsqrt(jnp.maximum(sq, 1e-24))


def pl_head(x, g, b, proj):
    B, W = x.shape
    E = proj.shape[1]
    return pl.pallas_call(
        _head_kernel,
        out_shape=jax.ShapeDtypeStruct((B, E), jnp.float32),
        grid=(1,),
        in_specs=[
            pl.BlockSpec((B, W), lambda i: (0, 0)),
            pl.BlockSpec((1, W), lambda i: (0, 0)),
            pl.BlockSpec((1, W), lambda i: (0, 0)),
            pl.BlockSpec((W, E), lambda i: (0, 0)),
        ],
        out_specs=pl.BlockSpec((B, E), lambda i: (0, 0)),
    )(x, g, b, proj)


# ---------------------------------------------------------------------------
# Parameters (synthetic "encoder_config.json") and forward glue
# ---------------------------------------------------------------------------

CONFIG = dict(
    embed_dim=32,
    image_resolution=16,
    vision_layers=2,
    vision_width=64,
    vision_patch_size=8,
    context_length=8,
    vocab_size=64,
    model_width=64,
    model_heads=2,
    model_layers=2,
)


def _normal(key, shape, std=0.02):
    return jax.random.normal(key, shape, dtype=jnp.float32) * std


def make_block_stack(key, n_layers, width):
    """Per-layer params stacked on a leading layer axis.

    Matmul weights pre-cast to bf16; wq/wk/wv fused to [nl, W, 3W]; all W-wide
    vectors packed into one [nl, 9, W] slab (rows: ln1_g, ln1_b, bq, bk, bv,
    bo, ln2_g, ln2_b, b2).
    """
    W = width
    H = 4 * W
    ks = jax.random.split(key, 6)
    bf = jnp.bfloat16
    wq = _normal(ks[0], (n_layers, W, W))
    wk = _normal(ks[1], (n_layers, W, W))
    wv = _normal(ks[2], (n_layers, W, W))
    wqkv = jnp.concatenate([wq, wk, wv], axis=-1).astype(bf)        # [nl, W, 3W]
    vecs = jnp.concatenate([
        jnp.ones((n_layers, 1, W), jnp.float32),    # ln1_g
        jnp.zeros((n_layers, 1, W), jnp.float32),   # ln1_b
        jnp.zeros((n_layers, 3, W), jnp.float32),   # bq, bk, bv
        jnp.zeros((n_layers, 1, W), jnp.float32),   # bo
        jnp.ones((n_layers, 1, W), jnp.float32),    # ln2_g
        jnp.zeros((n_layers, 1, W), jnp.float32),   # ln2_b
        jnp.zeros((n_layers, 1, W), jnp.float32),   # b2
    ], axis=1)                                      # [nl, 9, W]
    return dict(
        wqkv=wqkv,
        vecs=vecs,
        wo=_normal(ks[3], (n_layers, W, W)).astype(bf),
        w1=_normal(ks[4], (n_layers, W, H)).astype(bf),
        b1=jnp.zeros((n_layers, 1, H), jnp.float32),
        w2=_normal(ks[5], (n_layers, H, W)).astype(bf),
    )


def make_params(key, cfg):
    W_v = cfg["vision_width"]
    W_t = cfg["model_width"]
    P = cfg["vision_patch_size"]
    grid = cfg["image_resolution"] // P
    n_tok = grid * grid + 1
    E = cfg["embed_dim"]
    keys = jax.random.split(key, 9)
    bf = jnp.bfloat16
    return dict(
        visual=dict(
            conv_w=_normal(keys[0], (3 * P * P, W_v)).astype(bf),   # conv1 (bias=False)
            class_emb=_normal(keys[1], (1, W_v)),
            pos_emb=_normal(keys[2], (n_tok, W_v)),
            ln_pre_g=jnp.ones((1, W_v), jnp.float32),
            ln_pre_b=jnp.zeros((1, W_v), jnp.float32),
            blocks=make_block_stack(keys[3], cfg["vision_layers"], W_v),
            ln_post_g=jnp.ones((1, W_v), jnp.float32),
            ln_post_b=jnp.zeros((1, W_v), jnp.float32),
            proj=_normal(keys[4], (W_v, E)).astype(bf),
        ),
        text=dict(
            token_emb=_normal(keys[5], (cfg["vocab_size"], W_t)),
            pos_emb=_normal(keys[6], (cfg["context_length"], W_t)),
            blocks=make_block_stack(keys[7], cfg["model_layers"], W_t),
            ln_final_g=jnp.ones((1, W_t), jnp.float32),
            ln_final_b=jnp.zeros((1, W_t), jnp.float32),
            text_projection=_normal(keys[8], (W_t, E)).astype(bf),
        ),
        logit_scale=jnp.ones((), jnp.float32),   # unused in feature-only forward
    )


def encode_image(params, cfg, image):
    """image: [B, 3, H, W] NCHW (like PyTorch).  Returns L2-normed [B, embed_dim]."""
    vp = params["visual"]
    P = cfg["vision_patch_size"]
    B, C, H, Wd = image.shape
    gh, gw = H // P, Wd // P
    heads = max(1, cfg["vision_width"] // 64)        # CLIP convention: width // 64
    # conv1 (kernel==stride==P, no bias) as patch extraction + matmul (glue reshape)
    patches = (image.reshape(B, C, gh, P, gw, P)
               .transpose(0, 2, 4, 1, 3, 5)
               .reshape(B, gh * gw, C * P * P))
    x = pl_vis_embed(patches, vp["conv_w"], vp["class_emb"], vp["pos_emb"],
                     vp["ln_pre_g"], vp["ln_pre_b"])             # [B, L, W_v]
    x = pl_transformer(x, vp["blocks"], heads=heads, causal=False)
    cls_tok = x[:, 0, :]                                         # CLS token (glue)
    return pl_head(cls_tok, vp["ln_post_g"], vp["ln_post_b"], vp["proj"])


def encode_text(params, cfg, text):
    """text: [B, context_length] int32 token ids.  Returns L2-normed [B, embed_dim]."""
    tp = params["text"]
    B, L = text.shape
    x = jnp.take(tp["token_emb"], text, axis=0) + tp["pos_emb"][None]   # embed (glue)
    x = pl_transformer(x.astype(jnp.float32), tp["blocks"],
                       heads=cfg["model_heads"], causal=True)
    eot = jnp.argmax(text, axis=-1)              # EOT token = max id (CLIP tokenizer)
    sel = x[jnp.arange(B), eot]                  # [B, W_t] data-dependent gather (glue)
    return pl_head(sel, tp["ln_final_g"], tp["ln_final_b"], tp["text_projection"])


def rleg_forward(params, cfg, image=None, text=None):
    img_feature, text_feature = None, None
    if image is not None:
        img_feature = encode_image(params, cfg, image)
    if text is not None:
        text_feature = encode_text(params, cfg, text)
    return {"image_feature": img_feature, "text_feature": text_feature}


@jax.jit
def rleg_forward_jit(params, image, text):
    return rleg_forward(params, CONFIG, image=image, text=text)


# ---------------------------------------------------------------------------
if __name__ == "__main__":
    key = jax.random.PRNGKey(0)
    kp, ki, kt = jax.random.split(key, 3)

    params = make_params(kp, CONFIG)

    B = 2
    image = jax.random.normal(
        ki, (B, 3, CONFIG["image_resolution"], CONFIG["image_resolution"]),
        dtype=jnp.float32,
    )
    text = jax.random.randint(
        kt, (B, CONFIG["context_length"]), 0, CONFIG["vocab_size"], dtype=jnp.int32
    )

    out = rleg_forward_jit(params, image, text)
    img_f = jax.block_until_ready(out["image_feature"])
    txt_f = jax.block_until_ready(out["text_feature"])

    assert img_f.shape == (B, CONFIG["embed_dim"])
    assert txt_f.shape == (B, CONFIG["embed_dim"])
    # outputs are L2-normalized
    assert np.allclose(np.linalg.norm(np.asarray(img_f), axis=-1), 1.0, atol=1e-3)
    assert np.allclose(np.linalg.norm(np.asarray(txt_f), axis=-1), 1.0, atol=1e-3)

    print("KERNEL_OK")
</pallas_src>

<mosaic_0001>
module attributes {stable_mosaic.version = 11 : i64} {
  func.func @_vis_embed_kernel(%arg0: i32, %arg1: memref<1x4x192xf32, #tpu.memory_space<vmem>>, %arg2: memref<192x64xbf16, #tpu.memory_space<vmem>>, %arg3: memref<1x64xf32, #tpu.memory_space<vmem>>, %arg4: memref<5x64xf32, #tpu.memory_space<vmem>>, %arg5: memref<1x64xf32, #tpu.memory_space<vmem>>, %arg6: memref<1x64xf32, #tpu.memory_space<vmem>>, %arg7: memref<1x5x64xf32, #tpu.memory_space<vmem>>) attributes {dimension_semantics = [#tpu.dimension_semantics<parallel>], iteration_bounds = array<i64: 2>, scalar_prefetch = 0 : i64, scratch_operands = 0 : i64, tpu.core_type = #tpu.core_type<tc>, window_params = [{transform_indices = @transform_0, window_bounds = array<i64: 1, 4, 192>}, {pipeline_mode = #tpu.pipeline_mode<synchronous>, transform_indices = @transform_1, window_bounds = array<i64: 192, 64>}, {pipeline_mode = #tpu.pipeline_mode<synchronous>, transform_indices = @transform_2, window_bounds = array<i64: 1, 64>}, {pipeline_mode = #tpu.pipeline_mode<synchronous>, transform_indices = @transform_3, window_bounds = array<i64: 5, 64>}, {pipeline_mode = #tpu.pipeline_mode<synchronous>, transform_indices = @transform_4, window_bounds = array<i64: 1, 64>}, {pipeline_mode = #tpu.pipeline_mode<synchronous>, transform_indices = @transform_5, window_bounds = array<i64: 1, 64>}, {transform_indices = @transform_6, window_bounds = array<i64: 1, 5, 64>}]} {
    %c0 = arith.constant 0 : index
    %c0_0 = arith.constant 0 : index
    %c0_1 = arith.constant 0 : index
    %0 = vector.load %arg1[%c0, %c0_0, %c0_1] : memref<1x4x192xf32, #tpu.memory_space<vmem>>, vector<1x4x192xf32>
    %1 = vector.shape_cast %0 : vector<1x4x192xf32> to vector<4x192xf32>
    %2 = arith.truncf %1 : vector<4x192xf32> to vector<4x192xbf16>
    %c0_2 = arith.constant 0 : index
    %c0_3 = arith.constant 0 : index
    %3 = vector.load %arg2[%c0_2, %c0_3] : memref<192x64xbf16, #tpu.memory_space<vmem>>, vector<192x64xbf16>
    %cst = arith.constant dense<0.000000e+00> : vector<4x64xf32>
    %4 = tpu.matmul %2, %3, %cst {dimension_numbers = #tpu.dot_dimension_numbers<[1], [0], [0], [1], [0, 0, 1, 1], [], []>} : vector<4x192xbf16>, vector<192x64xbf16>, vector<4x64xf32> -> vector<4x64xf32>
    %c0_4 = arith.constant 0 : index
    %c0_5 = arith.constant 0 : index
    %5 = vector.load %arg3[%c0_4, %c0_5] : memref<1x64xf32, #tpu.memory_space<vmem>>, vector<1x64xf32>
    %6 = tpu.concatenate %5, %4 in 0 : vector<1x64xf32>, vector<4x64xf32> -> vector<5x64xf32>
    %c0_6 = arith.constant 0 : index
    %c0_7 = arith.constant 0 : index
    %7 = vector.load %arg4[%c0_6, %c0_7] : memref<5x64xf32, #tpu.memory_space<vmem>>, vector<5x64xf32>
    %8 = arith.addf %6, %7 : vector<5x64xf32>
    %c0_8 = arith.constant 0 : index
    %c0_9 = arith.constant 0 : index
    %9 = vector.load %arg5[%c0_8, %c0_9] : memref<1x64xf32, #tpu.memory_space<vmem>>, vector<1x64xf32>
    %c0_10 = arith.constant 0 : index
    %c0_11 = arith.constant 0 : index
    %10 = vector.load %arg6[%c0_10, %c0_11] : memref<1x64xf32, #tpu.memory_space<vmem>>, vector<1x64xf32>
    %cst_12 = arith.constant dense<0.000000e+00> : vector<5xf32>
    %11 = vector.multi_reduction <add>, %8, %cst_12 [1] : vector<5x64xf32> to vector<5xf32>
    %12 = vector.shape_cast %11 : vector<5xf32> to vector<5x1xf32>
    %cst_13 = arith.constant 6.400000e+01 : f32
    %13 = vector.broadcast %cst_13 : f32 to vector<5x1xf32>
    %14 = arith.divf %12, %13 : vector<5x1xf32>
    %15 = vector.broadcast %14 : vector<5x1xf32> to vector<5x64xf32>
    %16 = arith.subf %8, %15 : vector<5x64xf32>
    %17 = arith.mulf %16, %16 : vector<5x64xf32>
    %cst_14 = arith.constant dense<0.000000e+00> : vector<5xf32>
    %18 = vector.multi_reduction <add>, %17, %cst_14 [1] : vector<5x64xf32> to vector<5xf32>
    %19 = vector.shape_cast %18 : vector<5xf32> to vector<5x1xf32>
    %cst_15 = arith.constant 6.400000e+01 : f32
    %20 = vector.broadcast %cst_15 : f32 to vector<5x1xf32>
    %21 = arith.divf %19, %20 : vector<5x1xf32>
    %cst_16 = arith.constant 9.99999974E-6 : f32
    %22 = vector.broadcast %cst_16 : f32 to vector<5x1xf32>
    %23 = arith.addf %21, %22 : vector<5x1xf32>
    %24 = math.rsqrt %23 : vector<5x1xf32>
    %25 = vector.broadcast %24 : vector<5x1xf32> to vector<5x64xf32>
    %26 = arith.mulf %16, %25 : vector<5x64xf32>
    %27 = vector.broadcast %9 : vector<1x64xf32> to vector<5x64xf32>
    %28 = arith.mulf %26, %27 : vector<5x64xf32>
    %29 = vector.broadcast %10 : vector<1x64xf32> to vector<5x64xf32>
    %30 = arith.addf %28, %29 : vector<5x64xf32>
    %c0_17 = arith.constant 0 : index
    %c0_18 = arith.constant 0 : index
    %c0_19 = arith.constant 0 : index
    %31 = vector.load %arg7[%c0_17, %c0_18, %c0_19] : memref<1x5x64xf32, #tpu.memory_space<vmem>>, vector<1x5x64xf32>
    %32 = vector.shape_cast %31 : vector<1x5x64xf32> to vector<5x64xf32>
    %33 = vector.shape_cast %30 : vector<5x64xf32> to vector<1x5x64xf32>
    tpu.vector_store %arg7[%c0_17, %c0_18, %c0_19], %33 {strides = array<i32>} : memref<1x5x64xf32, #tpu.memory_space<vmem>>, vector<1x5x64xf32>,
    return
  }
  func.func @transform_0(%arg0: i32) -> (i32, i32, i32) {
    %c0_i32 = arith.constant 0 : i32
    %c0_i32_0 = arith.constant 0 : i32
    %c0_i32_1 = arith.constant 0 : i32
    return %arg0, %c0_i32, %c0_i32_0 : i32, i32, i32
  }
  func.func @transform_1(%arg0: i32) -> (i32, i32) {
    %c0_i32 = arith.constant 0 : i32
    %c0_i32_0 = arith.constant 0 : i32
    %c0_i32_1 = arith.constant 0 : i32
    return %c0_i32, %c0_i32_0 : i32, i32
  }
  func.func @transform_2(%arg0: i32) -> (i32, i32) {
    %c0_i32 = arith.constant 0 : i32
    %c0_i32_0 = arith.constant 0 : i32
    %c0_i32_1 = arith.constant 0 : i32
    return %c0_i32, %c0_i32_0 : i32, i32
  }
  func.func @transform_3(%arg0: i32) -> (i32, i32) {
    %c0_i32 = arith.constant 0 : i32
    %c0_i32_0 = arith.constant 0 : i32
    %c0_i32_1 = arith.constant 0 : i32
    return %c0_i32, %c0_i32_0 : i32, i32
  }
  func.func @transform_4(%arg0: i32) -> (i32, i32) {
    %c0_i32 = arith.constant 0 : i32
    %c0_i32_0 = arith.constant 0 : i32
    %c0_i32_1 = arith.constant 0 : i32
    return %c0_i32, %c0_i32_0 : i32, i32
  }
  func.func @transform_5(%arg0: i32) -> (i32, i32) {
    %c0_i32 = arith.constant 0 : i32
    %c0_i32_0 = arith.constant 0 : i32
    %c0_i32_1 = arith.constant 0 : i32
    return %c0_i32, %c0_i32_0 : i32, i32
  }
  func.func @transform_6(%arg0: i32) -> (i32, i32, i32) {
    %c0_i32 = arith.constant 0 : i32
    %c0_i32_0 = arith.constant 0 : i32
    %c0_i32_1 = arith.constant 0 : i32
    return %arg0, %c0_i32, %c0_i32_0 : i32, i32, i32
  }
}

module attributes {stable_mosaic.version = 11 : i64} {
  func.func @_transformer_kernel(%arg0: i32, %arg1: memref<2x5x64xf32, #tpu.memory_space<vmem>>, %arg2: memref<1x9x64xf32, #tpu.memory_space<vmem>>, %arg3: memref<1x64x192xbf16, #tpu.memory_space<vmem>>, %arg4: memref<1x64x64xbf16, #tpu.memory_space<vmem>>, %arg5: memref<1x64x256xbf16, #tpu.memory_space<vmem>>, %arg6: memref<1x1x256xf32, #tpu.memory_space<vmem>>, %arg7: memref<1x256x64xbf16, #tpu.memory_space<vmem>>, %arg8: memref<2x5x64xf32, #tpu.memory_space<vmem>>) attributes {dimension_semantics = [#tpu.dimension_semantics<arbitrary>], iteration_bounds = array<i64: 2>, scalar_prefetch = 0 : i64, scratch_operands = 0 : i64, tpu.core_type = #tpu.core_type<tc>, window_params = [{pipeline_mode = #tpu.pipeline_mode<synchronous>, transform_indices = @transform_0, window_bounds = array<i64: 2, 5, 64>}, {transform_indices = @transform_1, window_bounds = array<i64: 1, 9, 64>}, {transform_indices = @transform_2, window_bounds = array<i64: 1, 64, 192>}, {transform_indices = @transform_3, window_bounds = array<i64: 1, 64, 64>}, {transform_indices = @transform_4, window_bounds = array<i64: 1, 64, 256>}, {transform_indices = @transform_5, window_bounds = array<i64: 1, 1, 256>}, {transform_indices = @transform_6, window_bounds = array<i64: 1, 256, 64>}, {pipeline_mode = #tpu.pipeline_mode<synchronous>, transform_indices = @transform_7, window_bounds = array<i64: 2, 5, 64>}]} {
    %c0_i32 = arith.constant 0 : i32
    %0 = arith.cmpi eq, %arg0, %c0_i32 : i32
    %1 = arith.extui %0 : i1 to i32
    %c0_i32_0 = arith.constant 0 : i32
    %2 = arith.cmpi ne, %1, %c0_i32_0 : i32
    scf.if %2 {
      %c0_44 = arith.constant 0 : index
      %c0_45 = arith.constant 0 : index
      %c0_46 = arith.constant 0 : index
      %123 = vector.load %arg1[%c0_44, %c0_45, %c0_46] : memref<2x5x64xf32, #tpu.memory_space<vmem>>, vector<2x5x64xf32>
      %c0_47 = arith.constant 0 : index
      %c0_48 = arith.constant 0 : index
      %c0_49 = arith.constant 0 : index
      %124 = vector.load %arg8[%c0_47, %c0_48, %c0_49] : memref<2x5x64xf32, #tpu.memory_space<vmem>>, vector<2x5x64xf32>
      tpu.vector_store %arg8[%c0_47, %c0_48, %c0_49], %123 {strides = array<i32>} : memref<2x5x64xf32, #tpu.memory_space<vmem>>, vector<2x5x64xf32>,
    } else {
    }
    %c0 = arith.constant 0 : index
    %c0_1 = arith.constant 0 : index
    %c0_2 = arith.constant 0 : index
    %3 = vector.load %arg2[%c0, %c0_1, %c0_2] : memref<1x9x64xf32, #tpu.memory_space<vmem>>, vector<1x9x64xf32>
    %4 = vector.shape_cast %3 : vector<1x9x64xf32> to vector<9x64xf32>
    %5 = vector.extract_strided_slice %4 {offsets = [0, 0], sizes = [1, 64], strides = [1, 1]} : vector<9x64xf32> to vector<1x64xf32>
    %6 = vector.extract_strided_slice %4 {offsets = [1, 0], sizes = [1, 64], strides = [1, 1]} : vector<9x64xf32> to vector<1x64xf32>
    %7 = vector.extract_strided_slice %4 {offsets = [2, 0], sizes = [1, 64], strides = [1, 1]} : vector<9x64xf32> to vector<1x64xf32>
    %8 = vector.extract_strided_slice %4 {offsets = [3, 0], sizes = [1, 64], strides = [1, 1]} : vector<9x64xf32> to vector<1x64xf32>
    %9 = vector.extract_strided_slice %4 {offsets = [4, 0], sizes = [1, 64], strides = [1, 1]} : vector<9x64xf32> to vector<1x64xf32>
    %10 = vector.extract_strided_slice %4 {offsets = [5, 0], sizes = [1, 64], strides = [1, 1]} : vector<9x64xf32> to vector<1x64xf32>
    %11 = vector.extract_strided_slice %4 {offsets = [6, 0], sizes = [1, 64], strides = [1, 1]} : vector<9x64xf32> to vector<1x64xf32>
    %12 = vector.extract_strided_slice %4 {offsets = [7, 0], sizes = [1, 64], strides = [1, 1]} : vector<9x64xf32> to vector<1x64xf32>
    %13 = vector.extract_strided_slice %4 {offsets = [8, 0], sizes = [1, 64], strides = [1, 1]} : vector<9x64xf32> to vector<1x64xf32>
    %c0_3 = arith.constant 0 : index
    %c0_4 = arith.constant 0 : index
    %c0_5 = arith.constant 0 : index
    %14 = vector.load %arg8[%c0_3, %c0_4, %c0_5] : memref<2x5x64xf32, #tpu.memory_space<vmem>>, vector<2x5x64xf32>
    %15 = vector.shape_cast %14 : vector<2x5x64xf32> to vector<10x64xf32>
    %cst = arith.constant dense<0.000000e+00> : vector<10xf32>
    %16 = vector.multi_reduction <add>, %15, %cst [1] : vector<10x64xf32> to vector<10xf32>
    %17 = vector.shape_cast %16 : vector<10xf32> to vector<10x1xf32>
    %cst_6 = arith.constant 6.400000e+01 : f32
    %18 = vector.broadcast %cst_6 : f32 to vector<10x1xf32>
    %19 = arith.divf %17, %18 : vector<10x1xf32>
    %20 = vector.broadcast %19 : vector<10x1xf32> to vector<10x64xf32>
    %21 = arith.subf %15, %20 : vector<10x64xf32>
    %22 = arith.mulf %21, %21 : vector<10x64xf32>
    %cst_7 = arith.constant dense<0.000000e+00> : vector<10xf32>
    %23 = vector.multi_reduction <add>, %22, %cst_7 [1] : vector<10x64xf32> to vector<10xf32>
    %24 = vector.shape_cast %23 : vector<10xf32> to vector<10x1xf32>
    %cst_8 = arith.constant 6.400000e+01 : f32
    %25 = vector.broadcast %cst_8 : f32 to vector<10x1xf32>
    %26 = arith.divf %24, %25 : vector<10x1xf32>
    %cst_9 = arith.constant 9.99999974E-6 : f32
    %27 = vector.broadcast %cst_9 : f32 to vector<10x1xf32>
    %28 = arith.addf %26, %27 : vector<10x1xf32>
    %29 = math.rsqrt %28 : vector<10x1xf32>
    %30 = vector.broadcast %29 : vector<10x1xf32> to vector<10x64xf32>
    %31 = arith.mulf %21, %30 : vector<10x64xf32>
    %32 = vector.broadcast %5 : vector<1x64xf32> to vector<10x64xf32>
    %33 = arith.mulf %31, %32 : vector<10x64xf32>
    %34 = vector.broadcast %6 : vector<1x64xf32> to vector<10x64xf32>
    %35 = arith.addf %33, %34 : vector<10x64xf32>
    %36 = arith.truncf %35 : vector<10x64xf32> to vector<10x64xbf16>
    %c0_10 = arith.constant 0 : index
    %c0_11 = arith.constant 0 : index
    %c0_12 = arith.constant 0 : index
    %37 = vector.load %arg3[%c0_10, %c0_11, %c0_12] : memref<1x64x192xbf16, #tpu.memory_space<vmem>>, vector<1x64x192xbf16>
    %38 = vector.shape_cast %37 : vector<1x64x192xbf16> to vector<64x192xbf16>
    %cst_13 = arith.constant dense<0.000000e+00> : vector<10x192xf32>
    %39 = tpu.matmul %36, %38, %cst_13 {dimension_numbers = #tpu.dot_dimension_numbers<[1], [0], [0], [1], [0, 0, 1, 1], [], []>} : vector<10x64xbf16>, vector<64x192xbf16>, vector<10x192xf32> -> vector<10x192xf32>
    %40 = vector.extract_strided_slice %39 {offsets = [0, 0], sizes = [10, 64], strides = [1, 1]} : vector<10x192xf32> to vector<10x64xf32>
    %41 = vector.broadcast %7 : vector<1x64xf32> to vector<10x64xf32>
    %42 = arith.addf %40, %41 : vector<10x64xf32>
    %cst_14 = arith.constant 1.250000e-01 : f32
    %43 = vector.broadcast %cst_14 : f32 to vector<10x64xf32>
    %44 = arith.mulf %42, %43 : vector<10x64xf32>
    %45 = vector.shape_cast %44 : vector<10x64xf32> to vector<2x5x64xf32>
    %46 = arith.truncf %45 : vector<2x5x64xf32> to vector<2x5x64xbf16>
    %47 = vector.extract_strided_slice %39 {offsets = [0, 64], sizes = [10, 64], strides = [1, 1]} : vector<10x192xf32> to vector<10x64xf32>
    %48 = vector.broadcast %8 : vector<1x64xf32> to vector<10x64xf32>
    %49 = arith.addf %47, %48 : vector<10x64xf32>
    %50 = vector.shape_cast %49 : vector<10x64xf32> to vector<2x5x64xf32>
    %51 = arith.truncf %50 : vector<2x5x64xf32> to vector<2x5x64xbf16>
    %52 = vector.extract_strided_slice %39 {offsets = [0, 128], sizes = [10, 64], strides = [1, 1]} : vector<10x192xf32> to vector<10x64xf32>
    %53 = vector.broadcast %9 : vector<1x64xf32> to vector<10x64xf32>
    %54 = arith.addf %52, %53 : vector<10x64xf32>
    %55 = vector.shape_cast %54 : vector<10x64xf32> to vector<2x5x64xf32>
    %56 = arith.truncf %55 : vector<2x5x64xf32> to vector<2x5x64xbf16>
    "tpu.trace_start"() <{level = 10 : i32, message = "bld,bmd->blm"}> : () -> ()
    %cst_15 = arith.constant dense<0.000000e+00> : vector<2x5x5xf32>
    %57 = tpu.matmul %46, %51, %cst_15 {dimension_numbers = #tpu.dot_dimension_numbers<[2], [2], [1], [1], [0, 0, 0, 1, 1, 1], [0], [0]>} : vector<2x5x64xbf16>, vector<2x5x64xbf16>, vector<2x5x5xf32> -> vector<2x5x5xf32>
    "tpu.trace_stop"() : () -> ()
    %cst_16 = arith.constant dense<0xFF800000> : vector<2x5xf32>
    %58 = vector.multi_reduction <maximumf>, %57, %cst_16 [2] : vector<2x5x5xf32> to vector<2x5xf32>
    %59 = vector.shape_cast %58 : vector<2x5xf32> to vector<2x5x1xf32>
    %60 = vector.broadcast %59 : vector<2x5x1xf32> to vector<2x5x5xf32>
    %61 = arith.subf %57, %60 : vector<2x5x5xf32>
    %62 = math.exp %61 : vector<2x5x5xf32>
    %cst_17 = arith.constant dense<0.000000e+00> : vector<2x5xf32>
    %63 = vector.multi_reduction <add>, %62, %cst_17 [2] : vector<2x5x5xf32> to vector<2x5xf32>
    %64 = vector.shape_cast %63 : vector<2x5xf32> to vector<2x5x1xf32>
    %65 = tpu.reciprocal %64 {approx = true} : vector<2x5x1xf32> -> vector<2x5x1xf32>
    %66 = vector.broadcast %65 : vector<2x5x1xf32> to vector<2x5x5xf32>
    %67 = arith.mulf %62, %66 : vector<2x5x5xf32>
    %68 = arith.truncf %67 : vector<2x5x5xf32> to vector<2x5x5xbf16>
    "tpu.trace_start"() <{level = 10 : i32, message = "blm,bmd->bld"}> : () -> ()
    %cst_18 = arith.constant dense<0.000000e+00> : vector<2x5x64xf32>
    %69 = tpu.matmul %68, %56, %cst_18 {dimension_numbers = #tpu.dot_dimension_numbers<[2], [1], [1], [2], [0, 0, 0, 1, 1, 2], [0], [0]>} : vector<2x5x5xbf16>, vector<2x5x64xbf16>, vector<2x5x64xf32> -> vector<2x5x64xf32>
    "tpu.trace_stop"() : () -> ()
    %70 = vector.shape_cast %69 : vector<2x5x64xf32> to vector<10x64xf32>
    %71 = arith.truncf %70 : vector<10x64xf32> to vector<10x64xbf16>
    %c0_19 = arith.constant 0 : index
    %c0_20 = arith.constant 0 : index
    %c0_21 = arith.constant 0 : index
    %72 = vector.load %arg4[%c0_19, %c0_20, %c0_21] : memref<1x64x64xbf16, #tpu.memory_space<vmem>>, vector<1x64x64xbf16>
    %73 = vector.shape_cast %72 : vector<1x64x64xbf16> to vector<64x64xbf16>
    %cst_22 = arith.constant dense<0.000000e+00> : vector<10x64xf32>
    %74 = tpu.matmul %71, %73, %cst_22 {dimension_numbers = #tpu.dot_dimension_numbers<[1], [0], [0], [1], [0, 0, 1, 1], [], []>} : vector<10x64xbf16>, vector<64x64xbf16>, vector<10x64xf32> -> vector<10x64xf32>
    %75 = vector.broadcast %10 : vector<1x64xf32> to vector<10x64xf32>
    %76 = arith.addf %74, %75 : vector<10x64xf32>
    %77 = arith.addf %15, %76 : vector<10x64xf32>
    %cst_23 = arith.constant dense<0.000000e+00> : vector<10xf32>
    %78 = vector.multi_reduction <add>, %77, %cst_23 [1] : vector<10x64xf32> to vector<10xf32>
    %79 = vector.shape_cast %78 : vector<10xf32> to vector<10x1xf32>
    %cst_24 = arith.constant 6.400000e+01 : f32
    %80 = vector.broadcast %cst_24 : f32 to vector<10x1xf32>
    %81 = arith.divf %79, %80 : vector<10x1xf32>
    %82 = vector.broadcast %81 : vector<10x1xf32> to vector<10x64xf32>
    %83 = arith.subf %77, %82 : vector<10x64xf32>
    %84 = arith.mulf %83, %83 : vector<10x64xf32>
    %cst_25 = arith.constant dense<0.000000e+00> : vector<10xf32>
    %85 = vector.multi_reduction <add>, %84, %cst_25 [1] : vector<10x64xf32> to vector<10xf32>
    %86 = vector.shape_cast %85 : vector<10xf32> to vector<10x1xf32>
    %cst_26 = arith.constant 6.400000e+01 : f32
    %87 = vector.broadcast %cst_26 : f32 to vector<10x1xf32>
    %88 = arith.divf %86, %87 : vector<10x1xf32>
    %cst_27 = arith.constant 9.99999974E-6 : f32
    %89 = vector.broadcast %cst_27 : f32 to vector<10x1xf32>
    %90 = arith.addf %88, %89 : vector<10x1xf32>
    %91 = math.rsqrt %90 : vector<10x1xf32>
    %92 = vector.broadcast %91 : vector<10x1xf32> to vector<10x64xf32>
    %93 = arith.mulf %83, %92 : vector<10x64xf32>
    %94 = vector.broadcast %11 : vector<1x64xf32> to vector<10x64xf32>
    %95 = arith.mulf %93, %94 : vector<10x64xf32>
    %96 = vector.broadcast %12 : vector<1x64xf32> to vector<10x64xf32>
    %97 = arith.addf %95, %96 : vector<10x64xf32>
    %98 = arith.truncf %97 : vector<10x64xf32> to vector<10x64xbf16>
    %c0_28 = arith.constant 0 : index
    %c0_29 = arith.constant 0 : index
    %c0_30 = arith.constant 0 : index
    %99 = vector.load %arg5[%c0_28, %c0_29, %c0_30] : memref<1x64x256xbf16, #tpu.memory_space<vmem>>, vector<1x64x256xbf16>
    %100 = vector.shape_cast %99 : vector<1x64x256xbf16> to vector<64x256xbf16>
    %cst_31 = arith.constant dense<0.000000e+00> : vector<10x256xf32>
    %101 = tpu.matmul %98, %100, %cst_31 {dimension_numbers = #tpu.dot_dimension_numbers<[1], [0], [0], [1], [0, 0, 1, 1], [], []>} : vector<10x64xbf16>, vector<64x256xbf16>, vector<10x256xf32> -> vector<10x256xf32>
    %c0_32 = arith.constant 0 : index
    %c0_33 = arith.constant 0 : index
    %c0_34 = arith.constant 0 : index
    %102 = vector.load %arg6[%c0_32, %c0_33, %c0_34] : memref<1x1x256xf32, #tpu.memory_space<vmem>>, vector<1x1x256xf32>
    %103 = vector.shape_cast %102 : vector<1x1x256xf32> to vector<1x256xf32>
    %104 = vector.broadcast %103 : vector<1x256xf32> to vector<10x256xf32>
    %105 = arith.addf %101, %104 : vector<10x256xf32>
    %cst_35 = arith.constant 1.702000e+00 : f32
    %106 = vector.broadcast %cst_35 : f32 to vector<10x256xf32>
    %107 = arith.mulf %106, %105 : vector<10x256xf32>
    %108 = arith.negf %107 : vector<10x256xf32>
    %109 = math.exp %108 : vector<10x256xf32>
    %cst_36 = arith.constant 1.000000e+00 : f32
    %110 = vector.broadcast %cst_36 : f32 to vector<10x256xf32>
    %111 = arith.addf %110, %109 : vector<10x256xf32>
    %112 = arith.divf %110, %111 : vector<10x256xf32>
    %113 = arith.mulf %105, %112 : vector<10x256xf32>
    %114 = arith.truncf %113 : vector<10x256xf32> to vector<10x256xbf16>
    %c0_37 = arith.constant 0 : index
    %c0_38 = arith.constant 0 : index
    %c0_39 = arith.constant 0 : index
    %115 = vector.load %arg7[%c0_37, %c0_38, %c0_39] : memref<1x256x64xbf16, #tpu.memory_space<vmem>>, vector<1x256x64xbf16>
    %116 = vector.shape_cast %115 : vector<1x256x64xbf16> to vector<256x64xbf16>
    %cst_40 = arith.constant dense<0.000000e+00> : vector<10x64xf32>
    %117 = tpu.matmul %114, %116, %cst_40 {dimension_numbers = #tpu.dot_dimension_numbers<[1], [0], [0], [1], [0, 0, 1, 1], [], []>} : vector<10x256xbf16>, vector<256x64xbf16>, vector<10x64xf32> -> vector<10x64xf32>
    %118 = vector.broadcast %13 : vector<1x64xf32> to vector<10x64xf32>
    %119 = arith.addf %117, %118 : vector<10x64xf32>
    %120 = arith.addf %77, %119 : vector<10x64xf32>
    %121 = vector.shape_cast %120 : vector<10x64xf32> to vector<2x5x64xf32>
    %c0_41 = arith.constant 0 : index
    %c0_42 = arith.constant 0 : index
    %c0_43 = arith.constant 0 : index
    %122 = vector.load %arg8[%c0_41, %c0_42, %c0_43] : memref<2x5x64xf32, #tpu.memory_space<vmem>>, vector<2x5x64xf32>
    tpu.vector_store %arg8[%c0_41, %c0_42, %c0_43], %121 {strides = array<i32>} : memref<2x5x64xf32, #tpu.memory_space<vmem>>, vector<2x5x64xf32>,
    return
  }
  func.func @transform_0(%arg0: i32) -> (i32, i32, i32) {
    %c0_i32 = arith.constant 0 : i32
    %c0_i32_0 = arith.constant 0 : i32
    %c0_i32_1 = arith.constant 0 : i32
    %c0_i32_2 = arith.constant 0 : i32
    return %c0_i32, %c0_i32_0, %c0_i32_1 : i32, i32, i32
  }
  func.func @transform_1(%arg0: i32) -> (i32, i32, i32) {
    %c0_i32 = arith.constant 0 : i32
    %c0_i32_0 = arith.constant 0 : i32
    %c0_i32_1 = arith.constant 0 : i32
    return %arg0, %c0_i32, %c0_i32_0 : i32, i32, i32
  }
  func.func @transform_2(%arg0: i32) -> (i32, i32, i32) {
    %c0_i32 = arith.constant 0 : i32
    %c0_i32_0 = arith.constant 0 : i32
    %c0_i32_1 = arith.constant 0 : i32
    return %arg0, %c0_i32, %c0_i32_0 : i32, i32, i32
  }
  func.func @transform_3(%arg0: i32) -> (i32, i32, i32) {
    %c0_i32 = arith.constant 0 : i32
    %c0_i32_0 = arith.constant 0 : i32
    %c0_i32_1 = arith.constant 0 : i32
    return %arg0, %c0_i32, %c0_i32_0 : i32, i32, i32
  }
  func.func @transform_4(%arg0: i32) -> (i32, i32, i32) {
    %c0_i32 = arith.constant 0 : i32
    %c0_i32_0 = arith.constant 0 : i32
    %c0_i32_1 = arith.constant 0 : i32
    return %arg0, %c0_i32, %c0_i32_0 : i32, i32, i32
  }
  func.func @transform_5(%arg0: i32) -> (i32, i32, i32) {
    %c0_i32 = arith.constant 0 : i32
    %c0_i32_0 = arith.constant 0 : i32
    %c0_i32_1 = arith.constant 0 : i32
    return %arg0, %c0_i32, %c0_i32_0 : i32, i32, i32
  }
  func.func @transform_6(%arg0: i32) -> (i32, i32, i32) {
    %c0_i32 = arith.constant 0 : i32
    %c0_i32_0 = arith.constant 0 : i32
    %c0_i32_1 = arith.constant 0 : i32
    return %arg0, %c0_i32, %c0_i32_0 : i32, i32, i32
  }
  func.func @transform_7(%arg0: i32) -> (i32, i32, i32) {
    %c0_i32 = arith.constant 0 : i32
    %c0_i32_0 = arith.constant 0 : i32
    %c0_i32_1 = arith.constant 0 : i32
    %c0_i32_2 = arith.constant 0 : i32
    return %c0_i32, %c0_i32_0, %c0_i32_1 : i32, i32, i32
  }
}

module attributes {stable_mosaic.version = 11 : i64} {
  func.func @_head_kernel(%arg0: i32, %arg1: memref<2x64xf32, #tpu.memory_space<vmem>>, %arg2: memref<1x64xf32, #tpu.memory_space<vmem>>, %arg3: memref<1x64xf32, #tpu.memory_space<vmem>>, %arg4: memref<64x32xbf16, #tpu.memory_space<vmem>>, %arg5: memref<2x32xf32, #tpu.memory_space<vmem>>) attributes {dimension_semantics = [#tpu.dimension_semantics<arbitrary>], iteration_bounds = array<i64: 1>, scalar_prefetch = 0 : i64, scratch_operands = 0 : i64, tpu.core_type = #tpu.core_type<tc>, window_params = [{pipeline_mode = #tpu.pipeline_mode<synchronous>, transform_indices = @transform_0, window_bounds = array<i64: 2, 64>}, {pipeline_mode = #tpu.pipeline_mode<synchronous>, transform_indices = @transform_1, window_bounds = array<i64: 1, 64>}, {pipeline_mode = #tpu.pipeline_mode<synchronous>, transform_indices = @transform_2, window_bounds = array<i64: 1, 64>}, {pipeline_mode = #tpu.pipeline_mode<synchronous>, transform_indices = @transform_3, window_bounds = array<i64: 64, 32>}, {pipeline_mode = #tpu.pipeline_mode<synchronous>, transform_indices = @transform_4, window_bounds = array<i64: 2, 32>}]} {
    %c0 = arith.constant 0 : index
    %c0_0 = arith.constant 0 : index
    %0 = vector.load %arg1[%c0, %c0_0] : memref<2x64xf32, #tpu.memory_space<vmem>>, vector<2x64xf32>
    %c0_1 = arith.constant 0 : index
    %c0_2 = arith.constant 0 : index
    %1 = vector.load %arg2[%c0_1, %c0_2] : memref<1x64xf32, #tpu.memory_space<vmem>>, vector<1x64xf32>
    %c0_3 = arith.constant 0 : index
    %c0_4 = arith.constant 0 : index
    %2 = vector.load %arg3[%c0_3, %c0_4] : memref<1x64xf32, #tpu.memory_space<vmem>>, vector<1x64xf32>
    %cst = arith.constant dense<0.000000e+00> : vector<2xf32>
    %3 = vector.multi_reduction <add>, %0, %cst [1] : vector<2x64xf32> to vector<2xf32>
    %4 = vector.shape_cast %3 : vector<2xf32> to vector<2x1xf32>
    %cst_5 = arith.constant 6.400000e+01 : f32
    %5 = vector.broadcast %cst_5 : f32 to vector<2x1xf32>
    %6 = arith.divf %4, %5 : vector<2x1xf32>
    %7 = vector.broadcast %6 : vector<2x1xf32> to vector<2x64xf32>
    %8 = arith.subf %0, %7 : vector<2x64xf32>
    %9 = arith.mulf %8, %8 : vector<2x64xf32>
    %cst_6 = arith.constant dense<0.000000e+00> : vector<2xf32>
    %10 = vector.multi_reduction <add>, %9, %cst_6 [1] : vector<2x64xf32> to vector<2xf32>
    %11 = vector.shape_cast %10 : vector<2xf32> to vector<2x1xf32>
    %cst_7 = arith.constant 6.400000e+01 : f32
    %12 = vector.broadcast %cst_7 : f32 to vector<2x1xf32>
    %13 = arith.divf %11, %12 : vector<2x1xf32>
    %cst_8 = arith.constant 9.99999974E-6 : f32
    %14 = vector.broadcast %cst_8 : f32 to vector<2x1xf32>
    %15 = arith.addf %13, %14 : vector<2x1xf32>
    %16 = math.rsqrt %15 : vector<2x1xf32>
    %17 = vector.broadcast %16 : vector<2x1xf32> to vector<2x64xf32>
    %18 = arith.mulf %8, %17 : vector<2x64xf32>
    %19 = vector.broadcast %1 : vector<1x64xf32> to vector<2x64xf32>
    %20 = arith.mulf %18, %19 : vector<2x64xf32>
    %21 = vector.broadcast %2 : vector<1x64xf32> to vector<2x64xf32>
    %22 = arith.addf %20, %21 : vector<2x64xf32>
    %23 = arith.truncf %22 : vector<2x64xf32> to vector<2x64xbf16>
    %c0_9 = arith.constant 0 : index
    %c0_10 = arith.constant 0 : index
    %24 = vector.load %arg4[%c0_9, %c0_10] : memref<64x32xbf16, #tpu.memory_space<vmem>>, vector<64x32xbf16>
    %cst_11 = arith.constant dense<0.000000e+00> : vector<2x32xf32>
    %25 = tpu.matmul %23, %24, %cst_11 {dimension_numbers = #tpu.dot_dimension_numbers<[1], [0], [0], [1], [0, 0, 1, 1], [], []>} : vector<2x64xbf16>, vector<64x32xbf16>, vector<2x32xf32> -> vector<2x32xf32>
    %26 = arith.mulf %25, %25 : vector<2x32xf32>
    %cst_12 = arith.constant dense<0.000000e+00> : vector<2xf32>
    %27 = vector.multi_reduction <add>, %26, %cst_12 [1] : vector<2x32xf32> to vector<2xf32>
    %28 = vector.shape_cast %27 : vector<2xf32> to vector<2x1xf32>
    %cst_13 = arith.constant 1.000000e-24 : f32
    %29 = vector.broadcast %cst_13 : f32 to vector<2x1xf32>
    %30 = arith.maximumf %28, %29 : vector<2x1xf32>
    %31 = math.rsqrt %30 : vector<2x1xf32>
    %32 = vector.broadcast %31 : vector<2x1xf32> to vector<2x32xf32>
    %33 = arith.mulf %25, %32 : vector<2x32xf32>
    %c0_14 = arith.constant 0 : index
    %c0_15 = arith.constant 0 : index
    %34 = vector.load %arg5[%c0_14, %c0_15] : memref<2x32xf32, #tpu.memory_space<vmem>>, vector<2x32xf32>
    tpu.vector_store %arg5[%c0_14, %c0_15], %33 {strides = array<i32>} : memref<2x32xf32, #tpu.memory_space<vmem>>, vector<2x32xf32>,
    return
  }
  func.func @transform_0(%arg0: i32) -> (i32, i32) {
    %c0_i32 = arith.constant 0 : i32
    %c0_i32_0 = arith.constant 0 : i32
    %c0_i32_1 = arith.constant 0 : i32
    return %c0_i32, %c0_i32_0 : i32, i32
  }
  func.func @transform_1(%arg0: i32) -> (i32, i32) {
    %c0_i32 = arith.constant 0 : i32
    %c0_i32_0 = arith.constant 0 : i32
    %c0_i32_1 = arith.constant 0 : i32
    return %c0_i32, %c0_i32_0 : i32, i32
  }
  func.func @transform_2(%arg0: i32) -> (i32, i32) {
    %c0_i32 = arith.constant 0 : i32
    %c0_i32_0 = arith.constant 0 : i32
    %c0_i32_1 = arith.constant 0 : i32
    return %c0_i32, %c0_i32_0 : i32, i32
  }
  func.func @transform_3(%arg0: i32) -> (i32, i32) {
    %c0_i32 = arith.constant 0 : i32
    %c0_i32_0 = arith.constant 0 : i32
    %c0_i32_1 = arith.constant 0 : i32
    return %c0_i32, %c0_i32_0 : i32, i32
  }
  func.func @transform_4(%arg0: i32) -> (i32, i32) {
    %c0_i32 = arith.constant 0 : i32
    %c0_i32_0 = arith.constant 0 : i32
    %c0_i32_1 = arith.constant 0 : i32
    return %c0_i32, %c0_i32_0 : i32, i32
  }
}

module attributes {stable_mosaic.version = 11 : i64} {
  func.func @_transformer_kernel(%arg0: i32, %arg1: memref<2x8x64xf32, #tpu.memory_space<vmem>>, %arg2: memref<1x9x64xf32, #tpu.memory_space<vmem>>, %arg3: memref<1x64x192xbf16, #tpu.memory_space<vmem>>, %arg4: memref<1x64x64xbf16, #tpu.memory_space<vmem>>, %arg5: memref<1x64x256xbf16, #tpu.memory_space<vmem>>, %arg6: memref<1x1x256xf32, #tpu.memory_space<vmem>>, %arg7: memref<1x256x64xbf16, #tpu.memory_space<vmem>>, %arg8: memref<2x8x64xf32, #tpu.memory_space<vmem>>, %arg9: memref<8x8xf32, #tpu.memory_space<vmem>>) attributes {dimension_semantics = [#tpu.dimension_semantics<arbitrary>], iteration_bounds = array<i64: 2>, scalar_prefetch = 0 : i64, scratch_operands = 1 : i64, tpu.core_type = #tpu.core_type<tc>, window_params = [{pipeline_mode = #tpu.pipeline_mode<synchronous>, transform_indices = @transform_0, window_bounds = array<i64: 2, 8, 64>}, {transform_indices = @transform_1, window_bounds = array<i64: 1, 9, 64>}, {transform_indices = @transform_2, window_bounds = array<i64: 1, 64, 192>}, {transform_indices = @transform_3, window_bounds = array<i64: 1, 64, 64>}, {transform_indices = @transform_4, window_bounds = array<i64: 1, 64, 256>}, {transform_indices = @transform_5, window_bounds = array<i64: 1, 1, 256>}, {transform_indices = @transform_6, window_bounds = array<i64: 1, 256, 64>}, {pipeline_mode = #tpu.pipeline_mode<synchronous>, transform_indices = @transform_7, window_bounds = array<i64: 2, 8, 64>}]} {
    %c0_i32 = arith.constant 0 : i32
    %0 = arith.cmpi eq, %arg0, %c0_i32 : i32
    %1 = arith.extui %0 : i1 to i32
    %c0_i32_0 = arith.constant 0 : i32
    %2 = arith.cmpi ne, %1, %c0_i32_0 : i32
    scf.if %2 {
      %c0_52 = arith.constant 0 : index
      %c0_53 = arith.constant 0 : index
      %c0_54 = arith.constant 0 : index
      %151 = vector.load %arg1[%c0_52, %c0_53, %c0_54] : memref<2x8x64xf32, #tpu.memory_space<vmem>>, vector<2x8x64xf32>
      %c0_55 = arith.constant 0 : index
      %c0_56 = arith.constant 0 : index
      %c0_57 = arith.constant 0 : index
      %152 = vector.load %arg8[%c0_55, %c0_56, %c0_57] : memref<2x8x64xf32, #tpu.memory_space<vmem>>, vector<2x8x64xf32>
      tpu.vector_store %arg8[%c0_55, %c0_56, %c0_57], %151 {strides = array<i32>} : memref<2x8x64xf32, #tpu.memory_space<vmem>>, vector<2x8x64xf32>,
      %153 = tpu.iota {dimensions = array<i32: 0>} : vector<8x8xi32>
      %154 = tpu.iota {dimensions = array<i32: 1>} : vector<8x8xi32>
      %155 = arith.cmpi sgt, %154, %153 : vector<8x8xi32>
      %cst_58 = arith.constant -1.000000e+04 : f32
      %cst_59 = arith.constant 0.000000e+00 : f32
      %156 = vector.broadcast %cst_58 : f32 to vector<8x8xf32>
      %157 = vector.broadcast %cst_59 : f32 to vector<8x8xf32>
      %158 = arith.select %155, %156, %157 : vector<8x8xi1>, vector<8x8xf32>
      %c0_60 = arith.constant 0 : index
      %c0_61 = arith.constant 0 : index
      %159 = vector.load %arg9[%c0_60, %c0_61] : memref<8x8xf32, #tpu.memory_space<vmem>>, vector<8x8xf32>
      tpu.vector_store %arg9[%c0_60, %c0_61], %158 {strides = array<i32>} : memref<8x8xf32, #tpu.memory_space<vmem>>, vector<8x8xf32>,
    } else {
    }
    %c0 = arith.constant 0 : index
    %c0_1 = arith.constant 0 : index
    %c0_2 = arith.constant 0 : index
    %3 = vector.load %arg2[%c0, %c0_1, %c0_2] : memref<1x9x64xf32, #tpu.memory_space<vmem>>, vector<1x9x64xf32>
    %4 = vector.shape_cast %3 : vector<1x9x64xf32> to vector<9x64xf32>
    %5 = vector.extract_strided_slice %4 {offsets = [0, 0], sizes = [1, 64], strides = [1, 1]} : vector<9x64xf32> to vector<1x64xf32>
    %6 = vector.extract_strided_slice %4 {offsets = [1, 0], sizes = [1, 64], strides = [1, 1]} : vector<9x64xf32> to vector<1x64xf32>
    %7 = vector.extract_strided_slice %4 {offsets = [2, 0], sizes = [1, 64], strides = [1, 1]} : vector<9x64xf32> to vector<1x64xf32>
    %8 = vector.extract_strided_slice %4 {offsets = [3, 0], sizes = [1, 64], strides = [1, 1]} : vector<9x64xf32> to vector<1x64xf32>
    %9 = vector.extract_strided_slice %4 {offsets = [4, 0], sizes = [1, 64], strides = [1, 1]} : vector<9x64xf32> to vector<1x64xf32>
    %10 = vector.extract_strided_slice %4 {offsets = [5, 0], sizes = [1, 64], strides = [1, 1]} : vector<9x64xf32> to vector<1x64xf32>
    %11 = vector.extract_strided_slice %4 {offsets = [6, 0], sizes = [1, 64], strides = [1, 1]} : vector<9x64xf32> to vector<1x64xf32>
    %12 = vector.extract_strided_slice %4 {offsets = [7, 0], sizes = [1, 64], strides = [1, 1]} : vector<9x64xf32> to vector<1x64xf32>
    %13 = vector.extract_strided_slice %4 {offsets = [8, 0], sizes = [1, 64], strides = [1, 1]} : vector<9x64xf32> to vector<1x64xf32>
    %c0_3 = arith.constant 0 : index
    %c0_4 = arith.constant 0 : index
    %c0_5 = arith.constant 0 : index
    %14 = vector.load %arg8[%c0_3, %c0_4, %c0_5] : memref<2x8x64xf32, #tpu.memory_space<vmem>>, vector<2x8x64xf32>
    %15 = vector.shape_cast %14 : vector<2x8x64xf32> to vector<16x64xf32>
    %cst = arith.constant dense<0.000000e+00> : vector<16xf32>
    %16 = vector.multi_reduction <add>, %15, %cst [1] : vector<16x64xf32> to vector<16xf32>
    %17 = vector.shape_cast %16 : vector<16xf32> to vector<16x1xf32>
    %cst_6 = arith.constant 6.400000e+01 : f32
    %18 = vector.broadcast %cst_6 : f32 to vector<16x1xf32>
    %19 = arith.divf %17, %18 : vector<16x1xf32>
    %20 = vector.broadcast %19 : vector<16x1xf32> to vector<16x64xf32>
    %21 = arith.subf %15, %20 : vector<16x64xf32>
    %22 = arith.mulf %21, %21 : vector<16x64xf32>
    %cst_7 = arith.constant dense<0.000000e+00> : vector<16xf32>
    %23 = vector.multi_reduction <add>, %22, %cst_7 [1] : vector<16x64xf32> to vector<16xf32>
    %24 = vector.shape_cast %23 : vector<16xf32> to vector<16x1xf32>
    %cst_8 = arith.constant 6.400000e+01 : f32
    %25 = vector.broadcast %cst_8 : f32 to vector<16x1xf32>
    %26 = arith.divf %24, %25 : vector<16x1xf32>
    %cst_9 = arith.constant 9.99999974E-6 : f32
    %27 = vector.broadcast %cst_9 : f32 to vector<16x1xf32>
    %28 = arith.addf %26, %27 : vector<16x1xf32>
    %29 = math.rsqrt %28 : vector<16x1xf32>
    %30 = vector.broadcast %29 : vector<16x1xf32> to vector<16x64xf32>
    %31 = arith.mulf %21, %30 : vector<16x64xf32>
    %32 = vector.broadcast %5 : vector<1x64xf32> to vector<16x64xf32>
    %33 = arith.mulf %31, %32 : vector<16x64xf32>
    %34 = vector.broadcast %6 : vector<1x64xf32> to vector<16x64xf32>
    %35 = arith.addf %33, %34 : vector<16x64xf32>
    %36 = arith.truncf %35 : vector<16x64xf32> to vector<16x64xbf16>
    %c0_10 = arith.constant 0 : index
    %c0_11 = arith.constant 0 : index
    %c0_12 = arith.constant 0 : index
    %37 = vector.load %arg3[%c0_10, %c0_11, %c0_12] : memref<1x64x192xbf16, #tpu.memory_space<vmem>>, vector<1x64x192xbf16>
    %38 = vector.shape_cast %37 : vector<1x64x192xbf16> to vector<64x192xbf16>
    %cst_13 = arith.constant dense<0.000000e+00> : vector<16x192xf32>
    %39 = tpu.matmul %36, %38, %cst_13 {dimension_numbers = #tpu.dot_dimension_numbers<[1], [0], [0], [1], [0, 0, 1, 1], [], []>} : vector<16x64xbf16>, vector<64x192xbf16>, vector<16x192xf32> -> vector<16x192xf32>
    %40 = vector.extract_strided_slice %39 {offsets = [0, 0], sizes = [16, 64], strides = [1, 1]} : vector<16x192xf32> to vector<16x64xf32>
    %41 = vector.broadcast %7 : vector<1x64xf32> to vector<16x64xf32>
    %42 = arith.addf %40, %41 : vector<16x64xf32>
    %cst_14 = arith.constant 0.176776692 : f32
    %43 = vector.broadcast %cst_14 : f32 to vector<16x64xf32>
    %44 = arith.mulf %42, %43 : vector<16x64xf32>
    %45 = vector.shape_cast %44 : vector<16x64xf32> to vector<2x8x64xf32>
    %46 = arith.truncf %45 : vector<2x8x64xf32> to vector<2x8x64xbf16>
    %47 = vector.extract_strided_slice %39 {offsets = [0, 64], sizes = [16, 64], strides = [1, 1]} : vector<16x192xf32> to vector<16x64xf32>
    %48 = vector.broadcast %8 : vector<1x64xf32> to vector<16x64xf32>
    %49 = arith.addf %47, %48 : vector<16x64xf32>
    %50 = vector.shape_cast %49 : vector<16x64xf32> to vector<2x8x64xf32>
    %51 = arith.truncf %50 : vector<2x8x64xf32> to vector<2x8x64xbf16>
    %52 = vector.extract_strided_slice %39 {offsets = [0, 128], sizes = [16, 64], strides = [1, 1]} : vector<16x192xf32> to vector<16x64xf32>
    %53 = vector.broadcast %9 : vector<1x64xf32> to vector<16x64xf32>
    %54 = arith.addf %52, %53 : vector<16x64xf32>
    %55 = vector.shape_cast %54 : vector<16x64xf32> to vector<2x8x64xf32>
    %56 = arith.truncf %55 : vector<2x8x64xf32> to vector<2x8x64xbf16>
    %57 = vector.extract_strided_slice %46 {offsets = [0, 0, 0], sizes = [2, 8, 32], strides = [1, 1, 1]} : vector<2x8x64xbf16> to vector<2x8x32xbf16>
    %58 = vector.extract_strided_slice %51 {offsets = [0, 0, 0], sizes = [2, 8, 32], strides = [1, 1, 1]} : vector<2x8x64xbf16> to vector<2x8x32xbf16>
    %59 = vector.extract_strided_slice %56 {offsets = [0, 0, 0], sizes = [2, 8, 32], strides = [1, 1, 1]} : vector<2x8x64xbf16> to vector<2x8x32xbf16>
    "tpu.trace_start"() <{level = 10 : i32, message = "bld,bmd->blm"}> : () -> ()
    %cst_15 = arith.constant dense<0.000000e+00> : vector<2x8x8xf32>
    %60 = tpu.matmul %57, %58, %cst_15 {dimension_numbers = #tpu.dot_dimension_numbers<[2], [2], [1], [1], [0, 0, 0, 1, 1, 1], [0], [0]>} : vector<2x8x32xbf16>, vector<2x8x32xbf16>, vector<2x8x8xf32> -> vector<2x8x8xf32>
    "tpu.trace_stop"() : () -> ()
    %c0_16 = arith.constant 0 : index
    %c0_17 = arith.constant 0 : index
    %61 = vector.load %arg9[%c0_16, %c0_17] : memref<8x8xf32, #tpu.memory_space<vmem>>, vector<8x8xf32>
    %62 = vector.shape_cast %61 : vector<8x8xf32> to vector<1x8x8xf32>
    %63 = vector.broadcast %62 : vector<1x8x8xf32> to vector<2x8x8xf32>
    %64 = arith.addf %60, %63 : vector<2x8x8xf32>
    %cst_18 = arith.constant dense<0xFF800000> : vector<2x8xf32>
    %65 = vector.multi_reduction <maximumf>, %64, %cst_18 [2] : vector<2x8x8xf32> to vector<2x8xf32>
    %66 = vector.shape_cast %65 : vector<2x8xf32> to vector<2x8x1xf32>
    %67 = vector.broadcast %66 : vector<2x8x1xf32> to vector<2x8x8xf32>
    %68 = arith.subf %64, %67 : vector<2x8x8xf32>
    %69 = math.exp %68 : vector<2x8x8xf32>
    %cst_19 = arith.constant dense<0.000000e+00> : vector<2x8xf32>
    %70 = vector.multi_reduction <add>, %69, %cst_19 [2] : vector<2x8x8xf32> to vector<2x8xf32>
    %71 = vector.shape_cast %70 : vector<2x8xf32> to vector<2x8x1xf32>
    %72 = tpu.reciprocal %71 {approx = true} : vector<2x8x1xf32> -> vector<2x8x1xf32>
    %73 = vector.broadcast %72 : vector<2x8x1xf32> to vector<2x8x8xf32>
    %74 = arith.mulf %69, %73 : vector<2x8x8xf32>
    %75 = arith.truncf %74 : vector<2x8x8xf32> to vector<2x8x8xbf16>
    "tpu.trace_start"() <{level = 10 : i32, message = "blm,bmd->bld"}> : () -> ()
    %cst_20 = arith.constant dense<0.000000e+00> : vector<2x8x32xf32>
    %76 = tpu.matmul %75, %59, %cst_20 {dimension_numbers = #tpu.dot_dimension_numbers<[2], [1], [1], [2], [0, 0, 0, 1, 1, 2], [0], [0]>} : vector<2x8x8xbf16>, vector<2x8x32xbf16>, vector<2x8x32xf32> -> vector<2x8x32xf32>
    "tpu.trace_stop"() : () -> ()
    %77 = vector.extract_strided_slice %46 {offsets = [0, 0, 32], sizes = [2, 8, 32], strides = [1, 1, 1]} : vector<2x8x64xbf16> to vector<2x8x32xbf16>
    %78 = vector.extract_strided_slice %51 {offsets = [0, 0, 32], sizes = [2, 8, 32], strides = [1, 1, 1]} : vector<2x8x64xbf16> to vector<2x8x32xbf16>
    %79 = vector.extract_strided_slice %56 {offsets = [0, 0, 32], sizes = [2, 8, 32], strides = [1, 1, 1]} : vector<2x8x64xbf16> to vector<2x8x32xbf16>
    "tpu.trace_start"() <{level = 10 : i32, message = "bld,bmd->blm"}> : () -> ()
    %cst_21 = arith.constant dense<0.000000e+00> : vector<2x8x8xf32>
    %80 = tpu.matmul %77, %78, %cst_21 {dimension_numbers = #tpu.dot_dimension_numbers<[2], [2], [1], [1], [0, 0, 0, 1, 1, 1], [0], [0]>} : vector<2x8x32xbf16>, vector<2x8x32xbf16>, vector<2x8x8xf32> -> vector<2x8x8xf32>
    "tpu.trace_stop"() : () -> ()
    %c0_22 = arith.constant 0 : index
    %c0_23 = arith.constant 0 : index
    %81 = vector.load %arg9[%c0_22, %c0_23] : memref<8x8xf32, #tpu.memory_space<vmem>>, vector<8x8xf32>
    %82 = vector.shape_cast %81 : vector<8x8xf32> to vector<1x8x8xf32>
    %83 = vector.broadcast %82 : vector<1x8x8xf32> to vector<2x8x8xf32>
    %84 = arith.addf %80, %83 : vector<2x8x8xf32>
    %cst_24 = arith.constant dense<0xFF800000> : vector<2x8xf32>
    %85 = vector.multi_reduction <maximumf>, %84, %cst_24 [2] : vector<2x8x8xf32> to vector<2x8xf32>
    %86 = vector.shape_cast %85 : vector<2x8xf32> to vector<2x8x1xf32>
    %87 = vector.broadcast %86 : vector<2x8x1xf32> to vector<2x8x8xf32>
    %88 = arith.subf %84, %87 : vector<2x8x8xf32>
    %89 = math.exp %88 : vector<2x8x8xf32>
    %cst_25 = arith.constant dense<0.000000e+00> : vector<2x8xf32>
    %90 = vector.multi_reduction <add>, %89, %cst_25 [2] : vector<2x8x8xf32> to vector<2x8xf32>
    %91 = vector.shape_cast %90 : vector<2x8xf32> to vector<2x8x1xf32>
    %92 = tpu.reciprocal %91 {approx = true} : vector<2x8x1xf32> -> vector<2x8x1xf32>
    %93 = vector.broadcast %92 : vector<2x8x1xf32> to vector<2x8x8xf32>
    %94 = arith.mulf %89, %93 : vector<2x8x8xf32>
    %95 = arith.truncf %94 : vector<2x8x8xf32> to vector<2x8x8xbf16>
    "tpu.trace_start"() <{level = 10 : i32, message = "blm,bmd->bld"}> : () -> ()
    %cst_26 = arith.constant dense<0.000000e+00> : vector<2x8x32xf32>
    %96 = tpu.matmul %95, %79, %cst_26 {dimension_numbers = #tpu.dot_dimension_numbers<[2], [1], [1], [2], [0, 0, 0, 1, 1, 2], [0], [0]>} : vector<2x8x8xbf16>, vector<2x8x32xbf16>, vector<2x8x32xf32> -> vector<2x8x32xf32>
    "tpu.trace_stop"() : () -> ()
    %97 = tpu.concatenate %76, %96 in 2 : vector<2x8x32xf32>, vector<2x8x32xf32> -> vector<2x8x64xf32>
    %98 = vector.shape_cast %97 : vector<2x8x64xf32> to vector<16x64xf32>
    %99 = arith.truncf %98 : vector<16x64xf32> to vector<16x64xbf16>
    %c0_27 = arith.constant 0 : index
    %c0_28 = arith.constant 0 : index
    %c0_29 = arith.constant 0 : index
    %100 = vector.load %arg4[%c0_27, %c0_28, %c0_29] : memref<1x64x64xbf16, #tpu.memory_space<vmem>>, vector<1x64x64xbf16>
    %101 = vector.shape_cast %100 : vector<1x64x64xbf16> to vector<64x64xbf16>
    %cst_30 = arith.constant dense<0.000000e+00> : vector<16x64xf32>
    %102 = tpu.matmul %99, %101, %cst_30 {dimension_numbers = #tpu.dot_dimension_numbers<[1], [0], [0], [1], [0, 0, 1, 1], [], []>} : vector<16x64xbf16>, vector<64x64xbf16>, vector<16x64xf32> -> vector<16x64xf32>
    %103 = vector.broadcast %10 : vector<1x64xf32> to vector<16x64xf32>
    %104 = arith.addf %102, %103 : vector<16x64xf32>
    %105 = arith.addf %15, %104 : vector<16x64xf32>
    %cst_31 = arith.constant dense<0.000000e+00> : vector<16xf32>
    %106 = vector.multi_reduction <add>, %105, %cst_31 [1] : vector<16x64xf32> to vector<16xf32>
    %107 = vector.shape_cast %106 : vector<16xf32> to vector<16x1xf32>
    %cst_32 = arith.constant 6.400000e+01 : f32
    %108 = vector.broadcast %cst_32 : f32 to vector<16x1xf32>
    %109 = arith.divf %107, %108 : vector<16x1xf32>
    %110 = vector.broadcast %109 : vector<16x1xf32> to vector<16x64xf32>
    %111 = arith.subf %105, %110 : vector<16x64xf32>
    %112 = arith.mulf %111, %111 : vector<16x64xf32>
    %cst_33 = arith.constant dense<0.000000e+00> : vector<16xf32>
    %113 = vector.multi_reduction <add>, %112, %cst_33 [1] : vector<16x64xf32> to vector<16xf32>
    %114 = vector.shape_cast %113 : vector<16xf32> to vector<16x1xf32>
    %cst_34 = arith.constant 6.400000e+01 : f32
    %115 = vector.broadcast %cst_34 : f32 to vector<16x1xf32>
    %116 = arith.divf %114, %115 : vector<16x1xf32>
    %cst_35 = arith.constant 9.99999974E-6 : f32
    %117 = vector.broadcast %cst_35 : f32 to vector<16x1xf32>
    %118 = arith.addf %116, %117 : vector<16x1xf32>
    %119 = math.rsqrt %118 : vector<16x1xf32>
    %120 = vector.broadcast %119 : vector<16x1xf32> to vector<16x64xf32>
    %121 = arith.mulf %111, %120 : vector<16x64xf32>
    %122 = vector.broadcast %11 : vector<1x64xf32> to vector<16x64xf32>
    %123 = arith.mulf %121, %122 : vector<16x64xf32>
    %124 = vector.broadcast %12 : vector<1x64xf32> to vector<16x64xf32>
    %125 = arith.addf %123, %124 : vector<16x64xf32>
    %126 = arith.truncf %125 : vector<16x64xf32> to vector<16x64xbf16>
    %c0_36 = arith.constant 0 : index
    %c0_37 = arith.constant 0 : index
    %c0_38 = arith.constant 0 : index
    %127 = vector.load %arg5[%c0_36, %c0_37, %c0_38] : memref<1x64x256xbf16, #tpu.memory_space<vmem>>, vector<1x64x256xbf16>
    %128 = vector.shape_cast %127 : vector<1x64x256xbf16> to vector<64x256xbf16>
    %cst_39 = arith.constant dense<0.000000e+00> : vector<16x256xf32>
    %129 = tpu.matmul %126, %128, %cst_39 {dimension_numbers = #tpu.dot_dimension_numbers<[1], [0], [0], [1], [0, 0, 1, 1], [], []>} : vector<16x64xbf16>, vector<64x256xbf16>, vector<16x256xf32> -> vector<16x256xf32>
    %c0_40 = arith.constant 0 : index
    %c0_41 = arith.constant 0 : index
    %c0_42 = arith.constant 0 : index
    %130 = vector.load %arg6[%c0_40, %c0_41, %c0_42] : memref<1x1x256xf32, #tpu.memory_space<vmem>>, vector<1x1x256xf32>
    %131 = vector.shape_cast %130 : vector<1x1x256xf32> to vector<1x256xf32>
    %132 = vector.broadcast %131 : vector<1x256xf32> to vector<16x256xf32>
    %133 = arith.addf %129, %132 : vector<16x256xf32>
    %cst_43 = arith.constant 1.702000e+00 : f32
    %134 = vector.broadcast %cst_43 : f32 to vector<16x256xf32>
    %135 = arith.mulf %134, %133 : vector<16x256xf32>
    %136 = arith.negf %135 : vector<16x256xf32>
    %137 = math.exp %136 : vector<16x256xf32>
    %cst_44 = arith.constant 1.000000e+00 : f32
    %138 = vector.broadcast %cst_44 : f32 to vector<16x256xf32>
    %139 = arith.addf %138, %137 : vector<16x256xf32>
    %140 = arith.divf %138, %139 : vector<16x256xf32>
    %141 = arith.mulf %133, %140 : vector<16x256xf32>
    %142 = arith.truncf %141 : vector<16x256xf32> to vector<16x256xbf16>
    %c0_45 = arith.constant 0 : index
    %c0_46 = arith.constant 0 : index
    %c0_47 = arith.constant 0 : index
    %143 = vector.load %arg7[%c0_45, %c0_46, %c0_47] : memref<1x256x64xbf16, #tpu.memory_space<vmem>>, vector<1x256x64xbf16>
    %144 = vector.shape_cast %143 : vector<1x256x64xbf16> to vector<256x64xbf16>
    %cst_48 = arith.constant dense<0.000000e+00> : vector<16x64xf32>
    %145 = tpu.matmul %142, %144, %cst_48 {dimension_numbers = #tpu.dot_dimension_numbers<[1], [0], [0], [1], [0, 0, 1, 1], [], []>} : vector<16x256xbf16>, vector<256x64xbf16>, vector<16x64xf32> -> vector<16x64xf32>
    %146 = vector.broadcast %13 : vector<1x64xf32> to vector<16x64xf32>
    %147 = arith.addf %145, %146 : vector<16x64xf32>
    %148 = arith.addf %105, %147 : vector<16x64xf32>
    %149 = vector.shape_cast %148 : vector<16x64xf32> to vector<2x8x64xf32>
    %c0_49 = arith.constant 0 : index
    %c0_50 = arith.constant 0 : index
    %c0_51 = arith.constant 0 : index
    %150 = vector.load %arg8[%c0_49, %c0_50, %c0_51] : memref<2x8x64xf32, #tpu.memory_space<vmem>>, vector<2x8x64xf32>
    tpu.vector_store %arg8[%c0_49, %c0_50, %c0_51], %149 {strides = array<i32>} : memref<2x8x64xf32, #tpu.memory_space<vmem>>, vector<2x8x64xf32>,
    return
  }
  func.func @transform_0(%arg0: i32) -> (i32, i32, i32) {
    %c0_i32 = arith.constant 0 : i32
    %c0_i32_0 = arith.constant 0 : i32
    %c0_i32_1 = arith.constant 0 : i32
    %c0_i32_2 = arith.constant 0 : i32
    return %c0_i32, %c0_i32_0, %c0_i32_1 : i32, i32, i32
  }
  func.func @transform_1(%arg0: i32) -> (i32, i32, i32) {
    %c0_i32 = arith.constant 0 : i32
    %c0_i32_0 = arith.constant 0 : i32
    %c0_i32_1 = arith.constant 0 : i32
    return %arg0, %c0_i32, %c0_i32_0 : i32, i32, i32
  }
  func.func @transform_2(%arg0: i32) -> (i32, i32, i32) {
    %c0_i32 = arith.constant 0 : i32
    %c0_i32_0 = arith.constant 0 : i32
    %c0_i32_1 = arith.constant 0 : i32
    return %arg0, %c0_i32, %c0_i32_0 : i32, i32, i32
  }
  func.func @transform_3(%arg0: i32) -> (i32, i32, i32) {
    %c0_i32 = arith.constant 0 : i32
    %c0_i32_0 = arith.constant 0 : i32
    %c0_i32_1 = arith.constant 0 : i32
    return %arg0, %c0_i32, %c0_i32_0 : i32, i32, i32
  }
  func.func @transform_4(%arg0: i32) -> (i32, i32, i32) {
    %c0_i32 = arith.constant 0 : i32
    %c0_i32_0 = arith.constant 0 : i32
    %c0_i32_1 = arith.constant 0 : i32
    return %arg0, %c0_i32, %c0_i32_0 : i32, i32, i32
  }
  func.func @transform_5(%arg0: i32) -> (i32, i32, i32) {
    %c0_i32 = arith.constant 0 : i32
    %c0_i32_0 = arith.constant 0 : i32
    %c0_i32_1 = arith.constant 0 : i32
    return %arg0, %c0_i32, %c0_i32_0 : i32, i32, i32
  }
  func.func @transform_6(%arg0: i32) -> (i32, i32, i32) {
    %c0_i32 = arith.constant 0 : i32
    %c0_i32_0 = arith.constant 0 : i32
    %c0_i32_1 = arith.constant 0 : i32
    return %arg0, %c0_i32, %c0_i32_0 : i32, i32, i32
  }
  func.func @transform_7(%arg0: i32) -> (i32, i32, i32) {
    %c0_i32 = arith.constant 0 : i32
    %c0_i32_0 = arith.constant 0 : i32
    %c0_i32_1 = arith.constant 0 : i32
    %c0_i32_2 = arith.constant 0 : i32
    return %c0_i32, %c0_i32_0, %c0_i32_1 : i32, i32, i32
  }
}

</mosaic_0001>

<bundles_post_ra>
// kernel: rleg_forward_jit.5
= control target key start
LH: loop header
LB: loop body
LE: loop exit
PB: predicated region body
PF: predicated region fallthrough
CT: control target
= control target key end

     0   :  { %s584_s21 = smov 0   ;;  %s659_s0 = inlined_call_operand.vmem [shape: f32[2,4,192], index: 0, kind: input, shape index: {}]   ;;  %s660_s1 = inlined_call_operand.vmem [shape: bf16[192,64], index: 1, kind: input, shape index: {}]   ;;  %s661_s2 = inlined_call_operand.vmem [shape: f32[1,64], index: 2, kind: input, shape index: {}]   ;;  %s662_s3 = inlined_call_operand.vmem [shape: f32[5,64], index: 3, kind: input, shape index: {}]   ;;  %s663_s4 = inlined_call_operand.vmem [shape: f32[1,64], index: 4, kind: input, shape index: {}]   ;;  %s664_s5 = inlined_call_operand.vmem [shape: f32[1,64], index: 5, kind: input, shape index: {}]   ;;  %s665_s6 = inlined_call_operand.vmem [shape: f32[2,5,64], index: 6, kind: output, shape index: {}]  }
   0x1 LB: > { %s490_s22 = sadd.s32 4294967295, %s546_s21   ;;  %p494_p0 = scmp.ge.s32.totalorder %s546_s21, 1  ;;  %s546_s21 = sphi %s584_s21, %s16_s21  }
   0x2   : > { %p212_p1 = scmp.lt.s32.totalorder %s546_s21, 3 }
   0x4   : > { %p213_p2 = pnand %p494_p0, %p212_p1 }
   0x5   : > { %v525_v0 = vld [vmem:[%s660_s1] sm:$0xff] (!%p213_p2)   ;;  %v548_v1 = vmov (!%p213_p2), 0   ;;  %p241_p3 = scmp.lt.s32.totalorder (!%p213_p2), %s490_s22, 1  ;;  %v526_v2 = vld [vmem:[%s660_s1 + $0x8] sm:$0xff] (!%p213_p2)   ;;  %v527_v3 = vld [vmem:[%s660_s1 + $0x10] sm:$0xff] (!%p213_p2)   ;;  %vm353_vm0 = vcmask (!%p213_p2), 523264  }
   0x6   : > { %216 = sbr.rel (%p213_p2) target bundleno = 585 (0x249), region = 44  ;;  %357 = vmatprep.subr.bf16.mxu0 (!%p213_p2), %v548_v1  ;;  %v528_v4 = vld [vmem:[%s660_s1 + $0x18] sm:$0xff] (!%p213_p2)   ;;  %v529_v7 = vld [vmem:[%s660_s1 + $0x20] sm:$0xff] (!%p213_p2)   ;;  %v530_v9 = vld [vmem:[%s660_s1 + $0x28] sm:$0xff] (!%p213_p2)   ;;  %vm401_vm1 = vcmask (!%p213_p2), 1040384   ;;  %vm407_vm2 = vcmask (!%p213_p2), 520192  }
   0x7   : > { %358 = vmatpush1.bf16.msra.mxu0 (!%p213_p2), %v525_v0  ;;  %v531_v10 = vld [vmem:[%s660_s1 + $0x30] sm:$0xff] (!%p213_p2)   ;;  %v532_v11 = vld [vmem:[%s660_s1 + $0x38] sm:$0xff] (!%p213_p2)   ;;  %v533_v12 = vld [vmem:[%s660_s1 + $0x40] sm:$0xff] (!%p213_p2)  }
   0x8   : > { %359 = vmatprep.subr.bf16.mxu0 (!%p213_p2), %v548_v1  ;;  %v534_v13 = vld [vmem:[%s660_s1 + $0x48] sm:$0xff] (!%p213_p2)   ;;  %v535_v14 = vld [vmem:[%s660_s1 + $0x50] sm:$0xff] (!%p213_p2)   ;;  %v536_v15 = vld [vmem:[%s660_s1 + $0x58] sm:$0xff] (!%p213_p2)  }
   0x9   : > { %v397_v18 = vld [vmem:[%s661_s2] sm:$0x1] (!%p213_p2) }
   0xa   : > { %v403_v21 = vld [vmem:[%s662_s3] sm:$0x1f] (!%p213_p2) }
   0xb   : > { %360 = vmatpush1.bf16.msra.mxu0 (!%p213_p2), %v526_v2  ;;  %v511_v36 = vld [vmem:[%s663_s4] ss:$0 sm:$0xff] (!%p213_p2) }
   0xc   : > { %361 = vmatprep.subr.bf16.mxu0 (!%p213_p2), %v548_v1  ;;  %v512_v38 = vld [vmem:[%s664_s5] ss:$0 sm:$0xff] (!%p213_p2) }
   0xd   : > { %s667_s22 = smov (!%p241_p3, %s490_s22), 1 }
   0xe   : > { %s515_s29 = sshll.u32 %s667_s22, 3 }
   0xf   : > { %s245_s8 = scalar_lea.vmem %s659_s0, %s515_s29  ;;  %362 = vmatpush1.bf16.msra.mxu0 %v527_v3  ;;  %s249_s16 = scalar_lea.vmem %s665_s6, %s515_s29 }
  0x10   : > { %363 = vmatprep.subr.bf16.mxu0 %v548_v1  ;;  %v251_v5 = vld [vmem:[%s245_s8] sm:$0xff] }
  0x11   : > { %v253_v6 = vcombine.high %v251_v5, %v251_v5  ;;  %v255_v16 = vpack.c.bf16 %v251_v5, %v251_v5 }
  0x13   : > { %364 = vmatpush1.bf16.msra.mxu0 %v528_v4  ;;  %v256_v8 = vpack.c.bf16 %v253_v6, %v253_v6 }
  0x14   : > { %365 = vmatprep.subr.bf16.mxu0 %v548_v1 }
  0x15   : > { %510 = vmatprep.mubr.msk.bf16.mxu0 %vm353_vm0, %v256_v8 }
  0x17   : > { %366 = vmatpush1.bf16.msra.mxu0 %v529_v7 }
  0x18   : > { %367 = vmatprep.subr.bf16.mxu0 %v548_v1 }
  0x1b   : > { %368 = vmatpush1.bf16.msra.mxu0 %v530_v9 }
  0x1c   : > { %369 = vmatprep.subr.bf16.mxu0 %v548_v1 }
  0x1f   : > { %370 = vmatpush1.bf16.msra.mxu0 %v531_v10 }
  0x20   : > { %371 = vmatprep.subr.bf16.mxu0 %v548_v1 }
  0x23   : > { %372 = vmatpush1.bf16.msra.mxu0 %v532_v11 }
  0x24   : > { %373 = vmatprep.subr.bf16.mxu0 %v548_v1 }
  0x27   : > { %374 = vmatpush1.bf16.msra.mxu0 %v533_v12 }
  0x28   : > { %375 = vmatprep.subr.bf16.mxu0 %v548_v1 }
  0x2b   : > { %376 = vmatpush1.bf16.msra.mxu0 %v534_v13 }
  0x2c   : > { %377 = vmatprep.subr.bf16.mxu0 %v548_v1 }
  0x2f   : > { %378 = vmatpush1.bf16.msra.mxu0 %v535_v14 }
  0x30   : > { %379 = vmatprep.subr.bf16.mxu0 %v548_v1 }
  0x33   : > { %380 = vmatpush1.bf16.msra.mxu0 %v536_v15 }
  0x36   : > { %390 = vmatmul.mubr.bf16.vlgmr.msra.gmra.mrb[0].mxu0 %v255_v16 }
 0x109   : > { %v391_v17 = vpop.f32.mrb[0].mxu0 }
 0x10a   : > { %v399_v19 = vrot.slane %v391_v17, 7  ;;  %v393_v20 = vpop.f32.mrb[1].mxu0 }
 0x10b   : > { %v394_v22 = vpop.f32.mrb[2].mxu0 }
 0x10c   : > { %v395_v23 = vpop.f32.mrb[3].mxu0  ;;  %v402_v24 = vsel %vm401_vm1, %v397_v18, %v399_v19 }
 0x10d   : > { %v404_v25 = vadd.f32 %v403_v21, %v402_v24 }
 0x10f   : > { %v408_v26 = vsel %vm407_vm2, %v404_v25, 0.0 }
 0x110   : > { %409 = vadd.xlane.f32.xlu0 %v408_v26 }
 0x19d   : > { %v410_v27 = vpop.xlane.xlu0 %409 }
 0x19e   : > { %v412_v28 = vmul.f32 0.015625, %v410_v27 }
 0x1a0   : > { %v413_v29 = vsub.f32 %v404_v25, %v412_v28 }
 0x1a2   : > { %v414_v30 = vmul.f32 %v413_v29, %v413_v29 }
 0x1a4   : > { %v415_v31 = vsel %vm407_vm2, %v414_v30, 0.0 }
 0x1a5   : > { %416 = vadd.xlane.f32.xlu0 %v415_v31 }
 0x232   : > { %v417_v32 = vpop.xlane.xlu0 %416 }
 0x233   : > { %v418_v33 = vmul.f32 0.015625, %v417_v32 }
 0x235   : > { %v419_v34 = vadd.f32 1e-05, %v418_v33 }
 0x237   : > { %538 = vrsqrt.f32 %v419_v34 }
 0x241   : > { %v539_v35 = vpop.eup %538 }
 0x242   : > { %v421_v37 = vmul.f32 %v539_v35, %v413_v29 }
 0x244   : > { %v428_v39 = vmul.f32 %v511_v36, %v421_v37 }
 0x246   : > { %v435_v40 = vadd.f32 %v512_v38, %v428_v39 }
 0x248   : > { %436 = vst.msk [vmem:[%s249_s16] sm:$0x1f] %vm407_vm2, %v435_v40 }
 0x249 PF: > { %s16_s21 = sadd.s32 1, %s546_s21  }
 0x24a   : > { %p13_p4 = scmp.ge.s32.totalorder %s16_s21, 4  }
 0x24c   :  { %15 = sbr.rel (!%p13_p4) target bundleno = 1 (0x1), region = 74 }

// kernel: rleg_forward_jit.7
= control target key start
LH: loop header
LB: loop body
LE: loop exit
PB: predicated region body
PF: predicated region fallthrough
CT: control target
= control target key end

     0   :  { %vm22_vm0 = vcmask 517120   ;;  %s271_s0 = inlined_call_operand.vmem [shape: f32[2,64], index: 0, kind: input, shape index: {}]   ;;  %s272_s1 = inlined_call_operand.vmem [shape: f32[1,64], index: 1, kind: input, shape index: {}]   ;;  %s273_s2 = inlined_call_operand.vmem [shape: f32[1,64], index: 2, kind: input, shape index: {}]   ;;  %s274_s3 = inlined_call_operand.vmem [shape: bf16[64,32], index: 3, kind: input, shape index: {}]   ;;  %s275_s4 = inlined_call_operand.hbm [shape: f32[2,32], index: 4, kind: output, shape index: {}]  }
   0x1   :  { %v19_v0 = vld [vmem:[%s271_s0] sm:$0x3] }
   0x2   :  { %v23_v1 = vsel %vm22_vm0, %v19_v0, 0.0 }
   0x3   :  { %24 = vadd.xlane.f32.xlu0 %v23_v1 }
   0x4   :  { %9 = vsyncpa [#allocation3], 0  ;;  %v178_v7 = vld [vmem:[%s274_s3] sm:$0xff]   ;;  %v210_v8 = vmov 0.0   ;;  %v179_v9 = vld [vmem:[%s274_s3 + $0x8] sm:$0xff]   ;;  %vm211_vm1 = vmmov 0  }
   0x5   :  { %163 = vmatprep.subr.bf16.mxu0 %v210_v8  ;;  %v180_v10 = vld [vmem:[%s274_s3 + $0x10] sm:$0xff]   ;;  %v181_v11 = vld [vmem:[%s274_s3 + $0x18] sm:$0xff]   ;;  %171 = vmatprep.mubr.msk.bf16.mxu0 %vm211_vm1, %v210_v8  ;;  %v151_v16 = vld [vmem:[%s272_s1] ss:$0 sm:$0xff]  ;;  %vm84_vm2 = vcmask 523264   ;;  %vm129_vm3 = vcmask 254976  }
   0x6   :  { %164 = vmatpush3.bf16.msra.mxu0 %v178_v7  ;;  %v152_v18 = vld [vmem:[%s273_s2] ss:$0 sm:$0xff]  ;;  %s212_s1 = smov [#allocation2]  }
   0x7   :  { %165 = vmatprep.subr.bf16.mxu0 %v210_v8  ;;  %s143_s3 = sshll.u32 %s212_s1, 4  ;;  %s144_s3 = int_to_ptr.vmem [resolvable:$true] %s143_s3 }
   0x8   :  { %s186_s2 = scalar_lea.vmem %s144_s3, 32  ;;  %p191_p1 = scmp.lt.s32.totalorder %s144_s3, %s144_s3 }
   0x9   :  { %p187_p0 = scmp.ne.s32.totalorder %s144_s3, %s186_s2  ;;  %p192_p2 = scmp.lt.s32.totalorder %s186_s2, %s186_s2 }
   0xa   :  { %166 = vmatpush3.bf16.msra.mxu0 %v179_v9 }
   0xb   :  { %167 = vmatprep.subr.bf16.mxu0 %v210_v8  ;;  %p193_p3 = por %p192_p2, %p191_p1 }
   0xd   :  { %p194_p4 = pnand %p193_p3, %p187_p0 }
   0xe   :  { %168 = vmatpush3.bf16.msra.mxu0 %v180_v10 }
   0xf   :  { %169 = vmatprep.subr.bf16.mxu0 %v210_v8 }
  0x12   :  { %170 = vmatpush3.bf16.msra.mxu0 %v181_v11 }
  0x90   :  { %v25_v2 = vpop.xlane.xlu0 %24 }
  0x91   :  { %v27_v3 = vmul.f32 0.015625, %v25_v2 }
  0x93   :  { %v28_v4 = vsub.f32 %v19_v0, %v27_v3 }
  0x95   :  { %v29_v5 = vmul.f32 %v28_v4, %v28_v4 }
  0x97   :  { %v30_v6 = vsel %vm22_vm0, %v29_v5, 0.0 }
  0x98   :  { %31 = vadd.xlane.f32.xlu0 %v30_v6 }
 0x125   :  { %v32_v12 = vpop.xlane.xlu0 %31 }
 0x126   :  { %v33_v13 = vmul.f32 0.015625, %v32_v12 }
 0x128   :  { %v34_v14 = vadd.f32 1e-05, %v33_v13 }
 0x12a   :  { %182 = vrsqrt.f32 %v34_v14 }
 0x134   :  { %v183_v15 = vpop.eup %182 }
 0x135   :  { %v36_v17 = vmul.f32 %v183_v15, %v28_v4 }
 0x137   :  { %v43_v19 = vmul.f32 %v151_v16, %v36_v17 }
 0x139   :  { %v50_v20 = vadd.f32 %v152_v18, %v43_v19 }
 0x13b   :  { %v51_v21 = vpack.c.bf16 %v50_v20, %v50_v20 }
 0x13d   :  { %172 = vmatmul.mubr.msk.bf16.vlgmr.msra.gmra.mrb[0].mxu0 %vm84_vm2, %v51_v21 }
 0x210   :  { %v122_v22 = vpop.f32.mrb[0].mxu0 }
 0x211   :  { %v173_v23 = vpop.f32.mrb[1].mxu0  ;;  %v128_v24 = vmul.f32 %v122_v22, %v122_v22 }
 0x212   :  { %v125_v25 = vpop.f32.mrb[2].mxu0 }
 0x213   :  { %v174_v26 = vpop.f32.mrb[3].mxu0  ;;  %v130_v27 = vsel %vm129_vm3, %v128_v24, 0.0 }
 0x214   :  { %131 = vadd.xlane.f32.xlu1 %v130_v27 }
 0x2a1   :  { %v132_v28 = vpop.xlane.xlu1 %131 }
 0x2a2   :  { %v133_v29 = vmax.f32 %v132_v28, 1e-24 }
 0x2a4   :  { %184 = vrsqrt.f32 %v133_v29 }
 0x2ae   :  { %v185_v30 = vpop.eup %184 }
 0x2af   :  { %v135_v31 = vmul.f32 %v185_v30, %v122_v22 }
 0x2b1   :  { %136 = vst.msk [vmem:[#allocation2] sm:$0x3] %vm129_vm3, %v135_v31 }
 0x2b2   :  { %197 = shalt.err (!%p194_p4)
}
 0x2b3   :  { %s198_s30 = scalar_lea.hbm %s275_s4, 32 }
 0x2b4   :  { %p199_p5 = scmp.ne.s32.totalorder %s275_s4, %s198_s30  ;;  %p202_p6 = scmp.lt.u32.totalorder %s198_s30, %s275_s4 }
 0x2b6   :  { %p204_p7 = pnand %p202_p6, %p199_p5 }
 0x2b8   :  { %207 = shalt.err (!%p204_p7)
}
 0x2b9   :  { %146 = dma.vmem_to_hbm [thread:$0]  %s144_s3, 32, %s275_s4, [#allocation3]  }
 0x2ba   :  { %208 = dma.done.wait [#allocation3], 32  }
 0x2bb   :  { %209 = vsyncadd [#allocation3], 4294967264 }
 0x2bc   :  { %150 = vsyncpa [#allocation3], 1 }

// kernel: rleg_forward_jit.6
= control target key start
LH: loop header
LB: loop body
LE: loop exit
PB: predicated region body
PF: predicated region fallthrough
CT: control target
= control target key end

     0   :  { %s3515_s24 = smov 0   ;;  %s4143_s0 = inlined_call_operand.vmem [shape: f32[2,5,64], index: 0, kind: input, shape index: {}, may-alias: {0,7}]   ;;  %s4144_s1 = inlined_call_operand.vmem [shape: f32[2,9,64], index: 1, kind: input, shape index: {}]   ;;  %s4145_s2 = inlined_call_operand.vmem [shape: bf16[2,64,192], index: 2, kind: input, shape index: {}]   ;;  %s4146_s3 = inlined_call_operand.vmem [shape: bf16[2,64,64], index: 3, kind: input, shape index: {}]   ;;  %s4147_s4 = inlined_call_operand.vmem [shape: bf16[2,64,256], index: 4, kind: input, shape index: {}]   ;;  %s4148_s5 = inlined_call_operand.vmem [shape: f32[2,1,256], index: 5, kind: input, shape index: {}]   ;;  %s4149_s6 = inlined_call_operand.vmem [shape: bf16[2,256,64], index: 6, kind: input, shape index: {}]   ;;  %s4150_s7 = inlined_call_operand.vmem [shape: f32[2,5,64], index: 7, kind: output, shape index: {}, may-alias: {0,7}]  }
   0x1 LB: > { %s3222_s25 = sadd.s32 4294967295, %s3467_s24   ;;  %p3225_p0 = scmp.ge.s32.totalorder %s3467_s24, 1  ;;  %s3467_s24 = sphi %s3515_s24, %s17_s24  }
   0x2   : > { %p281_p1 = scmp.lt.s32.totalorder %s3467_s24, 3 }
   0x4   : > { %p282_p2 = pnand %p3225_p0, %p281_p1 }
   0x6   : > { %285 = sbr.rel (%p282_p2) target bundleno = 2584 (0xa18), region = 48 }
   0xd   : > { %p332_p3 = scmp.lt.s32.totalorder %s3222_s25, 1  ;;  %p3237_p4 = scmp.ne.s32.totalorder %s3222_s25, 0 }
   0xe   : > { %v366_v0 = vld [vmem:[%s4143_s0] sm:$0x1f] (!%p3237_p4)  ;;  %vm368_vm0 = vcmask (!%p3237_p4), 520192   ;;  %v367_v1 = vld [vmem:[%s4143_s0 + $0x8] sm:$0x1f] (!%p3237_p4) }
   0xf   : > { %s333_s26 = scalar_select %p332_p3, %s3222_s25, 1 }
  0x10   : > { %365 = sbr.rel (%p3237_p4) target bundleno = 23 (0x17), region = 52  ;;  %369 = vst.msk [vmem:[%s4150_s7] sm:$0x1f] (!%p3237_p4), %vm368_vm0, %v366_v0  ;;  %370 = vst.msk [vmem:[%s4150_s7 + $0x8] sm:$0x1f] (!%p3237_p4), %vm368_vm0, %v367_v1 }
  0x11   : > { %s3293_s27 = sshll.u32 %s333_s26, 4  ;;  %s3294_s28 = sshll.u32 %s333_s26, 6 }
  0x12   : > { %s3526_s8 = scalar_lea.vmem %s4144_s1, %s3293_s27  ;;  %s3531_s11 = scalar_lea.vmem %s4145_s2, %s3294_s28 }
  0x13   : > { %s3295_s12 = sshll.u32 %s333_s26, 5  ;;  %s3536_s15 = scalar_lea.vmem %s4147_s4, %s3294_s28 }
  0x14   : > { %s3541_s18 = scalar_lea.vmem %s4146_s3, %s3295_s12  ;;  %s3234_s19 = sshll.u32 %s333_s26, 1 }
  0x15   : > { %s3546_s22 = scalar_lea.vmem %s4148_s5, %s3234_s19  ;;  %s3297_s23 = sshll.u32 %s333_s26, 7 }
  0x16   : > { %s3551_s30 = scalar_lea.vmem %s4149_s6, %s3297_s23 }
  0x17 PF: > { %v373_v2 = vld [vmem:[%s4150_s7] sm:$0x1f]  ;;  %v374_v3 = vld [vmem:[%s4150_s7 + $0x8] sm:$0x1f]  ;;  %v381_v4 = vlaneseq  ;;  %v3469_v5 = vmov 1966171168  }
  0x18   : > { %v379_v6 = vunpack.c.l.s4 %v3469_v5  ;;  %v377_v8 = vcombine.high %v373_v2, %v373_v2  ;;  %v416_v10 = vcombine.high %v374_v3, %v374_v3  ;;  %vm531_vm1 = vcmask 523264   ;;  %s3471_s21 = smov 64  }
  0x19   : > { %v382_v7 = vshrl.u32 %v381_v4, 7  ;;  %vm535_vm2 = vcmask 517120   ;;  %vm1695_vm3 = vcmask 1041408   ;;  %vm1696_vm4 = vcmask 1042432  }
  0x1a   : > { %v380_v9 = vunpack.c.0.s8 %v379_v6  ;;  %vm3474_vm5 = vmmov 0   ;;  %vm1666_vm6 = vcmask 36864   ;;  %vm1691_vm7 = vcmask 39936  }
  0x1b   : > { %v3623_v44 = vsub.s32 0, %v382_v7  ;;  %v3625_v45 = vsub.s32 1, %v382_v7  ;;  %v3627_v46 = vsub.s32 2, %v382_v7  ;;  %v3629_v47 = vsub.s32 3, %v382_v7 }
  0x1c   : > { %v3571_v11 = vsub.s32 %v380_v9, %v382_v7  ;;  %v3631_v49 = vsub.s32 4, %v382_v7  ;;  %v3633_v50 = vsub.s32 5, %v382_v7  ;;  %v3635_v51 = vsub.s32 6, %v382_v7 }
  0x1d   : > { %v3637_v52 = vsub.s32 7, %v382_v7  ;;  %vm3131_vm8 = vcmask 520192  }
  0x1e   : > { %v384_v12 = vrot.slane %v373_v2, %v3571_v11  ;;  %v391_v13 = vrot.slane %v377_v8, %v3571_v11  ;;  %v423_v14 = vrot.slane %v374_v3, %v3571_v11  ;;  %v430_v15 = vrot.slane %v416_v10, %v3571_v11  ;;  %4156 = vst [vmem:[#allocation2_spill] sm:$0xff] %v3635_v51 }
  0x1f   : > { %4157 = vst [vmem:[#allocation3_spill] sm:$0xff] %v3637_v52 }
  0x20   : > { %v392_v16 = vcombine.high %v384_v12, %v384_v12  ;;  %v3578_v17 = vrot.slane %v384_v12, %v3571_v11  ;;  %v3581_v18 = vrot.slane %v391_v13, %v3571_v11  ;;  %v431_v19 = vcombine.high %v423_v14, %v423_v14 }
  0x21   : > { %v3584_v20 = vrot.slane %v423_v14, %v3571_v11  ;;  %v3593_v23 = vrot.slane %v430_v15, %v3571_v11 }
  0x22   : > { %v3587_v21 = vrot.slane %v392_v16, %v3571_v11  ;;  %v3590_v22 = vrot.slane %v431_v19, %v3571_v11  ;;  %v3641_v54 = vcombine.high %v3578_v17, %v3578_v17 }
  0x23   : > { %v3597_v24 = vcombine.high %v3584_v20, %v3584_v20  ;;  %v467_v25 = vcombine.low %v3581_v18, %v3584_v20 }
  0x24   : > { %v465_v26 = vcombine.low %v3578_v17, %v3587_v21  ;;  %v3238_v27 = vcombine.high %v3578_v17, %v3587_v21  ;;  %v3607_v28 = vcombine.high %v3590_v22, %v3590_v22  ;;  %v3645_v55 = vcombine.high %v3587_v21, %v3587_v21 }
  0x25   : > { %v468_v29 = vcombine.low %v3590_v22, %v3597_v24  ;;  %v489_v30 = vrot.slane %v467_v25, %v3571_v11 }
  0x26   : > { %v475_v31 = vrot.slane %v465_v26, %v3571_v11  ;;  %v482_v32 = vrot.slane %v3238_v27, %v3571_v11  ;;  %v514_v33 = vcombine.low %v3607_v28, %v3593_v23 }
  0x27   : > { %v496_v34 = vrot.slane %v468_v29, %v3571_v11 }
  0x28   : > { %v497_v35 = vcombine.low %v475_v31, %v482_v32  ;;  %v521_v37 = vrot.slane %v514_v33, %v3571_v11 }
  0x29   : > { %v498_v36 = vcombine.low %v489_v30, %v496_v34 }
  0x2a   : > { %v505_v38 = vrot.slane %v497_v35, %v3571_v11  ;;  %v528_v41 = vrot.slane %v521_v37, %v3571_v11 }
  0x2b   : > { %v512_v39 = vrot.slane %v498_v36, %v3571_v11 }
  0x2c   : > { %v536_v43 = vsel %vm535_vm2, %v528_v41, 0.0 }
  0x2d   : > { %v513_v40 = vcombine.low %v505_v38, %v512_v39 }
  0x2f   : > { %v532_v42 = vsel %vm531_vm1, %v513_v40, 0.0 }
  0x30   : > { %533 = vadd.xlane.f32.xlu0 %v532_v42 }
  0x34   : > { %537 = vadd.xlane.f32.xlu0 %v536_v43 }
  0xbd   : > { %v534_v48 = vpop.xlane.xlu0 %533 }
  0xbe   : > { %v540_v53 = vmul.f32 0.015625, %v534_v48 }
  0xc0   : > { %v547_v56 = vrot.slane %v540_v53, %v3623_v44  ;;  %v551_v57 = vrot.slane %v540_v53, %v3625_v45  ;;  %v555_v58 = vrot.slane %v540_v53, %v3627_v46  ;;  %v559_v59 = vrot.slane %v540_v53, %v3629_v47 }
  0xc1   : > { %v538_v60 = vpop.xlane.xlu0 %537  ;;  %v563_v61 = vrot.slane %v540_v53, %v3631_v49  ;;  %v567_v62 = vrot.slane %v540_v53, %v3633_v50  ;;  %v571_v63 = vrot.slane %v540_v53, %v3635_v51  ;;  %v575_v0 = vrot.slane %v540_v53, %v3637_v52 }
  0xc2   : > { %v541_v1 = vmul.f32 0.015625, %v538_v60  ;;  %v3656_v2 = vsub.f32 %v3578_v17, %v547_v56  ;;  %v3659_v3 = vsub.f32 %v3587_v21, %v551_v57  ;;  %v3662_v4 = vsub.f32 %v3641_v54, %v555_v58 }
  0xc3   : > { %v3665_v5 = vsub.f32 %v3645_v55, %v559_v59  ;;  %v3668_v6 = vsub.f32 %v3581_v18, %v563_v61  ;;  %v3671_v7 = vsub.f32 %v3584_v20, %v567_v62  ;;  %v3674_v8 = vsub.f32 %v3590_v22, %v571_v63  ;;  %v3385_v61 = vld [vmem:[%s3531_s11 + $0x4] ss:$8 sps:$4 sm:$0xff]   ;;  %v3387_v62 = vld [vmem:[%s3531_s11] ss:$8 sps:$4 sm:$0xff]   ;;  %v3388_v63 = vld [vmem:[%s3531_s11 + $0x14] ss:$8 sps:$4 sm:$0xff]  }
  0xc4   : > { %v579_v9 = vrot.slane %v541_v1, %v3623_v44  ;;  %v583_v10 = vrot.slane %v541_v1, %v3625_v45  ;;  %v3679_v12 = vsub.f32 %v3597_v24, %v575_v0  ;;  %v604_v13 = vmul.f32 %v3656_v2, %v3656_v2  ;;  %1036 = vmatprep.subr.bf16.mxu1 %v3385_v61  ;;  %v3390_v0 = vld [vmem:[%s3531_s11 + $0x10] ss:$8 sps:$4 sm:$0xff]   ;;  %v3391_v1 = vld [vmem:[%s3531_s11 + $0x24] ss:$8 sps:$4 sm:$0xff]  }
  0xc5   : > { %v605_v14 = vmul.f32 %v3659_v3, %v3659_v3  ;;  %v606_v15 = vmul.f32 %v3662_v4, %v3662_v4  ;;  %v607_v16 = vmul.f32 %v3665_v5, %v3665_v5  ;;  %v608_v19 = vmul.f32 %v3668_v6, %v3668_v6  ;;  %1037 = vmatpush1.bf16.msra.mxu1 %v3387_v62 }
  0xc6   : > { %v3692_v25 = vsub.f32 %v3607_v28, %v579_v9  ;;  %v3695_v26 = vsub.f32 %v3593_v23, %v583_v10  ;;  %v609_v27 = vmul.f32 %v3671_v7, %v3671_v7  ;;  %v610_v29 = vmul.f32 %v3674_v8, %v3674_v8  ;;  %1038 = vmatprep.subr.bf16.mxu1 %v3388_v63  ;;  %v3393_v9 = vld [vmem:[%s3531_s11 + $0x20] ss:$8 sps:$4 sm:$0xff]   ;;  %v3394_v10 = vld [vmem:[%s3531_s11 + $0x34] ss:$8 sps:$4 sm:$0xff]  }
  0xc7   : > { %v611_v30 = vmul.f32 %v3679_v12, %v3679_v12  ;;  %v624_v31 = vcombine.low %v604_v13, %v605_v14  ;;  %v625_v32 = vcombine.low %v606_v15, %v607_v16  ;;  %v4151_v13 = vmov 0   ;;  %v3396_v14 = vld [vmem:[%s3531_s11 + $0x30] ss:$8 sps:$4 sm:$0xff]   ;;  %v3727_v15 = vld [vmem:[%s3526_s8] sm:$0xff] }
  0xc8   : > { %v612_v33 = vmul.f32 %v3692_v25, %v3692_v25  ;;  %v613_v34 = vmul.f32 %v3695_v26, %v3695_v26  ;;  %v626_v35 = vcombine.low %v608_v19, %v609_v27  ;;  %1068 = vmatprep.mubr.bf16.mxu1 %v4151_v13  ;;  %v1245_v16 = vrot.slane %v3727_v15, %v3629_v47 }
  0xc9   : > { %v627_v36 = vcombine.low %v610_v29, %v611_v30  ;;  %v634_v37 = vrot.slane %v624_v31, %v3571_v11  ;;  %v641_v38 = vrot.slane %v625_v32, %v3571_v11  ;;  %1039 = vmatpush1.bf16.msra.mxu1 %v3390_v0  ;;  %v767_v19 = vrot.slane %v3727_v15, %v3623_v44 }
  0xca   : > { %v648_v39 = vrot.slane %v626_v35, %v3571_v11  ;;  %v673_v40 = vcombine.low %v612_v33, %v613_v34  ;;  %1040 = vmatprep.subr.bf16.mxu1 %v3391_v1  ;;  %1247 = vrot.lane.b32.xlu0 %v1245_v16, %s3471_s21  ;;  %v839_v27 = vrot.slane %v3727_v15, %v3625_v45 }
  0xcb   : > { %v655_v41 = vrot.slane %v627_v36, %v3571_v11  ;;  %v656_v42 = vcombine.low %v634_v37, %v641_v38  ;;  %v769_v29 = vcombine.high %v767_v19, %v767_v19  ;;  %v776_v33 = vrot.slane %v767_v19, %v3571_v11 }
  0xcc   : > { %v680_v53 = vrot.slane %v673_v40, %v3571_v11  ;;  %v841_v30 = vcombine.high %v839_v27, %v839_v27  ;;  %v848_v36 = vrot.slane %v839_v27, %v3571_v11 }
  0xcd   : > { %v657_v43 = vcombine.low %v648_v39, %v655_v41  ;;  %v664_v48 = vrot.slane %v656_v42, %v3571_v11  ;;  %1041 = vmatpush1.bf16.msra.mxu1 %v3393_v9  ;;  %v783_v34 = vrot.slane %v769_v29, %v3571_v11  ;;  %v784_v40 = vcombine.high %v776_v33, %v776_v33 }
  0xce   : > { %v687_v58 = vrot.slane %v680_v53, %v3571_v11  ;;  %1042 = vmatprep.subr.bf16.mxu1 %v3394_v10  ;;  %v855_v37 = vrot.slane %v841_v30, %v3571_v11  ;;  %v792_v53 = vrot.slane %v776_v33, %v3571_v11 }
  0xcf   : > { %v671_v56 = vrot.slane %v657_v43, %v3571_v11  ;;  %v785_v41 = vcombine.high %v783_v34, %v783_v34  ;;  %v856_v43 = vcombine.high %v848_v36, %v848_v36 }
  0xd0   : > { %v693_v60 = vsel %vm535_vm2, %v687_v58, 0.0  ;;  %v814_v63 = vcombine.high %v792_v53, %v792_v53 }
  0xd1   : > { %v672_v57 = vcombine.low %v664_v48, %v671_v56  ;;  %1043 = vmatpush1.bf16.msra.mxu1 %v3396_v14  ;;  %v857_v48 = vcombine.high %v855_v37, %v855_v37  ;;  %v806_v56 = vrot.slane %v784_v40, %v3571_v11  ;;  %v813_v58 = vrot.slane %v785_v41, %v3571_v11 }
  0xd2   : > { %v878_v61 = vrot.slane %v856_v43, %v3571_v11 }
  0xd3   : > { %v690_v59 = vsel %vm531_vm1, %v672_v57, 0.0  ;;  %v799_v57 = vrot.slane %v783_v34, %v3571_v11  ;;  %v885_v62 = vrot.slane %v857_v48, %v3571_v11  ;;  %v816_v1 = vcombine.high %v806_v56, %v806_v56 }
  0xd4   : > { %691 = vadd.xlane.f32.xlu1 %v690_v59  ;;  %v864_v59 = vrot.slane %v848_v36, %v3571_v11  ;;  %v817_v9 = vcombine.high %v813_v58, %v813_v58  ;;  %v888_v19 = vcombine.high %v878_v61, %v878_v61 }
  0xd5   : > { %v815_v0 = vcombine.high %v799_v57, %v799_v57  ;;  %v889_v27 = vcombine.high %v885_v62, %v885_v62 }
  0xd6   : > { %v886_v14 = vcombine.high %v864_v59, %v864_v59 }
  0xd8   : > { %694 = vadd.xlane.f32.xlu1 %v693_v60  ;;  %v871_v60 = vrot.slane %v855_v37, %v3571_v11 }
  0xda   : > { %v887_v16 = vcombine.high %v871_v60, %v871_v60 }
 0x161   : > { %v692_v31 = vpop.xlane.xlu1 %691 }
 0x162   : > { %v696_v32 = vmul.f32 0.015625, %v692_v31 }
 0x164   : > { %v698_v35 = vadd.f32 1e-05, %v696_v32 }
 0x165   : > { %v695_v38 = vpop.xlane.xlu1 %694 }
 0x166   : > { %3429 = vrsqrt.f32 %v698_v35  ;;  %v697_v39 = vmul.f32 0.015625, %v695_v38 }
 0x168   : > { %v699_v42 = vadd.f32 1e-05, %v697_v39 }
 0x16a   : > { %3431 = vrsqrt.f32 %v699_v42 }
 0x170   : > { %v3430_v10 = vpop.eup %3429 }
 0x171   : > { %v707_v29 = vrot.slane %v3430_v10, %v3623_v44  ;;  %v711_v30 = vrot.slane %v3430_v10, %v3625_v45  ;;  %v715_v31 = vrot.slane %v3430_v10, %v3627_v46  ;;  %v719_v32 = vrot.slane %v3430_v10, %v3629_v47 }
 0x172   : > { %v723_v33 = vrot.slane %v3430_v10, %v3631_v49  ;;  %v727_v34 = vrot.slane %v3430_v10, %v3633_v50  ;;  %v731_v35 = vrot.slane %v3430_v10, %v3635_v51  ;;  %v735_v36 = vrot.slane %v3430_v10, %v3637_v52 }
 0x173   : > { %v754_v37 = vmul.f32 %v707_v29, %v3656_v2  ;;  %v755_v38 = vmul.f32 %v711_v30, %v3659_v3  ;;  %v756_v39 = vmul.f32 %v715_v31, %v3662_v4  ;;  %v757_v40 = vmul.f32 %v719_v32, %v3665_v5 }
 0x174   : > { %v3432_v41 = vpop.eup %3431  ;;  %v758_v42 = vmul.f32 %v723_v33, %v3668_v6  ;;  %v759_v43 = vmul.f32 %v727_v34, %v3671_v7  ;;  %v760_v48 = vmul.f32 %v731_v35, %v3674_v8  ;;  %v761_v13 = vmul.f32 %v735_v36, %v3679_v12 }
 0x175   : > { %v739_v51 = vrot.slane %v3432_v41, %v3623_v44  ;;  %v743_v10 = vrot.slane %v3432_v41, %v3625_v45  ;;  %v826_v2 = vmul.f32 %v792_v53, %v754_v37  ;;  %v827_v29 = vmul.f32 %v806_v56, %v755_v38 }
 0x176   : > { %v828_v3 = vmul.f32 %v814_v63, %v756_v39  ;;  %v829_v30 = vmul.f32 %v816_v1, %v757_v40  ;;  %v830_v4 = vmul.f32 %v799_v57, %v758_v42  ;;  %v831_v31 = vmul.f32 %v813_v58, %v759_v43 }
 0x177   : > { %v762_v5 = vmul.f32 %v739_v51, %v3692_v25  ;;  %v763_v6 = vmul.f32 %v743_v10, %v3695_v26  ;;  %v832_v32 = vmul.f32 %v815_v0, %v760_v48  ;;  %v833_v7 = vmul.f32 %v817_v9, %v761_v13 }
 0x178   : > { %v898_v33 = vadd.f32 %v864_v59, %v826_v2  ;;  %v899_v8 = vadd.f32 %v878_v61, %v827_v29  ;;  %v900_v34 = vadd.f32 %v886_v14, %v828_v3  ;;  %v901_v12 = vadd.f32 %v888_v19, %v829_v30 }
 0x179   : > { %v834_v35 = vmul.f32 %v792_v53, %v762_v5  ;;  %v835_v36 = vmul.f32 %v806_v56, %v763_v6  ;;  %v902_v52 = vadd.f32 %v871_v60, %v830_v4  ;;  %v903_v41 = vadd.f32 %v885_v62, %v831_v31 }
 0x17a   : > { %v904_v37 = vadd.f32 %v887_v16, %v832_v32  ;;  %v905_v38 = vadd.f32 %v889_v27, %v833_v7  ;;  %v918_v63 = vcombine.low %v898_v33, %v899_v8  ;;  %v919_v1 = vcombine.low %v900_v34, %v901_v12  ;;  %v1248_v27 = vpop.permute.xlu0 %1247 }
 0x17b   : > { %v906_v57 = vadd.f32 %v864_v59, %v834_v35  ;;  %v907_v58 = vadd.f32 %v878_v61, %v835_v36  ;;  %v920_v39 = vcombine.low %v902_v52, %v903_v41  ;;  %v3472_v16 = vmov 0.0  }
 0x17c   : > { %v921_v51 = vcombine.low %v904_v37, %v905_v38  ;;  %v928_v25 = vrot.slane %v918_v63, %v3571_v11  ;;  %v935_v26 = vrot.slane %v919_v1, %v3571_v11  ;;  %3345 = vmatprep.subr.bf16.mxu0 %v3472_v16  ;;  %3333 = vmatprep.subr.bf16.mxu1 %v3472_v16 }
 0x17d   : > { %v942_v13 = vrot.slane %v920_v39, %v3571_v11  ;;  %v967_v0 = vcombine.low %v906_v57, %v907_v58  ;;  %v1082_v19 = vrot.slane %v3727_v15, %v3627_v46  ;;  %v1410_v40 = vrot.slane %v3727_v15, %v3631_v49  ;;  %3347 = vmatprep.mubr.msk.bf16.mxu0 %vm3474_vm5, %v3472_v16 }
 0x17e   : > { %v949_v53 = vrot.slane %v921_v51, %v3571_v11  ;;  %v950_v56 = vcombine.low %v928_v25, %v935_v26 }
 0x17f   : > { %v974_v60 = vrot.slane %v967_v0, %v3571_v11 }
 0x180   : > { %v951_v62 = vcombine.low %v942_v13, %v949_v53  ;;  %v958_v9 = vrot.slane %v950_v56, %v3571_v11 }
 0x181   : > { %v981_v52 = vrot.slane %v974_v60, %v3571_v11 }
 0x182   : > { %v965_v59 = vrot.slane %v951_v62, %v3571_v11 }
 0x184   : > { %v966_v61 = vcombine.low %v958_v9, %v965_v59 }
 0x186   : > { %v984_v14 = vpack.c.bf16 %v981_v52, %v966_v61 }
 0x188   : > { %3247 = vmatmul.mubr.msk.bf16.vlgmr.msra.gmra.mrb[0].mxu1 %vm531_vm1, %v984_v14 }
 0x189   : > { %3335 = vmatprep.mubr.msk.bf16.mxu1 %vm3474_vm5, %v3472_v16 }
 0x25b   : > { %v1070_v42 = vpop.f32.mrb[0].mxu1 }
 0x25c   : > { %v1083_v43 = vadd.f32 %v1082_v19, %v1070_v42  ;;  %v1250_v48 = vadd.f32 %v1248_v27, %v1070_v42  ;;  %v1072_v10 = vpop.f32.mrb[1].mxu1 }
 0x25d   : > { %v1411_v2 = vadd.f32 %v1410_v40, %v1072_v10  ;;  %v1074_v29 = vpop.f32.mrb[2].mxu1  ;;  %v3473_v10 = vmov 65535  }
 0x25e   : > { %v3783_v3 = vmul.f32 0.125, %v1083_v43  ;;  %v1254_v30 = vcombine.high %v1250_v48, %v1250_v48  ;;  %v1261_v4 = vrot.slane %v1250_v48, %v3571_v11  ;;  %v1076_v31 = vpop.f32.mrb[3].mxu1  ;;  %v1084_v58 = vadd.f32 %v1082_v19, %v1074_v29 }
 0x25f   : > { %v1415_v5 = vcombine.high %v1411_v2, %v1411_v2  ;;  %v1422_v6 = vrot.slane %v1411_v2, %v3571_v11  ;;  %v1412_v32 = vadd.f32 %v1410_v40, %v1076_v31  ;;  %v1251_v52 = vadd.f32 %v1248_v27, %v1074_v29 }
 0x260   : > { %v1089_v7 = vcombine.high %v3783_v3, %v3783_v3  ;;  %v1268_v33 = vrot.slane %v1254_v30, %v3571_v11  ;;  %v1269_v8 = vcombine.high %v1261_v4, %v1261_v4  ;;  %v1277_v41 = vrot.slane %v1261_v4, %v3571_v11 }
 0x261   : > { %v1429_v34 = vrot.slane %v1415_v5, %v3571_v11  ;;  %v1430_v12 = vcombine.high %v1422_v6, %v1422_v6  ;;  %v1438_v60 = vrot.slane %v1422_v6, %v3571_v11  ;;  %v1086_v43 = vmul.f32 0.125, %v1084_v58 }
 0x262   : > { %v1103_v35 = vrot.slane %v1089_v7, %v3571_v11  ;;  %v1270_v36 = vcombine.high %v1268_v33, %v1268_v33  ;;  %v1284_v37 = vrot.slane %v1268_v33, %v3571_v11  ;;  %v1291_v38 = vrot.slane %v1269_v8, %v3571_v11 }
 0x263   : > { %v1431_v57 = vcombine.high %v1429_v34, %v1429_v34  ;;  %v1445_v25 = vrot.slane %v1429_v34, %v3571_v11  ;;  %v1452_v26 = vrot.slane %v1430_v12, %v3571_v11  ;;  %v1697_v2 = vsel %vm1695_vm3, 4294967295, %v3473_v10 }
 0x264   : > { %v1105_v63 = vcombine.high %v1103_v35, %v1103_v35  ;;  %v3796_v1 = vrot.slane %v1103_v35, %v3571_v11  ;;  %v1325_v39 = vcombine.low %v1277_v41, %v1291_v38  ;;  %v3249_v51 = vcombine.high %v1277_v41, %v1291_v38 }
 0x265   : > { %v1298_v53 = vrot.slane %v1270_v36, %v3571_v11  ;;  %v1300_v56 = vcombine.high %v1284_v37, %v1284_v37  ;;  %v1459_v59 = vrot.slane %v1431_v57, %v3571_v11  ;;  %v1461_v14 = vcombine.high %v1445_v25, %v1445_v25 }
 0x266   : > { %v1133_v13 = vrot.slane %v1105_v63, %v3571_v11  ;;  %v1135_v0 = vcombine.high %v3796_v1, %v3796_v1  ;;  %v1333_v9 = vrot.slane %v1325_v39, %v3571_v11  ;;  %v1340_v61 = vrot.slane %v3249_v51, %v3571_v11 }
 0x267   : > { %v1486_v19 = vcombine.low %v1438_v60, %v1452_v26  ;;  %v3250_v40 = vcombine.high %v1438_v60, %v1452_v26  ;;  %v1364_v42 = vcombine.low %v1298_v53, %v1300_v56  ;;  %v1525_v31 = vcombine.low %v1459_v59, %v1461_v14 }
 0x268   : > { %v1199_v62 = vcombine.low %v1133_v13, %v1135_v0  ;;  %v1137_v48 = vcombine.high %v1133_v13, %v1133_v13  ;;  %v1144_v27 = vrot.slane %v1086_v43, %v3571_v11  ;;  %v1302_v29 = vcombine.high %v1298_v53, %v1298_v53 }
 0x269   : > { %v1494_v30 = vrot.slane %v1486_v19, %v3571_v11  ;;  %v1501_v4 = vrot.slane %v3250_v40, %v3571_v11  ;;  %v1309_v6 = vrot.slane %v1251_v52, %v3571_v11  ;;  %v1463_v7 = vcombine.high %v1459_v59, %v1459_v59 }
 0x26a   : > { %v1207_v5 = vrot.slane %v1199_v62, %v3571_v11  ;;  %v1470_v33 = vrot.slane %v1412_v32, %v3571_v11  ;;  %v1347_v8 = vrot.slane %v1284_v37, %v3571_v11  ;;  %v1348_v34 = vcombine.low %v1333_v9, %v1340_v61 }
 0x26b   : > { %v1508_v12 = vrot.slane %v1445_v25, %v3571_v11  ;;  %v1145_v35 = vcombine.high %v1144_v27, %v1144_v27  ;;  %v1152_v36 = vrot.slane %v1144_v27, %v3571_v11  ;;  %v1310_v41 = vcombine.high %v1309_v6, %v1309_v6 }
 0x26c   : > { %v1317_v38 = vrot.slane %v1309_v6, %v3571_v11  ;;  %v1471_v63 = vcombine.high %v1470_v33, %v1470_v33  ;;  %v1478_v57 = vrot.slane %v1470_v33, %v3571_v11  ;;  %v1355_v58 = vrot.slane %v1348_v34, %v3571_v11 }
 0x26d   : > { %v1362_v39 = vrot.slane %v1347_v8, %v3571_v11  ;;  %v1159_v32 = vrot.slane %v1145_v35, %v3571_v11  ;;  %v1200_v51 = vcombine.low %v1137_v48, %v1152_v36  ;;  %v1324_v37 = vrot.slane %v1310_v41, %v3571_v11 }
 0x26e   : > { %v1365_v26 = vcombine.low %v1302_v29, %v1317_v38  ;;  %v1485_v25 = vrot.slane %v1471_v63, %v3571_v11  ;;  %v1526_v13 = vcombine.low %v1463_v7, %v1478_v57  ;;  %v1509_v53 = vcombine.low %v1494_v30, %v1501_v4 }
 0x26f   : > { %v1363_v0 = vcombine.low %v1355_v58, %v1362_v39  ;;  %v1214_v56 = vrot.slane %v1200_v51, %v3571_v11  ;;  %v1221_v60 = vrot.slane %v1159_v32, %v3571_v11  ;;  %v1523_v9 = vrot.slane %v1508_v12, %v3571_v11 }
 0x270   : > { %v1379_v62 = vrot.slane %v1365_v26, %v3571_v11  ;;  %v1540_v59 = vrot.slane %v1526_v13, %v3571_v11  ;;  %v1547_v52 = vrot.slane %v1485_v25, %v3571_v11  ;;  %v1516_v14 = vrot.slane %v1509_v53, %v3571_v11 }
 0x271   : > { %v1405_v61 = vpack.c.bf16 %v1363_v0, %v1363_v0  ;;  %v1222_v19 = vcombine.low %v1207_v5, %v1214_v56  ;;  %v1533_v40 = vrot.slane %v1525_v31, %v3571_v11  ;;  %v1372_v43 = vrot.slane %v1364_v42, %v3571_v11 }
 0x272   : > { %v1524_v48 = vcombine.low %v1516_v14, %v1523_v9  ;;  %v1698_v10 = vsel %vm1696_vm4, %v1697_v2, 0  ;;  %v1386_v30 = vrot.slane %v1324_v37, %v3571_v11  ;;  %v1236_v27 = vrot.slane %v1221_v60, %v3571_v11 }
 0x273   : > { %1569 = vrot.lane.b32.xlu1 %v1405_v61, %s3471_s21  ;;  %v1229_v4 = vrot.slane %v1222_v19, %v3571_v11  ;;  %v1548_v29 = vcombine.low %v1533_v40, %v1540_v59  ;;  %v1387_v6 = vcombine.low %v1372_v43, %v1379_v62  ;;  %v1562_v31 = vrot.slane %v1547_v52, %v3571_v11 }
 0x274   : > { %v1566_v42 = vpack.c.bf16 %v1524_v48, %v1524_v48  ;;  %v1401_v7 = vrot.slane %v1386_v30, %v3571_v11  ;;  %v1096_v38 = vrot.slane %v3783_v3, %v3571_v11  ;;  %v1182_v25 = vrot.slane %v3796_v1, %v3571_v11 }
 0x275   : > { %v1555_v2 = vrot.slane %v1548_v29, %v3571_v11  ;;  %v1394_v5 = vrot.slane %v1387_v6, %v3571_v11  ;;  %v1237_v33 = vcombine.low %v1229_v4, %v1236_v27 }
 0x276   : > { %v1700_v8 = vand.u32 %v1698_v10, %v1566_v42  ;;  %v1104_v63 = vcombine.high %v1096_v38, %v1096_v38  ;;  %v1112_v58 = vrot.slane %v1096_v38, %v3571_v11  ;;  %v1197_v3 = vrot.slane %v1182_v25, %v3571_v11 }
 0x277   : > { %v1563_v34 = vcombine.low %v1555_v2, %v1562_v31  ;;  %v1402_v12 = vcombine.low %v1394_v5, %v1401_v7  ;;  %v1241_v1 = vpack.c.bf16 %v1237_v33, %v1237_v33 }
 0x278   : > { %3346 = vmatpush3.bf16.msra.mxu0 %v1700_v8  ;;  %v1126_v57 = vrot.slane %v1104_v63, %v3571_v11 }
 0x279   : > { %v1567_v35 = vpack.c.bf16 %v1563_v34, %v1563_v34  ;;  %v1406_v36 = vpack.c.bf16 %v1402_v12, %v1402_v12  ;;  %3357 = vmatprep.subr.bf16.mxu0 %v3472_v16 }
 0x27a   : > { %v1160_v39 = vcombine.low %v1112_v58, %v1126_v57  ;;  %v3248_v32 = vcombine.high %v1112_v58, %v1126_v57  ;;  %v4158_v57 = vmov 0   ;;  %v3397_v58 = vld [vmem:[%s3541_s18] sm:$0xff]  }
 0x27b   : > { %v1746_v41 = vand.u32 %v1698_v10, %v1567_v35  ;;  %1618 = vrot.lane.b32.xlu1 %v1406_v36, %s3471_s21 }
 0x27c   : > { %v1168_v51 = vrot.slane %v1160_v39, %v3571_v11  ;;  %v1175_v37 = vrot.slane %v3248_v32, %v3571_v11  ;;  %v3398_v39 = vld [vmem:[%s3541_s18 + $0x8] sm:$0xff]   ;;  %v3399_v32 = vld [vmem:[%s3541_s18 + $0x10] sm:$0xff]  }
 0x27e   : > { %v1183_v26 = vcombine.low %v1168_v51, %v1175_v37  ;;  %v3400_v51 = vld [vmem:[%s3541_s18 + $0x18] sm:$0xff]  }
 0x280   : > { %v1190_v13 = vrot.slane %v1183_v26, %v3571_v11 }
 0x282   : > { %v1198_v56 = vcombine.low %v1190_v13, %v1197_v3 }
 0x284   : > { %v1240_v60 = vpack.c.bf16 %v1198_v56, %v1198_v56 }
 0x2e5   : > { %v1570_v0 = vpop.permute.xlu1 %1569 }
 0x2e6   : > { %v1575_v53 = vsel %vm531_vm1, %v1570_v0, 0 }
 0x2e7   : > { %3334 = vmatpush3.bf16.xpose.msra.mxu1 %v1575_v53 }
 0x2e8   : > { %3339 = vmatprep.subr.bf16.mxu1 %v3472_v16 }
 0x2ed   : > { %v1619_v62 = vpop.permute.xlu1 %1618 }
 0x2ee   : > { %3336 = vmatmul.mubr.msk.bf16.vlgmr.msra.gmra.mrb[4].mxu1 %vm531_vm1, %v1240_v60  ;;  %v1624_v9 = vsel %vm531_vm1, %v1619_v62, 0 }
 0x2ef   : > { %3341 = vmatprep.mubr.msk.bf16.mxu1 %vm3474_vm5, %v3472_v16  ;;  %3340 = vmatpush3.bf16.xpose.msra.mxu1 %v1624_v9 }
 0x2f0   : > { %3351 = vmatprep.subr.bf16.mxu1 %v3472_v16 }
 0x2f6   : > { %3342 = vmatmul.mubr.msk.bf16.vlgmr.msra.gmra.mrb[8].mxu1 %vm531_vm1, %v1241_v1 }
 0x2f7   : > { %3352 = vmatpush3.bf16.msra.mxu1 %v1746_v41  ;;  %3353 = vmatprep.mubr.msk.bf16.mxu1 %vm3474_vm5, %v3472_v16 }
 0x3c1   : > { %v1611_v59 = vpop.f32.mrb[4].mxu1 }
 0x3c2   : > { %v3337_v52 = vpop.f32.mrb[5].mxu1  ;;  %v1667_v61 = vsel %vm1666_vm6, %v1611_v59, -inf }
 0x3c3   : > { %1668 = vmax.xlane.f32.xlu1 %v1667_v61  ;;  %v1614_v14 = vpop.f32.mrb[6].mxu1 }
 0x3c4   : > { %v3338_v19 = vpop.f32.mrb[7].mxu1 }
 0x3c9   : > { %v1660_v40 = vpop.f32.mrb[8].mxu1 }
 0x3ca   : > { %v3343_v43 = vpop.f32.mrb[9].mxu1  ;;  %v1670_v48 = vsel %vm1666_vm6, %v1660_v40, -inf }
 0x3cb   : > { %1671 = vmax.xlane.f32.xlu0 %v1670_v48  ;;  %v1663_v10 = vpop.f32.mrb[10].mxu1 }
 0x3cc   : > { %v3344_v30 = vpop.f32.mrb[11].mxu1 }
 0x450   : > { %v1669_v4 = vpop.xlane.xlu1 %1668 }
 0x451   : > { %v1673_v27 = vsub.f32 %v1611_v59, %v1669_v4 }
 0x453   : > { %v1675_v29 = vmul.f32 1.442695, %v1673_v27 }
 0x455   : > { %3433 = vpow2.f32 %v1675_v29 }
 0x458   : > { %v1672_v6 = vpop.xlane.xlu0 %1671 }
 0x459   : > { %v1674_v31 = vsub.f32 %v1660_v40, %v1672_v6 }
 0x45b   : > { %v1677_v42 = vmul.f32 1.442695, %v1674_v31 }
 0x45d   : > { %3435 = vpow2.f32 %v1677_v42 }
 0x45f   : > { %v3434_v2 = vpop.eup %3433 }
 0x460   : > { %v1679_v5 = vsel %vm1666_vm6, %v3434_v2, 0.0 }
 0x461   : > { %1680 = vadd.xlane.f32.xlu0 %v1679_v5 }
 0x467   : > { %v3436_v7 = vpop.eup %3435 }
 0x468   : > { %v1682_v33 = vsel %vm1666_vm6, %v3436_v7, 0.0 }
 0x469   : > { %1683 = vadd.xlane.f32.xlu0 %v1682_v33 }
 0x4ee   : > { %v1681_v8 = vpop.xlane.xlu0 %1680 }
 0x4ef   : > { %3437 = vrcp.f32 %v1681_v8 }
 0x4f6   : > { %v1684_v34 = vpop.xlane.xlu0 %1683 }
 0x4f7   : > { %3439 = vrcp.f32 %v1684_v34 }
 0x4f9   : > { %v3438_v12 = vpop.eup %3437 }
 0x4fa   : > { %v1687_v35 = vmul.f32 %v3438_v12, %v3434_v2 }
 0x4fc   : > { %v1689_v36 = vpack.c.bf16 %v1687_v35, %v1687_v35 }
 0x4fe   : > { %3348 = vmatmul.mubr.msk.bf16.vlgmr.msra.gmra.mrb[0].mxu0 %vm1691_vm7, %v1689_v36 }
 0x4ff   : > { %3365 = vmatprep.mubr.msk.bf16.mxu0 %vm3474_vm5, %v3472_v16  ;;  %3358 = vmatpush3.bf16.msra.mxu0 %v3397_v58 }
 0x500   : > { %3359 = vmatprep.subr.bf16.mxu0 %v3472_v16 }
 0x501   : > { %v3440_v41 = vpop.eup %3439 }
 0x502   : > { %v1688_v38 = vmul.f32 %v3440_v41, %v3436_v7 }
 0x503   : > { %3360 = vmatpush3.bf16.msra.mxu0 %v3398_v39 }
 0x504   : > { %v1690_v63 = vpack.c.bf16 %v1688_v38, %v1688_v38  ;;  %3361 = vmatprep.subr.bf16.mxu0 %v3472_v16 }
 0x506   : > { %3354 = vmatmul.mubr.msk.bf16.vlgmr.msra.gmra.mrb[12].mxu1 %vm1691_vm7, %v1690_v63 }
 0x507   : > { %2730 = vmatprep.mubr.bf16.mxu1 %v4158_v57  ;;  %3362 = vmatpush3.bf16.msra.mxu0 %v3399_v32  ;;  %v1946_v57 = vrot.slane %v3727_v15, %v3633_v50 }
 0x508   : > { %3363 = vmatprep.subr.bf16.mxu0 %v3472_v16 }
 0x50b   : > { %3364 = vmatpush3.bf16.msra.mxu0 %v3400_v51 }
 0x5d1   : > { %v1736_v37 = vpop.f32.mrb[0].mxu0 }
 0x5d2   : > { %v1797_v26 = vrot.slane %v1736_v37, %v3571_v11  ;;  %v3349_v25 = vpop.f32.mrb[1].mxu0  ;;  %v1790_v53 = vcombine.high %v1736_v37, %v1736_v37 }
 0x5d3   : > { %v1739_v13 = vpop.f32.mrb[2].mxu0 }
 0x5d4   : > { %v1805_v0 = vcombine.high %v1797_v26, %v1797_v26  ;;  %v3350_v3 = vpop.f32.mrb[3].mxu0  ;;  %v1812_v60 = vrot.slane %v1797_v26, %v3571_v11  ;;  %v1804_v62 = vrot.slane %v1790_v53, %v3571_v11 }
 0x5d6   : > { %v1826_v56 = vrot.slane %v1805_v0, %v3571_v11  ;;  %v1819_v19 = vrot.slane %v1804_v62, %v3571_v11 }
 0x5d8   : > { %v1868_v9 = vcombine.low %v1812_v60, %v1826_v56  ;;  %v3255_v59 = vcombine.high %v1812_v60, %v1826_v56 }
 0x5d9   : > { %v1782_v1 = vpop.f32.mrb[12].mxu1 }
 0x5da   : > { %v1829_v52 = vcombine.high %v1782_v1, %v1782_v1  ;;  %v1836_v16 = vrot.slane %v1782_v1, %v3571_v11  ;;  %v3355_v61 = vpop.f32.mrb[13].mxu1  ;;  %v1878_v30 = vrot.slane %v1868_v9, %v3571_v11  ;;  %v1885_v4 = vrot.slane %v3255_v59, %v3571_v11 }
 0x5db   : > { %v1785_v14 = vpop.f32.mrb[14].mxu1 }
 0x5dc   : > { %v1843_v40 = vrot.slane %v1829_v52, %v3571_v11  ;;  %v1844_v43 = vcombine.high %v1836_v16, %v1836_v16  ;;  %v1851_v48 = vrot.slane %v1836_v16, %v3571_v11  ;;  %v3356_v10 = vpop.f32.mrb[15].mxu1  ;;  %v1900_v5 = vcombine.low %v1878_v30, %v1885_v4 }
 0x5de   : > { %v1865_v27 = vrot.slane %v1844_v43, %v3571_v11  ;;  %v1866_v29 = vcombine.high %v1851_v48, %v1851_v48  ;;  %v1870_v6 = vcombine.low %v1819_v19, %v1851_v48  ;;  %v1858_v31 = vrot.slane %v1843_v40, %v3571_v11 }
 0x5df   : > { %v1908_v35 = vrot.slane %v1900_v5, %v3571_v11 }
 0x5e0   : > { %v1867_v42 = vcombine.high %v1865_v27, %v1865_v27  ;;  %v1871_v2 = vcombine.low %v1865_v27, %v1866_v29  ;;  %v1892_v7 = vrot.slane %v1870_v6, %v3571_v11 }
 0x5e2   : > { %v1899_v33 = vrot.slane %v1871_v2, %v3571_v11  ;;  %v1917_v8 = vcombine.low %v1867_v42, %v1858_v31 }
 0x5e4   : > { %v1901_v34 = vcombine.low %v1892_v7, %v1899_v33  ;;  %v1924_v12 = vrot.slane %v1917_v8, %v3571_v11 }
 0x5e6   : > { %v1915_v36 = vrot.slane %v1901_v34, %v3571_v11  ;;  %v1931_v38 = vrot.slane %v1924_v12, %v3571_v11 }
 0x5e8   : > { %v1916_v41 = vcombine.low %v1908_v35, %v1915_v36 }
 0x5ea   : > { %v1934_v63 = vpack.c.bf16 %v1931_v38, %v1916_v41 }
 0x5ec   : > { %3366 = vmatmul.mubr.msk.bf16.vlgmr.msra.gmra.mrb[4].mxu0 %vm531_vm1, %v1934_v63 }
 0x6bf   : > { %v2008_v58 = vpop.f32.mrb[4].mxu0 }
 0x6c0   : > { %v2009_v39 = vadd.f32 %v2008_v58, %v1946_v57  ;;  %v3367_v32 = vpop.f32.mrb[5].mxu0 }
 0x6c1   : > { %v2011_v51 = vpop.f32.mrb[6].mxu0 }
 0x6c2   : > { %v2017_v37 = vcombine.high %v2009_v39, %v2009_v39  ;;  %v2024_v26 = vrot.slane %v2009_v39, %v3571_v11  ;;  %v2012_v25 = vadd.f32 %v2011_v51, %v1946_v57  ;;  %v3368_v13 = vpop.f32.mrb[7].mxu0 }
 0x6c4   : > { %v2031_v0 = vrot.slane %v2017_v37, %v3571_v11  ;;  %v2032_v3 = vcombine.high %v2024_v26, %v2024_v26  ;;  %v2040_v53 = vrot.slane %v2024_v26, %v3571_v11  ;;  %v2072_v56 = vrot.slane %v2012_v25, %v3571_v11 }
 0x6c6   : > { %v2033_v60 = vcombine.high %v2031_v0, %v2031_v0  ;;  %v2047_v62 = vrot.slane %v2031_v0, %v3571_v11  ;;  %v2054_v9 = vrot.slane %v2032_v3, %v3571_v11  ;;  %v2062_v1 = vcombine.high %v2040_v53, %v2040_v53 }
 0x6c7   : > { %v2073_v59 = vcombine.high %v2072_v56, %v2072_v56  ;;  %v2080_v52 = vrot.slane %v2072_v56, %v3571_v11  ;;  %v3915_v40 = vadd.f32 %v2040_v53, %v3578_v17 }
 0x6c8   : > { %v2061_v16 = vrot.slane %v2033_v60, %v3571_v11  ;;  %v2063_v61 = vcombine.high %v2047_v62, %v2047_v62  ;;  %v2064_v14 = vcombine.high %v2054_v9, %v2054_v9  ;;  %v3912_v19 = vadd.f32 %v2054_v9, %v3587_v21  ;;  %v4159_v60 = vld [vmem:[#allocation2_spill] sm:$0xff]  ;;  %v4160_v9 = vld [vmem:[#allocation3_spill] sm:$0xff] }
 0x6c9   : > { %v3918_v43 = vadd.f32 %v2062_v1, %v3641_v54  ;;  %v2087_v48 = vrot.slane %v2073_v59, %v3571_v11  ;;  %v3925_v4 = vadd.f32 %v2047_v62, %v3581_v18  ;;  %v3931_v21 = vadd.f32 %v2080_v52, %v3607_v28 }
 0x6ca   : > { %v2065_v10 = vcombine.high %v2061_v16, %v2061_v16  ;;  %v3922_v30 = vadd.f32 %v2064_v14, %v3645_v55  ;;  %v3928_v27 = vadd.f32 %v2061_v16, %v3584_v20  ;;  %v2118_v54 = vcombine.low %v3915_v40, %v3912_v19 }
 0x6cb   : > { %v3934_v17 = vadd.f32 %v2087_v48, %v3593_v23  ;;  %v3939_v29 = vadd.f32 %v2063_v61, %v3590_v22 }
 0x6cc   : > { %v3942_v55 = vadd.f32 %v2065_v10, %v3597_v24  ;;  %v2119_v18 = vcombine.low %v3918_v43, %v3922_v30  ;;  %v2120_v20 = vcombine.low %v3925_v4, %v3928_v27  ;;  %v2128_v6 = vrot.slane %v2118_v54, %v3571_v11 }
 0x6cd   : > { %v2167_v28 = vcombine.low %v3931_v21, %v3934_v17 }
 0x6ce   : > { %v2121_v23 = vcombine.low %v3939_v29, %v3942_v55  ;;  %v2135_v22 = vrot.slane %v2119_v18, %v3571_v11  ;;  %v2142_v24 = vrot.slane %v2120_v20, %v3571_v11 }
 0x6cf   : > { %v2174_v31 = vrot.slane %v2167_v28, %v3571_v11 }
 0x6d0   : > { %v2149_v42 = vrot.slane %v2121_v23, %v3571_v11  ;;  %v2150_v2 = vcombine.low %v2128_v6, %v2135_v22 }
 0x6d1   : > { %v2181_v5 = vrot.slane %v2174_v31, %v3571_v11 }
 0x6d2   : > { %v2151_v7 = vcombine.low %v2142_v24, %v2149_v42  ;;  %v2158_v8 = vrot.slane %v2150_v2, %v3571_v11 }
 0x6d3   : > { %v2187_v33 = vsel %vm535_vm2, %v2181_v5, 0.0 }
 0x6d4   : > { %2188 = vadd.xlane.f32.xlu0 %v2187_v33  ;;  %v2165_v34 = vrot.slane %v2151_v7, %v3571_v11 }
 0x6d6   : > { %v2166_v12 = vcombine.low %v2158_v8, %v2165_v34 }
 0x6d8   : > { %v2184_v35 = vsel %vm531_vm1, %v2166_v12, 0.0 }
 0x6d9   : > { %2185 = vadd.xlane.f32.xlu1 %v2184_v35 }
 0x761   : > { %v2189_v36 = vpop.xlane.xlu0 %2188 }
 0x762   : > { %v2191_v41 = vmul.f32 0.015625, %v2189_v36 }
 0x764   : > { %v2229_v38 = vrot.slane %v2191_v41, %v3623_v44  ;;  %v2233_v63 = vrot.slane %v2191_v41, %v3625_v45 }
 0x766   : > { %v3965_v57 = vsub.f32 %v3931_v21, %v2229_v38  ;;  %v3968_v58 = vsub.f32 %v3934_v17, %v2233_v63  ;;  %v2186_v39 = vpop.xlane.xlu1 %2185 }
 0x767   : > { %v2190_v32 = vmul.f32 0.015625, %v2186_v39 }
 0x768   : > { %v2262_v51 = vmul.f32 %v3965_v57, %v3965_v57  ;;  %v2263_v37 = vmul.f32 %v3968_v58, %v3968_v58 }
 0x769   : > { %v2197_v26 = vrot.slane %v2190_v32, %v3623_v44  ;;  %v2201_v25 = vrot.slane %v2190_v32, %v3625_v45  ;;  %v2205_v13 = vrot.slane %v2190_v32, %v3627_v46  ;;  %v2209_v0 = vrot.slane %v2190_v32, %v3629_v47 }
 0x76a   : > { %v2323_v3 = vcombine.low %v2262_v51, %v2263_v37  ;;  %v2213_v53 = vrot.slane %v2190_v32, %v3631_v49  ;;  %v2217_v56 = vrot.slane %v2190_v32, %v3633_v50  ;;  %v2221_v62 = vrot.slane %v2190_v32, %v4159_v60 }
 0x76b   : > { %v2225_v1 = vrot.slane %v2190_v32, %v4160_v9  ;;  %v3983_v59 = vsub.f32 %v3915_v40, %v2197_v26  ;;  %v3986_v52 = vsub.f32 %v3912_v19, %v2201_v25  ;;  %v3989_v16 = vsub.f32 %v3918_v43, %v2205_v13  ;;  %v3401_v26 = vld [vmem:[%s3536_s15] ss:$8 sps:$4 sm:$0xff]   ;;  %v3403_v25 = vld [vmem:[%s3536_s15 + $0x4] ss:$8 sps:$4 sm:$0xff]   ;;  %v3406_v13 = vld [vmem:[%s3536_s15 + $0x14] ss:$8 sps:$4 sm:$0xff]  }
 0x76c   : > { %v2330_v61 = vrot.slane %v2323_v3, %v3571_v11  ;;  %v3993_v14 = vsub.f32 %v3922_v30, %v2209_v0  ;;  %v3996_v48 = vsub.f32 %v3925_v4, %v2213_v53  ;;  %v3999_v10 = vsub.f32 %v3928_v27, %v2217_v56  ;;  %2698 = vmatprep.subr.bf16.mxu1 %v3403_v25  ;;  %v3404_v0 = vld [vmem:[%s3536_s15 + $0x10] ss:$8 sps:$4 sm:$0xff]   ;;  %v3409_v3 = vld [vmem:[%s3536_s15 + $0x24] ss:$8 sps:$4 sm:$0xff]   ;;  %v3407_v53 = vld [vmem:[%s3536_s15 + $0x20] ss:$8 sps:$4 sm:$0xff]  }
 0x76d   : > { %v4002_v54 = vsub.f32 %v3939_v29, %v2221_v62  ;;  %v4005_v18 = vsub.f32 %v3942_v55, %v2225_v1  ;;  %v2254_v20 = vmul.f32 %v3983_v59, %v3983_v59  ;;  %v2255_v28 = vmul.f32 %v3986_v52, %v3986_v52  ;;  %2699 = vmatpush1.bf16.msra.mxu1 %v3401_v26  ;;  %v3412_v56 = vld [vmem:[%s3536_s15 + $0x34] ss:$8 sps:$4 sm:$0xff]   ;;  %v3410_v62 = vld [vmem:[%s3536_s15 + $0x30] ss:$8 sps:$4 sm:$0xff]  }
 0x76e   : > { %v2337_v23 = vrot.slane %v2330_v61, %v3571_v11  ;;  %v2256_v6 = vmul.f32 %v3989_v16, %v3989_v16  ;;  %v2257_v22 = vmul.f32 %v3993_v14, %v3993_v14  ;;  %v2258_v31 = vmul.f32 %v3996_v48, %v3996_v48  ;;  %2700 = vmatprep.subr.bf16.mxu1 %v3406_v13 }
 0x76f   : > { %v2259_v24 = vmul.f32 %v3999_v10, %v3999_v10  ;;  %v2260_v42 = vmul.f32 %v4002_v54, %v4002_v54  ;;  %v2261_v2 = vmul.f32 %v4005_v18, %v4005_v18  ;;  %v2274_v5 = vcombine.low %v2254_v20, %v2255_v28 }
 0x770   : > { %v2343_v7 = vsel %vm535_vm2, %v2337_v23, 0.0  ;;  %v2275_v33 = vcombine.low %v2256_v6, %v2257_v22  ;;  %v2417_v28 = vrot.slane %v3727_v15, %v4159_v60  ;;  %v2489_v23 = vrot.slane %v3727_v15, %v4160_v9 }
 0x771   : > { %2344 = vadd.xlane.f32.xlu0 %v2343_v7  ;;  %v2276_v8 = vcombine.low %v2258_v31, %v2259_v24  ;;  %v2277_v34 = vcombine.low %v2260_v42, %v2261_v2  ;;  %v2284_v12 = vrot.slane %v2274_v5, %v3571_v11  ;;  %2701 = vmatpush1.bf16.msra.mxu1 %v3404_v0 }
 0x772   : > { %v2291_v35 = vrot.slane %v2275_v33, %v3571_v11  ;;  %2702 = vmatprep.subr.bf16.mxu1 %v3409_v3  ;;  %v2419_v6 = vcombine.high %v2417_v28, %v2417_v28  ;;  %v2426_v22 = vrot.slane %v2417_v28, %v3571_v11  ;;  %v2491_v31 = vcombine.high %v2489_v23, %v2489_v23 }
 0x773   : > { %v2298_v36 = vrot.slane %v2276_v8, %v3571_v11  ;;  %v2305_v41 = vrot.slane %v2277_v34, %v3571_v11  ;;  %v2498_v5 = vrot.slane %v2489_v23, %v3571_v11 }
 0x774   : > { %v2306_v38 = vcombine.low %v2284_v12, %v2291_v35  ;;  %v2433_v2 = vrot.slane %v2419_v6, %v3571_v11  ;;  %v2434_v7 = vcombine.high %v2426_v22, %v2426_v22  ;;  %v2505_v8 = vrot.slane %v2491_v31, %v3571_v11 }
 0x775   : > { %v2307_v63 = vcombine.low %v2298_v36, %v2305_v41  ;;  %2703 = vmatpush1.bf16.msra.mxu1 %v3407_v53  ;;  %v2442_v15 = vrot.slane %v2426_v22, %v3571_v11  ;;  %v2506_v36 = vcombine.high %v2498_v5, %v2498_v5 }
 0x776   : > { %v2314_v39 = vrot.slane %v2306_v38, %v3571_v11  ;;  %2704 = vmatprep.subr.bf16.mxu1 %v3412_v56  ;;  %v2435_v41 = vcombine.high %v2433_v2, %v2433_v2  ;;  %v2456_v38 = vrot.slane %v2434_v7, %v3571_v11  ;;  %v2449_v26 = vrot.slane %v2433_v2, %v3571_v11 }
 0x777   : > { %v2321_v32 = vrot.slane %v2307_v63, %v3571_v11  ;;  %v2521_v3 = vrot.slane %v2505_v8, %v3571_v11  ;;  %v2464_v56 = vcombine.high %v2442_v15, %v2442_v15 }
 0x778   : > { %v2463_v25 = vrot.slane %v2435_v41, %v3571_v11 }
 0x779   : > { %v2322_v51 = vcombine.low %v2314_v39, %v2321_v32  ;;  %2705 = vmatpush1.bf16.msra.mxu1 %v3410_v62  ;;  %v2507_v32 = vcombine.high %v2505_v8, %v2505_v8  ;;  %v2466_v62 = vcombine.high %v2456_v38, %v2456_v38  ;;  %v2537_v6 = vcombine.high %v2521_v3, %v2521_v3 }
 0x77b   : > { %v2340_v37 = vsel %vm531_vm1, %v2322_v51, 0.0  ;;  %v2514_v51 = vrot.slane %v2498_v5, %v3571_v11  ;;  %v2535_v53 = vrot.slane %v2507_v32, %v3571_v11 }
 0x77c   : > { %2341 = vadd.xlane.f32.xlu1 %v2340_v37  ;;  %v2528_v37 = vrot.slane %v2506_v36, %v3571_v11 }
 0x77d   : > { %v2539_v22 = vcombine.high %v2535_v53, %v2535_v53 }
 0x7fe   : > { %v2345_v1 = vpop.xlane.xlu0 %2344 }
 0x7ff   : > { %v2347_v61 = vmul.f32 0.015625, %v2345_v1  ;;  %v2467_v1 = vcombine.high %v2463_v25, %v2463_v25 }
 0x801   : > { %v2349_v20 = vadd.f32 1e-05, %v2347_v61  ;;  %v2538_v61 = vcombine.high %v2528_v37, %v2528_v37 }
 0x803   : > { %3441 = vrsqrt.f32 %v2349_v20 }
 0x809   : > { %v2342_v24 = vpop.xlane.xlu1 %2341 }
 0x80a   : > { %v2346_v42 = vmul.f32 0.015625, %v2342_v24 }
 0x80c   : > { %v2348_v33 = vadd.f32 1e-05, %v2346_v42 }
 0x80d   : > { %v3442_v34 = vpop.eup %3441 }
 0x80e   : > { %v2389_v12 = vrot.slane %v3442_v34, %v3623_v44  ;;  %v2393_v35 = vrot.slane %v3442_v34, %v3625_v45  ;;  %3443 = vrsqrt.f32 %v2348_v33 }
 0x810   : > { %v2412_v63 = vmul.f32 %v2389_v12, %v3965_v57  ;;  %v2413_v39 = vmul.f32 %v2393_v35, %v3968_v58  ;;  %v2465_v57 = vcombine.high %v2449_v26, %v2449_v26  ;;  %v2536_v58 = vcombine.high %v2514_v51, %v2514_v51 }
 0x812   : > { %v2484_v13 = vmul.f32 %v2442_v15, %v2412_v63  ;;  %v2485_v0 = vmul.f32 %v2456_v38, %v2413_v39 }
 0x814   : > { %v2556_v28 = vadd.f32 %v2514_v51, %v2484_v13  ;;  %v2557_v23 = vadd.f32 %v2528_v37, %v2485_v0 }
 0x818   : > { %v3444_v20 = vpop.eup %3443 }
 0x819   : > { %v2357_v31 = vrot.slane %v3444_v20, %v3623_v44  ;;  %v2361_v24 = vrot.slane %v3444_v20, %v3625_v45  ;;  %v2365_v42 = vrot.slane %v3444_v20, %v3627_v46  ;;  %v2369_v2 = vrot.slane %v3444_v20, %v3629_v47 }
 0x81a   : > { %v2373_v5 = vrot.slane %v3444_v20, %v3631_v49  ;;  %v2377_v7 = vrot.slane %v3444_v20, %v3633_v50  ;;  %v2381_v33 = vrot.slane %v3444_v20, %v4159_v60  ;;  %v2385_v8 = vrot.slane %v3444_v20, %v4160_v9 }
 0x81b   : > { %v2404_v34 = vmul.f32 %v2357_v31, %v3983_v59  ;;  %v2405_v12 = vmul.f32 %v2361_v24, %v3986_v52  ;;  %v2406_v35 = vmul.f32 %v2365_v42, %v3989_v16  ;;  %v2407_v36 = vmul.f32 %v2369_v2, %v3993_v14  ;;  %v3418_v2 = vld [vmem:[%s3551_s30 + $0x10] sm:$0xff]  }
 0x81c   : > { %v2408_v46 = vmul.f32 %v2373_v5, %v3996_v48  ;;  %v2409_v47 = vmul.f32 %v2377_v7, %v3999_v10  ;;  %v2410_v49 = vmul.f32 %v2381_v33, %v4002_v54  ;;  %v2411_v50 = vmul.f32 %v2385_v8, %v4005_v18  ;;  %v3419_v5 = vld [vmem:[%s3551_s30 + $0x58] sm:$0xff]   ;;  %v3421_v33 = vld [vmem:[%s3551_s30 + $0x60] sm:$0xff]  }
 0x81d   : > { %v2476_v41 = vmul.f32 %v2442_v15, %v2404_v34  ;;  %v2477_v60 = vmul.f32 %v2456_v38, %v2405_v12  ;;  %v2478_v63 = vmul.f32 %v2464_v56, %v2406_v35  ;;  %v2479_v9 = vmul.f32 %v2466_v62, %v2407_v36  ;;  %v3420_v7 = vld [vmem:[%s3551_s30 + $0x18] sm:$0xff]   ;;  %v3422_v8 = vld [vmem:[%s3551_s30 + $0x20] sm:$0xff]   ;;  %v3423_v34 = vld [vmem:[%s3551_s30 + $0x68] sm:$0xff]  }
 0x81e   : > { %v2480_v39 = vmul.f32 %v2449_v26, %v2408_v46  ;;  %v2481_v59 = vmul.f32 %v2463_v25, %v2409_v47  ;;  %v2482_v32 = vmul.f32 %v2465_v57, %v2410_v49  ;;  %v2483_v52 = vmul.f32 %v2467_v1, %v2411_v50  ;;  %v3424_v12 = vld [vmem:[%s3551_s30 + $0x28] sm:$0xff]   ;;  %v3425_v35 = vld [vmem:[%s3551_s30 + $0x70] sm:$0xff]   ;;  %v3427_v46 = vld [vmem:[%s3551_s30 + $0x78] sm:$0xff]  }
 0x81f   : > { %v2548_v13 = vadd.f32 %v2514_v51, %v2476_v41  ;;  %v2549_v16 = vadd.f32 %v2528_v37, %v2477_v60  ;;  %v2550_v0 = vadd.f32 %v2536_v58, %v2478_v63  ;;  %v2551_v14 = vadd.f32 %v2538_v61, %v2479_v9  ;;  %v3413_v61 = vld [vmem:[%s3551_s30 + $0x40] sm:$0xff]   ;;  %v3426_v36 = vld [vmem:[%s3551_s30 + $0x30] sm:$0xff]   ;;  %v3428_v47 = vld [vmem:[%s3551_s30 + $0x38] sm:$0xff]  }
 0x820   : > { %v2552_v20 = vadd.f32 %v2521_v3, %v2480_v39  ;;  %v2553_v48 = vadd.f32 %v2535_v53, %v2481_v59  ;;  %v2554_v31 = vadd.f32 %v2537_v6, %v2482_v32  ;;  %v2555_v10 = vadd.f32 %v2539_v22, %v2483_v52  ;;  %3311 = vmatprep.subr.bf16.mxu0 %v3413_v61  ;;  %v3416_v6 = vld [vmem:[%s3551_s30 + $0x8] sm:$0xff]   ;;  %v3417_v22 = vld [vmem:[%s3551_s30 + $0x50] sm:$0xff]   ;;  %v2643_v49 = vld [vmem:[%s3546_s22] sm:$0x3] }
 0x821   : > { %v2568_v24 = vcombine.low %v2548_v13, %v2549_v16  ;;  %v2569_v54 = vcombine.low %v2550_v0, %v2551_v14  ;;  %v2617_v15 = vcombine.low %v2556_v28, %v2557_v23  ;;  %v3414_v28 = vld [vmem:[%s3551_s30] sm:$0xff]   ;;  %v3415_v23 = vld [vmem:[%s3551_s30 + $0x48] sm:$0xff]   ;;  %v2648_v50 = vrot.slane %v2643_v49, %v3623_v44 }
 0x822   : > { %v2570_v42 = vcombine.low %v2552_v20, %v2553_v48  ;;  %v2571_v18 = vcombine.low %v2554_v31, %v2555_v10  ;;  %3312 = vmatpush3.bf16.msra.mxu0 %v3414_v28  ;;  %v2652_v41 = vrot.slane %v2643_v49, %v3625_v45  ;;  %v3274_v28 = vld [vmem:[%s3526_s8 + $0x8] ss:$0 sm:$0xff] }
 0x823   : > { %v2578_v38 = vrot.slane %v2568_v24, %v3571_v11  ;;  %v2585_v26 = vrot.slane %v2569_v54, %v3571_v11  ;;  %v2624_v53 = vrot.slane %v2617_v15, %v3571_v11  ;;  %3313 = vmatprep.subr.bf16.mxu0 %v3415_v23 }
 0x824   : > { %v2592_v51 = vrot.slane %v2570_v42, %v3571_v11  ;;  %v2599_v37 = vrot.slane %v2571_v18, %v3571_v11 }
 0x825   : > { %v2600_v25 = vcombine.low %v2578_v38, %v2585_v26  ;;  %v2631_v1 = vrot.slane %v2624_v53, %v3571_v11 }
 0x826   : > { %v2601_v3 = vcombine.low %v2592_v51, %v2599_v37  ;;  %3314 = vmatpush3.bf16.msra.mxu0 %v3416_v6 }
 0x827   : > { %v2608_v56 = vrot.slane %v2600_v25, %v3571_v11  ;;  %3315 = vmatprep.subr.bf16.mxu0 %v3417_v22 }
 0x828   : > { %v2615_v62 = vrot.slane %v2601_v3, %v3571_v11 }
 0x82a   : > { %v2616_v57 = vcombine.low %v2608_v56, %v2615_v62  ;;  %3316 = vmatpush3.bf16.msra.mxu0 %v3418_v2 }
 0x82b   : > { %3317 = vmatprep.subr.bf16.mxu0 %v3419_v5 }
 0x82c   : > { %v2634_v58 = vpack.c.bf16 %v2631_v1, %v2616_v57 }
 0x82e   : > { %3269 = vmatmul.mubr.msk.bf16.vlgmr.msra.gmra.mrb[16].mxu1 %vm531_vm1, %v2634_v58  ;;  %3318 = vmatpush3.bf16.msra.mxu0 %v3420_v7 }
 0x82f   : > { %3319 = vmatprep.subr.bf16.mxu0 %v3421_v33 }
 0x832   : > { %3320 = vmatpush3.bf16.msra.mxu0 %v3422_v8 }
 0x833   : > { %3321 = vmatprep.subr.bf16.mxu0 %v3423_v34 }
 0x836   : > { %3322 = vmatpush3.bf16.msra.mxu0 %v3424_v12 }
 0x837   : > { %3323 = vmatprep.subr.bf16.mxu0 %v3425_v35 }
 0x83a   : > { %3324 = vmatpush3.bf16.msra.mxu0 %v3426_v36 }
 0x83b   : > { %3325 = vmatprep.subr.bf16.mxu0 %v3427_v46 }
 0x83e   : > { %3326 = vmatpush3.bf16.msra.mxu0 %v3428_v47 }
 0x901   : > { %v2732_v60 = vpop.f32.mrb[16].mxu1 }
 0x902   : > { %v2733_v63 = vadd.f32 %v2732_v60, %v2648_v50  ;;  %v2734_v9 = vpop.f32.mrb[17].mxu1 }
 0x903   : > { %v2735_v39 = vadd.f32 %v2734_v9, %v2652_v41  ;;  %v2736_v59 = vpop.f32.mrb[18].mxu1 }
 0x904   : > { %v3270_v32 = vmul.f32 -1.702, %v2733_v63  ;;  %v2737_v52 = vadd.f32 %v2736_v59, %v2648_v50  ;;  %v2738_v13 = vpop.f32.mrb[19].mxu1 }
 0x905   : > { %v3271_v16 = vmul.f32 -1.702, %v2735_v39  ;;  %v2739_v0 = vadd.f32 %v2738_v13, %v2652_v41 }
 0x906   : > { %v2749_v14 = vmul.f32 1.442695, %v3270_v32  ;;  %v3272_v20 = vmul.f32 -1.702, %v2737_v52 }
 0x907   : > { %v2751_v48 = vmul.f32 1.442695, %v3271_v16  ;;  %v3273_v31 = vmul.f32 -1.702, %v2739_v0 }
 0x908   : > { %3445 = vpow2.f32 %v2749_v14  ;;  %v2753_v10 = vmul.f32 1.442695, %v3272_v20 }
 0x909   : > { %3447 = vpow2.f32 %v2751_v48  ;;  %v2755_v44 = vmul.f32 1.442695, %v3273_v31 }
 0x90a   : > { %3449 = vpow2.f32 %v2753_v10 }
 0x90b   : > { %3451 = vpow2.f32 %v2755_v44 }
 0x912   : > { %v3446_v45 = vpop.eup %3445 }
 0x913   : > { %v3448_v24 = vpop.eup %3447  ;;  %v2757_v54 = vadd.f32 1.0, %v3446_v45 }
 0x914   : > { %v3450_v42 = vpop.eup %3449  ;;  %v2758_v18 = vadd.f32 1.0, %v3448_v24 }
 0x915   : > { %v3452_v15 = vpop.eup %3451  ;;  %3453 = vrcp.f32 %v2757_v54  ;;  %v2759_v38 = vadd.f32 1.0, %v3450_v42 }
 0x916   : > { %3455 = vrcp.f32 %v2758_v18  ;;  %v2760_v26 = vadd.f32 1.0, %v3452_v15 }
 0x917   : > { %3457 = vrcp.f32 %v2759_v38 }
 0x918   : > { %3459 = vrcp.f32 %v2760_v26 }
 0x91f   : > { %v3454_v51 = vpop.eup %3453 }
 0x920   : > { %v3456_v37 = vpop.eup %3455  ;;  %v2769_v53 = vmul.f32 %v3454_v51, %v2733_v63 }
 0x921   : > { %v3458_v25 = vpop.eup %3457  ;;  %v2770_v62 = vmul.f32 %v3456_v37, %v2735_v39 }
 0x922   : > { %v3460_v3 = vpop.eup %3459  ;;  %v2771_v56 = vmul.f32 %v3458_v25, %v2737_v52 }
 0x923   : > { %v2772_v57 = vmul.f32 %v3460_v3, %v2739_v0 }
 0x924   : > { %v2773_v1 = vpack.c.bf16 %v2771_v56, %v2769_v53 }
 0x925   : > { %v2774_v58 = vpack.c.bf16 %v2772_v57, %v2770_v62 }
 0x927   : > { %2939 = vmatprep.mubr.bf16.mxu0 %v2774_v58 }
 0x928   : > { %2940 = vmatmul.mubr.bf16.vlgmr.msra.gmra.mrb[8].mxu0 %v2773_v1 }
 0x9fb   : > { %v3327_v61 = vpop.f32.mrb[8].mxu0 }
 0x9fc   : > { %v3328_v23 = vpop.f32.mrb[9].mxu0 }
 0x9fd   : > { %v3329_v6 = vadd.f32 %v3328_v23, %v3327_v61  ;;  %v3330_v22 = vpop.f32.mrb[10].mxu0 }
 0x9fe   : > { %v3331_v2 = vpop.f32.mrb[11].mxu0 }
 0x9ff   : > { %v2942_v5 = vadd.f32 %v3329_v6, %v3274_v28  ;;  %v3332_v7 = vadd.f32 %v3331_v2, %v3330_v22 }
 0xa01   : > { %v2950_v33 = vcombine.high %v2942_v5, %v2942_v5  ;;  %v2957_v8 = vrot.slane %v2942_v5, %v3571_v11  ;;  %v2945_v34 = vadd.f32 %v3332_v7, %v3274_v28 }
 0xa03   : > { %v2964_v12 = vrot.slane %v2950_v33, %v3571_v11  ;;  %v2965_v35 = vcombine.high %v2957_v8, %v2957_v8  ;;  %v2973_v36 = vrot.slane %v2957_v8, %v3571_v11  ;;  %v3005_v46 = vrot.slane %v2945_v34, %v3571_v11 }
 0xa05   : > { %v2966_v47 = vcombine.high %v2964_v12, %v2964_v12  ;;  %v2980_v49 = vrot.slane %v2964_v12, %v3571_v11  ;;  %v2987_v50 = vrot.slane %v2965_v35, %v3571_v11  ;;  %v2995_v41 = vcombine.high %v2973_v36, %v2973_v36 }
 0xa06   : > { %v3006_v60 = vcombine.high %v3005_v46, %v3005_v46  ;;  %v3013_v63 = vrot.slane %v3005_v46, %v3571_v11  ;;  %v3031_v52 = vadd.f32 %v2973_v36, %v3915_v40 }
 0xa07   : > { %v2994_v9 = vrot.slane %v2966_v47, %v3571_v11  ;;  %v2996_v39 = vcombine.high %v2980_v49, %v2980_v49  ;;  %v2997_v59 = vcombine.high %v2987_v50, %v2987_v50  ;;  %v3032_v32 = vadd.f32 %v2987_v50, %v3912_v19 }
 0xa08   : > { %v3033_v13 = vadd.f32 %v2995_v41, %v3918_v43  ;;  %v3035_v16 = vadd.f32 %v2980_v49, %v3925_v4  ;;  %v3020_v0 = vrot.slane %v3006_v60, %v3571_v11  ;;  %v3039_v44 = vadd.f32 %v3013_v63, %v3931_v21 }
 0xa09   : > { %v2998_v14 = vcombine.high %v2994_v9, %v2994_v9  ;;  %v3034_v20 = vadd.f32 %v2997_v59, %v3922_v30  ;;  %v3036_v48 = vadd.f32 %v2994_v9, %v3928_v27  ;;  %v3037_v31 = vadd.f32 %v2996_v39, %v3939_v29 }
 0xa0a   : > { %v3051_v10 = vcombine.low %v3031_v52, %v3032_v32  ;;  %v3040_v43 = vadd.f32 %v3020_v0, %v3934_v17  ;;  %v3073_v54 = vrot.slane %v3035_v16, %v3571_v11 }
 0xa0b   : > { %v3052_v45 = vcombine.low %v3033_v13, %v3034_v20  ;;  %v3090_v19 = vcombine.low %v3036_v48, %v3037_v31  ;;  %v3038_v40 = vadd.f32 %v2998_v14, %v3942_v55 }
 0xa0c   : > { %v3059_v4 = vrot.slane %v3051_v10, %v3571_v11  ;;  %v3112_v21 = vrot.slane %v3040_v43, %v3571_v11  ;;  %v3088_v55 = vrot.slane %v3073_v54, %v3571_v11 }
 0xa0d   : > { %v3066_v24 = vrot.slane %v3052_v45, %v3571_v11  ;;  %v3091_v30 = vcombine.low %v3038_v40, %v3039_v44  ;;  %v3098_v27 = vrot.slane %v3090_v19, %v3571_v11 }
 0xa0e   : > { %v3127_v26 = vrot.slane %v3112_v21, %v3571_v11 }
 0xa0f   : > { %v3074_v42 = vcombine.low %v3059_v4, %v3066_v24  ;;  %v3105_v29 = vrot.slane %v3091_v30, %v3571_v11 }
 0xa11   : > { %v3081_v18 = vrot.slane %v3074_v42, %v3571_v11  ;;  %v3113_v15 = vcombine.low %v3098_v27, %v3105_v29 }
 0xa13   : > { %v3089_v17 = vcombine.low %v3081_v18, %v3088_v55  ;;  %v3120_v38 = vrot.slane %v3113_v15, %v3571_v11 }
 0xa15   : > { %3132 = vst.msk [vmem:[%s4150_s7] sm:$0x1f] %vm3131_vm8, %v3089_v17  ;;  %v3128_v51 = vcombine.low %v3120_v38, %v3127_v26 }
 0xa17   : > { %3133 = vst.msk [vmem:[%s4150_s7 + $0x8] sm:$0x1f] %vm3131_vm8, %v3128_v51 }
 0xa18 PF: > { %s17_s24 = sadd.s32 1, %s3467_s24  }
 0xa19   : > { %p14_p5 = scmp.ge.s32.totalorder %s17_s24, 4  }
 0xa1b   :  { %16 = sbr.rel (!%p14_p5) target bundleno = 1 (0x1), region = 93 }

// kernel: rleg_forward_jit.8
= control target key start
LH: loop header
LB: loop body
LE: loop exit
PB: predicated region body
PF: predicated region fallthrough
CT: control target
= control target key end

     0   :  { %s1865_s24 = smov 0   ;;  %s2122_s0 = inlined_call_operand.vmem [shape: f32[2,8,64], index: 0, kind: input, shape index: {}, may-alias: {0,7}]   ;;  %s2123_s1 = inlined_call_operand.vmem [shape: f32[2,9,64], index: 1, kind: input, shape index: {}]   ;;  %s2124_s2 = inlined_call_operand.vmem [shape: bf16[2,64,192], index: 2, kind: input, shape index: {}]   ;;  %s2125_s3 = inlined_call_operand.vmem [shape: bf16[2,64,64], index: 3, kind: input, shape index: {}]   ;;  %s2126_s4 = inlined_call_operand.vmem [shape: bf16[2,64,256], index: 4, kind: input, shape index: {}]   ;;  %s2127_s5 = inlined_call_operand.vmem [shape: f32[2,1,256], index: 5, kind: input, shape index: {}]   ;;  %s2128_s6 = inlined_call_operand.vmem [shape: bf16[2,256,64], index: 6, kind: input, shape index: {}]   ;;  %s2129_s7 = inlined_call_operand.vmem [shape: f32[2,8,64], index: 7, kind: output, shape index: {}, may-alias: {0,7}]  }
   0x1 LB: > { %s1528_s25 = sadd.s32 4294967295, %s1816_s24   ;;  %p1531_p0 = scmp.ge.s32.totalorder %s1816_s24, 1  ;;  %s1816_s24 = sphi %s1865_s24, %s17_s24  }
   0x2   : > { %p281_p1 = scmp.lt.s32.totalorder %s1816_s24, 3 }
   0x4   : > { %p282_p2 = pnand %p1531_p0, %p281_p1 }
   0x5   : > { %p332_p3 = scmp.lt.s32.totalorder (!%p282_p2), %s1528_s25, 1  ;;  %p1543_p4 = scmp.ne.s32.totalorder (!%p282_p2), %s1528_s25, 0 }
   0x6   : > { %285 = sbr.rel (%p282_p2) target bundleno = 3096 (0xc18), region = 48 }
   0xd   : > { %s333_s26 = scalar_select %p332_p3, %s1528_s25, 1 }
   0xe   : > { %365 = sbr.rel (%p1543_p4) target bundleno = 21 (0x15), region = 52  ;;  %v366_v0 = vld [vmem:[%s2122_s0] sm:$0xff] (!%p1543_p4)  ;;  %vm368_vm0 = vcmask (!%p1543_p4), 523264   ;;  %v367_v1 = vld [vmem:[%s2122_s0 + $0x8] sm:$0xff] (!%p1543_p4)  ;;  %v371_v2 = vlaneseq (!%p1543_p4)  ;;  %vm377_vm1 = vcmask (!%p1543_p4), 64512   ;;  %v1818_v5 = vmov (!%p1543_p4), 0.0  }
   0xf   : > { %s1598_s27 = sshll.u32 %s333_s26, 4  ;;  %s1599_s28 = sshll.u32 %s333_s26, 6  ;;  %369 = vst.msk [vmem:[%s2129_s7] sm:$0xff] (!%p1543_p4), %vm368_vm0, %v366_v0  ;;  %370 = vst.msk [vmem:[%s2129_s7 + $0x8] sm:$0xff] (!%p1543_p4), %vm368_vm0, %v367_v1 }
  0x10   : > { %s1876_s8 = scalar_lea.vmem %s2123_s1, %s1598_s27  ;;  %s1881_s11 = scalar_lea.vmem %s2124_s2, %s1599_s28  ;;  %v372_v3 = vshrl.u32 (!%p1543_p4), %v371_v2, 7  ;;  %v374_v4 = vand.u32 (!%p1543_p4), 127, %v371_v2 }
  0x11   : > { %s1600_s12 = sshll.u32 %s333_s26, 5  ;;  %s1886_s15 = scalar_lea.vmem %s2126_s4, %s1599_s28 }
  0x12   : > { %s1891_s18 = scalar_lea.vmem %s2125_s3, %s1600_s12  ;;  %s1540_s19 = sshll.u32 %s333_s26, 1  ;;  %vm375_vm2 = vcmp.gt.s32.totalorder (!%p1543_p4), %v374_v4, %v372_v3 }
  0x13   : > { %s1896_s22 = scalar_lea.vmem %s2127_s5, %s1540_s19  ;;  %s1602_s23 = sshll.u32 %s333_s26, 7  ;;  %v376_v6 = vsel (!%p1543_p4), %vm375_vm2, -10000.0, %v1818_v5 }
  0x14   : > { %s1901_s30 = scalar_lea.vmem %s2128_s6, %s1602_s23  ;;  %378 = vst.msk [vmem:[#allocation2] sm:$0xff] (!%p1543_p4), %vm377_vm1, %v376_v6 }
  0x15 PF: > { %vm383_vm3 = vcmask 523264   ;;  %v1726_v21 = vld [vmem:[%s1881_s11 + $0x4] ss:$8 sps:$4 sm:$0xff]   ;;  %v1728_v22 = vld [vmem:[%s1881_s11] ss:$8 sps:$4 sm:$0xff]   ;;  %v1819_v29 = vmov 0   ;;  %v411_v30 = vlaneseq }
  0x16   : > { %v1918_v7 = vld [vmem:[%s2129_s7] sm:$0xff]  ;;  %v1923_v8 = vld [vmem:[%s2129_s7 + $0x8] sm:$0xff]  ;;  %475 = vmatprep.subr.bf16.mxu1 %v1726_v21  ;;  %v1729_v23 = vld [vmem:[%s1881_s11 + $0x14] ss:$8 sps:$4 sm:$0xff]   ;;  %507 = vmatprep.mubr.bf16.mxu1 %v1819_v29  ;;  %s1820_s21 = smov 64   ;;  %v1821_v54 = vmov 0.0  }
  0x17   : > { %v384_v9 = vsel %vm383_vm3, %v1918_v7, 0.0  ;;  %v387_v10 = vsel %vm383_vm3, %v1923_v8, 0.0  ;;  %476 = vmatpush1.bf16.msra.mxu1 %v1728_v22  ;;  %v1731_v24 = vld [vmem:[%s1881_s11 + $0x10] ss:$8 sps:$4 sm:$0xff]   ;;  %v1732_v25 = vld [vmem:[%s1881_s11 + $0x24] ss:$8 sps:$4 sm:$0xff]   ;;  %1658 = vmatprep.subr.bf16.mxu0 %v1821_v54 }
  0x18   : > { %385 = vadd.xlane.f32.xlu0 %v384_v9  ;;  %477 = vmatprep.subr.bf16.mxu1 %v1729_v23  ;;  %v1734_v26 = vld [vmem:[%s1881_s11 + $0x20] ss:$8 sps:$4 sm:$0xff]   ;;  %v1735_v27 = vld [vmem:[%s1881_s11 + $0x34] ss:$8 sps:$4 sm:$0xff]   ;;  %v1737_v28 = vld [vmem:[%s1881_s11 + $0x30] ss:$8 sps:$4 sm:$0xff]  }
  0x19   : > { %v1942_v31 = vshrl.u32 %v411_v30, 7  ;;  %v1946_v33 = vld [vmem:[%s1876_s8] sm:$0xff]  ;;  %vm1822_vm4 = vmmov 0   ;;  %vm676_vm5 = vcmask 1043456   ;;  %vm552_vm6 = vcmask 261120   ;;  %s1823_s11 = smov 32  }
  0x1a   : > { %1660 = vmatprep.mubr.msk.bf16.mxu0 %vm1822_vm4, %v1821_v54  ;;  %vm648_vm7 = vcmask 64512   ;;  %s1824_s23 = smov 96  }
  0x1b   : > { %478 = vmatpush1.bf16.msra.mxu1 %v1731_v24  ;;  %v530_v32 = vsub.s32 3, %v1942_v31  ;;  %v413_v41 = vsub.s32 0, %v1942_v31  ;;  %v419_v45 = vsub.s32 1, %v1942_v31  ;;  %v542_v55 = vsub.s32 4, %v1942_v31  ;;  %v1994_v22 = vld [vmem:[#allocation2] sm:$0xff] }
  0x1c   : > { %388 = vadd.xlane.f32.xlu0 %v387_v10  ;;  %479 = vmatprep.subr.bf16.mxu1 %v1732_v25  ;;  %v520_v6 = vsub.s32 2, %v1942_v31 }
  0x1d   : > { %v531_v34 = vrot.slane %v1946_v33, %v530_v32  ;;  %v414_v44 = vrot.slane %v1946_v33, %v413_v41  ;;  %v420_v49 = vrot.slane %v1946_v33, %v419_v45  ;;  %v543_v57 = vrot.slane %v1946_v33, %v542_v55 }
  0x1e   : > { %v521_v9 = vrot.slane %v1946_v33, %v520_v6 }
  0x1f   : > { %480 = vmatpush1.bf16.msra.mxu1 %v1734_v26 }
  0x20   : > { %481 = vmatprep.subr.bf16.mxu1 %v1735_v27 }
  0x23   : > { %482 = vmatpush1.bf16.msra.mxu1 %v1737_v28 }
  0x24   : > { %1646 = vmatprep.subr.bf16.mxu1 %v1821_v54 }
  0x32   : > { %533 = vrot.lane.b32.xlu0 %v531_v34, %s1820_s21 }
  0xa5   : > { %v386_v11 = vpop.xlane.xlu0 %385 }
  0xa6   : > { %v391_v12 = vmul.f32 0.015625, %v386_v11 }
  0xa8   : > { %v393_v13 = vsub.f32 %v1918_v7, %v391_v12 }
  0xa9   : > { %v389_v14 = vpop.xlane.xlu0 %388 }
  0xaa   : > { %v392_v15 = vmul.f32 0.015625, %v389_v14  ;;  %v395_v16 = vmul.f32 %v393_v13, %v393_v13 }
  0xac   : > { %v394_v17 = vsub.f32 %v1923_v8, %v392_v15  ;;  %v397_v18 = vsel %vm383_vm3, %v395_v16, 0.0 }
  0xad   : > { %398 = vadd.xlane.f32.xlu1 %v397_v18  ;;  %v534_v56 = vpop.permute.xlu0 %533 }
  0xae   : > { %v396_v19 = vmul.f32 %v394_v17, %v394_v17 }
  0xb0   : > { %v400_v20 = vsel %vm383_vm3, %v396_v19, 0.0 }
  0xb1   : > { %401 = vadd.xlane.f32.xlu1 %v400_v20 }
 0x13a   : > { %v399_v35 = vpop.xlane.xlu1 %398 }
 0x13b   : > { %v403_v36 = vmul.f32 0.015625, %v399_v35 }
 0x13d   : > { %v405_v37 = vadd.f32 1e-05, %v403_v36 }
 0x13e   : > { %v402_v38 = vpop.xlane.xlu1 %401 }
 0x13f   : > { %1770 = vrsqrt.f32 %v405_v37  ;;  %v404_v39 = vmul.f32 0.015625, %v402_v38 }
 0x141   : > { %v406_v40 = vadd.f32 1e-05, %v404_v39 }
 0x143   : > { %1772 = vrsqrt.f32 %v406_v40 }
 0x149   : > { %v1771_v42 = vpop.eup %1770 }
 0x14a   : > { %v409_v43 = vmul.f32 %v1771_v42, %v393_v13 }
 0x14c   : > { %v415_v48 = vmul.f32 %v414_v44, %v409_v43 }
 0x14d   : > { %v1773_v46 = vpop.eup %1772 }
 0x14e   : > { %v410_v47 = vmul.f32 %v1773_v46, %v394_v17  ;;  %v421_v51 = vadd.f32 %v420_v49, %v415_v48 }
 0x150   : > { %v416_v50 = vmul.f32 %v414_v44, %v410_v47 }
 0x152   : > { %v422_v52 = vadd.f32 %v420_v49, %v416_v50 }
 0x154   : > { %v423_v53 = vpack.c.bf16 %v422_v52, %v421_v51 }
 0x156   : > { %1552 = vmatmul.mubr.msk.bf16.vlgmr.msra.gmra.mrb[0].mxu1 %vm383_vm3, %v423_v53 }
 0x157   : > { %1648 = vmatprep.mubr.msk.bf16.mxu1 %vm1822_vm4, %v1821_v54 }
 0x229   : > { %v509_v58 = vpop.f32.mrb[0].mxu1 }
 0x22a   : > { %v536_v59 = vadd.f32 %v534_v56, %v509_v58  ;;  %v511_v60 = vpop.f32.mrb[1].mxu1  ;;  %v522_v10 = vadd.f32 %v521_v9, %v509_v58 }
 0x22b   : > { %v544_v61 = vadd.f32 %v543_v57, %v511_v60  ;;  %v513_v62 = vpop.f32.mrb[2].mxu1 }
 0x22c   : > { %v538_v63 = vpack.c.bf16 %v536_v59, %v536_v59  ;;  %v537_v0 = vadd.f32 %v534_v56, %v513_v62  ;;  %v515_v1 = vpop.f32.mrb[3].mxu1  ;;  %v524_v13 = vmul.f32 0.17677669, %v522_v10  ;;  %v523_v16 = vadd.f32 %v521_v9, %v513_v62 }
 0x22d   : > { %v1967_v2 = vpack.c.bf16 %v544_v61, %v544_v61  ;;  %v545_v3 = vadd.f32 %v543_v57, %v515_v1 }
 0x22e   : > { %550 = vrot.lane.b32.xlu1 %v538_v63, %s1820_s21  ;;  %v1972_v5 = vpack.c.bf16 %v537_v0, %v537_v0  ;;  %v526_v15 = vpack.c.bf16 %v524_v13, %v524_v13  ;;  %v525_v18 = vmul.f32 0.17677669, %v523_v16 }
 0x22f   : > { %v678_v4 = vsel %vm676_vm5, %v1967_v2, 0  ;;  %v1986_v19 = vpack.c.bf16 %v545_v3, %v545_v3 }
 0x230   : > { %1659 = vmatpush3.bf16.msra.mxu0 %v678_v4  ;;  %v527_v20 = vpack.c.bf16 %v525_v18, %v525_v18 }
 0x231   : > { %1670 = vmatprep.subr.bf16.mxu0 %v1821_v54  ;;  %v724_v21 = vsel %vm676_vm5, %v1986_v19, 0 }
 0x232   : > { %600 = vrot.lane.b32.xlu1 %v1972_v5, %s1820_s21 }
 0x2a0   : > { %v551_v11 = vpop.permute.xlu1 %550 }
 0x2a1   : > { %v557_v12 = vsel %vm552_vm6, %v551_v11, 0 }
 0x2a2   : > { %1647 = vmatpush3.bf16.xpose.msra.mxu1 %v557_v12 }
 0x2a3   : > { %1652 = vmatprep.subr.bf16.mxu1 %v1821_v54 }
 0x2a4   : > { %v601_v14 = vpop.permute.xlu1 %600 }
 0x2a5   : > { %v606_v17 = vsel %vm552_vm6, %v601_v14, 0 }
 0x2a9   : > { %1649 = vmatmul.mubr.msk.bf16.vlgmr.msra.gmra.mrb[4].mxu1 %vm552_vm6, %v526_v15 }
 0x2aa   : > { %1653 = vmatpush3.bf16.xpose.msra.mxu1 %v606_v17  ;;  %1654 = vmatprep.mubr.msk.bf16.mxu1 %vm1822_vm4, %v1821_v54 }
 0x2ab   : > { %1664 = vmatprep.subr.bf16.mxu1 %v1821_v54 }
 0x2b1   : > { %1655 = vmatmul.mubr.msk.bf16.vlgmr.msra.gmra.mrb[8].mxu1 %vm552_vm6, %v527_v20 }
 0x2b2   : > { %1665 = vmatpush3.bf16.msra.mxu1 %v724_v21  ;;  %1666 = vmatprep.mubr.msk.bf16.mxu1 %vm1822_vm4, %v1821_v54 }
 0x2b3   : > { %1676 = vmatprep.subr.bf16.mxu1 %v1821_v54 }
 0x37c   : > { %v593_v23 = vpop.f32.mrb[4].mxu1 }
 0x37d   : > { %v594_v24 = vadd.f32 %v593_v23, %v1994_v22  ;;  %v1650_v25 = vpop.f32.mrb[5].mxu1 }
 0x37e   : > { %v596_v26 = vpop.f32.mrb[6].mxu1 }
 0x37f   : > { %v1651_v27 = vpop.f32.mrb[7].mxu1  ;;  %v649_v28 = vsel %vm648_vm7, %v594_v24, -inf }
 0x380   : > { %650 = vmax.xlane.f32.xlu1 %v649_v28 }
 0x384   : > { %v642_v30 = vpop.f32.mrb[8].mxu1 }
 0x385   : > { %v643_v32 = vadd.f32 %v642_v30, %v1994_v22  ;;  %v1656_v34 = vpop.f32.mrb[9].mxu1 }
 0x386   : > { %v645_v35 = vpop.f32.mrb[10].mxu1 }
 0x387   : > { %v1657_v36 = vpop.f32.mrb[11].mxu1  ;;  %v652_v37 = vsel %vm648_vm7, %v643_v32, -inf }
 0x388   : > { %653 = vmax.xlane.f32.xlu0 %v652_v37 }
 0x391   : > { %770 = vrot.lane.b32.xlu1 %v538_v63, %s1823_s11 }
 0x395   : > { %768 = vrot.lane.b32.xlu1 %v526_v15, %s1824_s23 }
 0x399   : > { %819 = vrot.lane.b32.xlu1 %v527_v20, %s1824_s23 }
 0x40d   : > { %v651_v38 = vpop.xlane.xlu1 %650 }
 0x40e   : > { %v655_v39 = vsub.f32 %v594_v24, %v651_v38 }
 0x410   : > { %v657_v40 = vmul.f32 1.442695, %v655_v39 }
 0x411   : > { %v771_v55 = vpop.permute.xlu1 %770 }
 0x412   : > { %1774 = vpow2.f32 %v657_v40  ;;  %v776_v57 = vsel %vm552_vm6, %v771_v55, 0 }
 0x415   : > { %v654_v42 = vpop.xlane.xlu0 %653  ;;  %v769_v62 = vpop.permute.xlu1 %768 }
 0x416   : > { %v656_v43 = vsub.f32 %v643_v32, %v654_v42 }
 0x418   : > { %v659_v44 = vmul.f32 1.442695, %v656_v43 }
 0x419   : > { %v820_v0 = vpop.permute.xlu1 %819 }
 0x41a   : > { %1776 = vpow2.f32 %v659_v44 }
 0x41c   : > { %v1775_v46 = vpop.eup %1774 }
 0x41d   : > { %v661_v47 = vsel %vm648_vm7, %v1775_v46, 0.0 }
 0x41e   : > { %662 = vadd.xlane.f32.xlu0 %v661_v47 }
 0x424   : > { %v1777_v48 = vpop.eup %1776 }
 0x425   : > { %v664_v49 = vsel %vm648_vm7, %v1777_v48, 0.0 }
 0x426   : > { %665 = vadd.xlane.f32.xlu0 %v664_v49 }
 0x43c   : > { %821 = vrot.lane.b32.xlu0 %v1972_v5, %s1823_s11 }
 0x4ab   : > { %v663_v50 = vpop.xlane.xlu0 %662 }
 0x4ac   : > { %1778 = vrcp.f32 %v663_v50  ;;  %v1738_v50 = vld [vmem:[%s1891_s18] sm:$0xff]  }
 0x4b3   : > { %v666_v51 = vpop.xlane.xlu0 %665 }
 0x4b4   : > { %1780 = vrcp.f32 %v666_v51  ;;  %v1739_v51 = vld [vmem:[%s1891_s18 + $0x8] sm:$0xff]  }
 0x4b6   : > { %v1779_v52 = vpop.eup %1778 }
 0x4b7   : > { %v669_v53 = vmul.f32 %v1779_v52, %v1775_v46  ;;  %v822_v60 = vpop.permute.xlu0 %821  ;;  %v1740_v52 = vld [vmem:[%s1891_s18 + $0x10] sm:$0xff]  }
 0x4b8   : > { %v827_v63 = vsel %vm552_vm6, %v822_v60, 0 }
 0x4b9   : > { %v671_v56 = vpack.c.bf16 %v669_v53, %v669_v53  ;;  %v1741_v53 = vld [vmem:[%s1891_s18 + $0x18] sm:$0xff]  }
 0x4bb   : > { %1661 = vmatmul.mubr.msk.bf16.vlgmr.msra.gmra.mrb[0].mxu0 %vm648_vm7, %v671_v56 }
 0x4bc   : > { %1671 = vmatpush3.bf16.xpose.msra.mxu0 %v776_v57  ;;  %1672 = vmatprep.mubr.msk.bf16.mxu0 %vm1822_vm4, %v1821_v54 }
 0x4bd   : > { %1682 = vmatprep.subr.bf16.mxu0 %v1821_v54 }
 0x4be   : > { %v1781_v58 = vpop.eup %1780 }
 0x4bf   : > { %v670_v59 = vmul.f32 %v1781_v58, %v1777_v48 }
 0x4c1   : > { %v672_v61 = vpack.c.bf16 %v670_v59, %v670_v59 }
 0x4c3   : > { %1667 = vmatmul.mubr.msk.bf16.vlgmr.msra.gmra.mrb[12].mxu1 %vm648_vm7, %v672_v61  ;;  %1673 = vmatmul.mubr.msk.bf16.vlgmr.msra.gmra.mrb[4].mxu0 %vm552_vm6, %v769_v62 }
 0x4c4   : > { %1677 = vmatpush3.bf16.xpose.msra.mxu1 %v827_v63  ;;  %1678 = vmatprep.mubr.msk.bf16.mxu1 %vm1822_vm4, %v1821_v54 }
 0x4c5   : > { %1688 = vmatprep.subr.bf16.mxu1 %v1821_v54  ;;  %1684 = vmatprep.mubr.msk.bf16.mxu0 %vm1822_vm4, %v1821_v54 }
 0x4cb   : > { %1679 = vmatmul.mubr.msk.bf16.vlgmr.msra.gmra.mrb[16].mxu1 %vm552_vm6, %v820_v0 }
 0x4cc   : > { %1690 = vmatprep.mubr.msk.bf16.mxu1 %vm1822_vm4, %v1821_v54 }
 0x58e   : > { %v2023_v1 = vpop.f32.mrb[0].mxu0 }
 0x58f   : > { %v1662_v3 = vpop.f32.mrb[1].mxu0 }
 0x590   : > { %v717_v4 = vpop.f32.mrb[2].mxu0 }
 0x591   : > { %v1663_v5 = vpop.f32.mrb[3].mxu0 }
 0x596   : > { %v2025_v6 = vpop.f32.mrb[12].mxu1  ;;  %v812_v9 = vpop.f32.mrb[4].mxu0 }
 0x597   : > { %v813_v10 = vadd.f32 %v812_v9, %v1994_v22  ;;  %v1668_v11 = vpop.f32.mrb[13].mxu1  ;;  %v1674_v12 = vpop.f32.mrb[5].mxu0  ;;  %v1012_v9 = vsub.s32 5, %v1942_v31 }
 0x598   : > { %v763_v13 = vpop.f32.mrb[14].mxu1  ;;  %v815_v14 = vpop.f32.mrb[6].mxu0 }
 0x599   : > { %v1669_v15 = vpop.f32.mrb[15].mxu1  ;;  %v1675_v16 = vpop.f32.mrb[7].mxu0  ;;  %v869_v17 = vsel %vm648_vm7, %v813_v10, -inf }
 0x59a   : > { %870 = vmax.xlane.f32.xlu1 %v869_v17 }
 0x59e   : > { %v863_v18 = vpop.f32.mrb[16].mxu1 }
 0x59f   : > { %v864_v20 = vadd.f32 %v863_v18, %v1994_v22  ;;  %v1680_v21 = vpop.f32.mrb[17].mxu1 }
 0x5a0   : > { %v866_v23 = vpop.f32.mrb[18].mxu1 }
 0x5a1   : > { %v1681_v24 = vpop.f32.mrb[19].mxu1  ;;  %v872_v25 = vsel %vm648_vm7, %v864_v20, -inf }
 0x5a2   : > { %873 = vmax.xlane.f32.xlu0 %v872_v25 }
 0x5ab   : > { %894 = vrot.lane.b32.xlu1 %v1967_v2, %s1824_s23 }
 0x627   : > { %v871_v26 = vpop.xlane.xlu1 %870 }
 0x628   : > { %v875_v27 = vsub.f32 %v813_v10, %v871_v26  ;;  %v1013_v10 = vrot.slane %v1946_v33, %v1012_v9  ;;  %v1766_v9 = vld [vmem:[%s1901_s30 + $0x70] sm:$0xff]  }
 0x62a   : > { %v877_v28 = vmul.f32 1.442695, %v875_v27 }
 0x62b   : > { %v895_v30 = vpop.permute.xlu1 %894 }
 0x62c   : > { %1782 = vpow2.f32 %v877_v28  ;;  %v900_v32 = vsel %vm676_vm5, %v895_v30, 0  ;;  %v1744_v30 = vld [vmem:[%s1886_s15 + $0x4] ss:$8 sps:$4 sm:$0xff]  }
 0x62d   : > { %1683 = vmatpush3.bf16.msra.mxu0 %v900_v32  ;;  %v1742_v32 = vld [vmem:[%s1886_s15] ss:$8 sps:$4 sm:$0xff]  }
 0x62e   : > { %1694 = vmatprep.subr.bf16.mxu0 %v1821_v54 }
 0x62f   : > { %v874_v22 = vpop.xlane.xlu0 %873 }
 0x630   : > { %v876_v34 = vsub.f32 %v864_v20, %v874_v22  ;;  %v1747_v22 = vld [vmem:[%s1886_s15 + $0x14] ss:$8 sps:$4 sm:$0xff]  }
 0x632   : > { %v879_v35 = vmul.f32 1.442695, %v876_v34  ;;  %v1745_v34 = vld [vmem:[%s1886_s15 + $0x10] ss:$8 sps:$4 sm:$0xff]  }
 0x634   : > { %1784 = vpow2.f32 %v879_v35  ;;  %v1750_v35 = vld [vmem:[%s1886_s15 + $0x24] ss:$8 sps:$4 sm:$0xff]  }
 0x636   : > { %v1783_v36 = vpop.eup %1782 }
 0x637   : > { %v881_v37 = vsel %vm648_vm7, %v1783_v36, 0.0 }
 0x638   : > { %882 = vadd.xlane.f32.xlu0 %v881_v37  ;;  %v1751_v37 = vld [vmem:[%s1886_s15 + $0x30] ss:$8 sps:$4 sm:$0xff]  }
 0x63e   : > { %v1785_v38 = vpop.eup %1784 }
 0x63f   : > { %v884_v2 = vsel %vm648_vm7, %v1785_v38, 0.0 }
 0x640   : > { %885 = vadd.xlane.f32.xlu0 %v884_v2 }
 0x656   : > { %943 = vrot.lane.b32.xlu0 %v1986_v19, %s1824_s23 }
 0x6c5   : > { %v883_v39 = vpop.xlane.xlu0 %882 }
 0x6c6   : > { %1786 = vrcp.f32 %v883_v39 }
 0x6cd   : > { %v886_v40 = vpop.xlane.xlu0 %885 }
 0x6ce   : > { %1788 = vrcp.f32 %v886_v40 }
 0x6d0   : > { %v1787_v42 = vpop.eup %1786 }
 0x6d1   : > { %v889_v43 = vmul.f32 %v1787_v42, %v1783_v36  ;;  %v944_v44 = vpop.permute.xlu0 %943  ;;  %v1748_v36 = vld [vmem:[%s1886_s15 + $0x20] ss:$8 sps:$4 sm:$0xff]  }
 0x6d2   : > { %v949_v46 = vsel %vm676_vm5, %v944_v44, 0 }
 0x6d3   : > { %1689 = vmatpush3.bf16.msra.mxu1 %v949_v46  ;;  %v891_v47 = vpack.c.bf16 %v889_v43, %v889_v43  ;;  %v1112_v46 = vsub.s32 6, %v1942_v31 }
 0x6d4   : > { %1186 = vmatprep.subr.bf16.mxu1 %v1744_v30 }
 0x6d5   : > { %1685 = vmatmul.mubr.msk.bf16.vlgmr.msra.gmra.mrb[8].mxu0 %vm648_vm7, %v891_v47  ;;  %v1113_v47 = vrot.slane %v1946_v33, %v1112_v46 }
 0x6d6   : > { %1702 = vmatprep.mubr.msk.bf16.mxu0 %vm1822_vm4, %v1821_v54  ;;  %1695 = vmatpush3.bf16.msra.mxu0 %v1738_v50 }
 0x6d7   : > { %1696 = vmatprep.subr.bf16.mxu0 %v1821_v54 }
 0x6d8   : > { %v1789_v19 = vpop.eup %1788 }
 0x6d9   : > { %v890_v48 = vmul.f32 %v1789_v19, %v1785_v38  ;;  %v1753_v38 = vld [vmem:[%s1886_s15 + $0x34] ss:$8 sps:$4 sm:$0xff]   ;;  %v1118_v19 = vsub.s32 7, %v1942_v31 }
 0x6da   : > { %1697 = vmatpush3.bf16.msra.mxu0 %v1739_v51 }
 0x6db   : > { %v892_v49 = vpack.c.bf16 %v890_v48, %v890_v48  ;;  %1698 = vmatprep.subr.bf16.mxu0 %v1821_v54 }
 0x6dd   : > { %1691 = vmatmul.mubr.msk.bf16.vlgmr.msra.gmra.mrb[20].mxu1 %vm648_vm7, %v892_v49 }
 0x6de   : > { %1218 = vmatprep.mubr.bf16.mxu1 %v1819_v29  ;;  %1699 = vmatpush3.bf16.msra.mxu0 %v1740_v52 }
 0x6df   : > { %1700 = vmatprep.subr.bf16.mxu0 %v1821_v54  ;;  %1187 = vmatpush1.bf16.msra.mxu1 %v1742_v32 }
 0x6e0   : > { %1188 = vmatprep.subr.bf16.mxu1 %v1747_v22 }
 0x6e2   : > { %1701 = vmatpush3.bf16.msra.mxu0 %v1741_v53  ;;  %v1119_v53 = vrot.slane %v1946_v33, %v1118_v19  ;;  %v1758_v33 = vld [vmem:[%s1901_s30 + $0x50] sm:$0xff]  }
 0x6e3   : > { %1189 = vmatpush1.bf16.msra.mxu1 %v1745_v34 }
 0x6e4   : > { %1190 = vmatprep.subr.bf16.mxu1 %v1750_v35 }
 0x6e7   : > { %1191 = vmatpush1.bf16.msra.mxu1 %v1748_v36 }
 0x6e8   : > { %1192 = vmatprep.subr.bf16.mxu1 %v1753_v38 }
 0x6eb   : > { %1193 = vmatpush1.bf16.msra.mxu1 %v1751_v37 }
 0x7a8   : > { %v936_v55 = vpop.f32.mrb[8].mxu0 }
 0x7a9   : > { %v1686_v56 = vpop.f32.mrb[9].mxu0 }
 0x7aa   : > { %v939_v57 = vpop.f32.mrb[10].mxu0 }
 0x7ab   : > { %v1687_v58 = vpop.f32.mrb[11].mxu0 }
 0x7b0   : > { %v985_v59 = vpop.f32.mrb[20].mxu1 }
 0x7b1   : > { %v1721_v29 = vpack.i.bf16 %v985_v59, %v936_v55  ;;  %v1692_v60 = vpop.f32.mrb[21].mxu1  ;;  %v1754_v59 = vld [vmem:[%s1901_s30 + $0x40] sm:$0xff]  }
 0x7b2   : > { %v988_v61 = vpop.f32.mrb[22].mxu1  ;;  %1624 = vmatprep.subr.bf16.mxu0 %v1754_v59  ;;  %v1756_v60 = vld [vmem:[%s1901_s30 + $0x48] sm:$0xff]  }
 0x7b3   : > { %1722 = vrot.lane.b32.xlu1 %v1721_v29, %s1823_s11  ;;  %v1693_v62 = vpop.f32.mrb[23].mxu1  ;;  %v1755_v29 = vld [vmem:[%s1901_s30] sm:$0xff]   ;;  %v1757_v61 = vld [vmem:[%s1901_s30 + $0x8] sm:$0xff]  }
 0x7b4   : > { %v1759_v62 = vld [vmem:[%s1901_s30 + $0x10] sm:$0xff]  }
 0x825   : > { %v1723_v63 = vpop.permute.xlu1 %1722 }
 0x826   : > { %v1725_v0 = vunpack.i.h.bf16 %v1723_v63  ;;  %v1724_v3 = vunpack.i.l.bf16 %v1723_v63  ;;  %v1760_v63 = vld [vmem:[%s1901_s30 + $0x58] sm:$0xff]  }
 0x828   : > { %v1000_v4 = vsel %vm552_vm6, %v2025_v6, %v1725_v0  ;;  %v999_v54 = vsel %vm552_vm6, %v2023_v1, %v1724_v3  ;;  %v1761_v0 = vld [vmem:[%s1901_s30 + $0x18] sm:$0xff]   ;;  %v1762_v3 = vld [vmem:[%s1901_s30 + $0x60] sm:$0xff]  }
 0x829   : > { %v1001_v5 = vpack.c.bf16 %v1000_v4, %v999_v54  ;;  %v1763_v4 = vld [vmem:[%s1901_s30 + $0x20] sm:$0xff]   ;;  %v1764_v54 = vld [vmem:[%s1901_s30 + $0x68] sm:$0xff]  }
 0x82b   : > { %1703 = vmatmul.mubr.msk.bf16.vlgmr.msra.gmra.mrb[12].mxu0 %vm383_vm3, %v1001_v5  ;;  %v1765_v5 = vld [vmem:[%s1901_s30 + $0x28] sm:$0xff]  }
 0x82c   : > { %1625 = vmatpush3.bf16.msra.mxu0 %v1755_v29 }
 0x82d   : > { %1626 = vmatprep.subr.bf16.mxu0 %v1756_v60 }
 0x830   : > { %1627 = vmatpush3.bf16.msra.mxu0 %v1757_v61 }
 0x831   : > { %1628 = vmatprep.subr.bf16.mxu0 %v1758_v33 }
 0x834   : > { %1629 = vmatpush3.bf16.msra.mxu0 %v1759_v62 }
 0x835   : > { %1630 = vmatprep.subr.bf16.mxu0 %v1760_v63 }
 0x838   : > { %1631 = vmatpush3.bf16.msra.mxu0 %v1761_v0 }
 0x839   : > { %1632 = vmatprep.subr.bf16.mxu0 %v1762_v3 }
 0x83c   : > { %1633 = vmatpush3.bf16.msra.mxu0 %v1763_v4 }
 0x83d   : > { %1634 = vmatprep.subr.bf16.mxu0 %v1764_v54 }
 0x840   : > { %1635 = vmatpush3.bf16.msra.mxu0 %v1765_v5 }
 0x841   : > { %1636 = vmatprep.subr.bf16.mxu0 %v1766_v9 }
 0x8fe   : > { %v1075_v11 = vpop.f32.mrb[12].mxu0 }
 0x8ff   : > { %v1076_v12 = vadd.f32 %v1075_v11, %v1013_v10  ;;  %v1704_v13 = vpop.f32.mrb[13].mxu0  ;;  %v1768_v11 = vld [vmem:[%s1901_s30 + $0x78] sm:$0xff]  }
 0x900   : > { %v1078_v14 = vpop.f32.mrb[14].mxu0  ;;  %v1131_v13 = vld [vmem:[%s1896_s22] sm:$0x3] }
 0x901   : > { %v2061_v15 = vadd.f32 %v1076_v12, %v1918_v7  ;;  %v1079_v16 = vadd.f32 %v1078_v14, %v1013_v10  ;;  %v1705_v17 = vpop.f32.mrb[15].mxu0  ;;  %v1767_v10 = vld [vmem:[%s1901_s30 + $0x30] sm:$0xff]   ;;  %v1769_v12 = vld [vmem:[%s1901_s30 + $0x38] sm:$0xff]   ;;  %v1136_v14 = vrot.slane %v1131_v13, %v413_v41 }
 0x902   : > { %1637 = vmatpush3.bf16.msra.mxu0 %v1767_v10 }
 0x903   : > { %v2064_v6 = vadd.f32 %v1079_v16, %v1923_v8  ;;  %v1084_v1 = vsel %vm383_vm3, %v2061_v15, 0.0  ;;  %1638 = vmatprep.subr.bf16.mxu0 %v1768_v11  ;;  %v1140_v16 = vrot.slane %v1131_v13, %v419_v45 }
 0x904   : > { %1085 = vadd.xlane.f32.xlu1 %v1084_v1 }
 0x905   : > { %v1087_v18 = vsel %vm383_vm3, %v2064_v6, 0.0 }
 0x906   : > { %1088 = vadd.xlane.f32.xlu0 %v1087_v18  ;;  %1639 = vmatpush3.bf16.msra.mxu0 %v1769_v12 }
 0x991   : > { %v1086_v20 = vpop.xlane.xlu1 %1085 }
 0x992   : > { %v1090_v21 = vmul.f32 0.015625, %v1086_v20 }
 0x993   : > { %v1089_v7 = vpop.xlane.xlu0 %1088 }
 0x994   : > { %v1092_v23 = vsub.f32 %v2061_v15, %v1090_v21  ;;  %v1091_v24 = vmul.f32 0.015625, %v1089_v7 }
 0x996   : > { %v1093_v8 = vsub.f32 %v2064_v6, %v1091_v24  ;;  %v1094_v25 = vmul.f32 %v1092_v23, %v1092_v23 }
 0x998   : > { %v1096_v26 = vsel %vm383_vm3, %v1094_v25, 0.0  ;;  %v1095_v27 = vmul.f32 %v1093_v8, %v1093_v8 }
 0x999   : > { %1097 = vadd.xlane.f32.xlu0 %v1096_v26 }
 0x99a   : > { %v1099_v28 = vsel %vm383_vm3, %v1095_v27, 0.0 }
 0x99b   : > { %1100 = vadd.xlane.f32.xlu1 %v1099_v28 }
 0xa26   : > { %v1098_v2 = vpop.xlane.xlu0 %1097 }
 0xa27   : > { %v1102_v39 = vmul.f32 0.015625, %v1098_v2 }
 0xa28   : > { %v1101_v40 = vpop.xlane.xlu1 %1100 }
 0xa29   : > { %v1104_v42 = vadd.f32 1e-05, %v1102_v39  ;;  %v1103_v43 = vmul.f32 0.015625, %v1101_v40 }
 0xa2b   : > { %1790 = vrsqrt.f32 %v1104_v42  ;;  %v1105_v44 = vadd.f32 1e-05, %v1103_v43 }
 0xa2d   : > { %1792 = vrsqrt.f32 %v1105_v44 }
 0xa35   : > { %v1791_v48 = vpop.eup %1790 }
 0xa36   : > { %v1108_v49 = vmul.f32 %v1791_v48, %v1092_v23 }
 0xa37   : > { %v1793_v50 = vpop.eup %1792 }
 0xa38   : > { %v1114_v51 = vmul.f32 %v1113_v47, %v1108_v49  ;;  %v1109_v52 = vmul.f32 %v1793_v50, %v1093_v8  ;;  %v1579_v50 = vld [vmem:[%s1876_s8 + $0x8] ss:$0 sm:$0xff] }
 0xa3a   : > { %v1115_v55 = vmul.f32 %v1113_v47, %v1109_v52  ;;  %v1120_v56 = vadd.f32 %v1119_v53, %v1114_v51 }
 0xa3c   : > { %v1121_v57 = vadd.f32 %v1119_v53, %v1115_v55 }
 0xa3e   : > { %v1122_v58 = vpack.c.bf16 %v1121_v57, %v1120_v56 }
 0xa40   : > { %1574 = vmatmul.mubr.msk.bf16.vlgmr.msra.gmra.mrb[24].mxu1 %vm383_vm3, %v1122_v58 }
 0xb13   : > { %v1220_v17 = vpop.f32.mrb[24].mxu1 }
 0xb14   : > { %v1221_v1 = vadd.f32 %v1220_v17, %v1136_v14  ;;  %v1222_v18 = vpop.f32.mrb[25].mxu1 }
 0xb15   : > { %v1223_v20 = vadd.f32 %v1222_v18, %v1140_v16  ;;  %v1224_v21 = vpop.f32.mrb[26].mxu1 }
 0xb16   : > { %v1575_v7 = vmul.f32 -1.702, %v1221_v1  ;;  %v1225_v23 = vadd.f32 %v1224_v21, %v1136_v14  ;;  %v1226_v24 = vpop.f32.mrb[27].mxu1 }
 0xb17   : > { %v1576_v8 = vmul.f32 -1.702, %v1223_v20  ;;  %v1227_v25 = vadd.f32 %v1226_v24, %v1140_v16 }
 0xb18   : > { %v1237_v26 = vmul.f32 1.442695, %v1575_v7  ;;  %v1577_v27 = vmul.f32 -1.702, %v1225_v23 }
 0xb19   : > { %v1239_v28 = vmul.f32 1.442695, %v1576_v8  ;;  %v1578_v30 = vmul.f32 -1.702, %v1227_v25 }
 0xb1a   : > { %1794 = vpow2.f32 %v1237_v26  ;;  %v1241_v32 = vmul.f32 1.442695, %v1577_v27 }
 0xb1b   : > { %1796 = vpow2.f32 %v1239_v28  ;;  %v1243_v41 = vmul.f32 1.442695, %v1578_v30 }
 0xb1c   : > { %1798 = vpow2.f32 %v1241_v32 }
 0xb1d   : > { %1800 = vpow2.f32 %v1243_v41 }
 0xb24   : > { %v1795_v31 = vpop.eup %1794 }
 0xb25   : > { %v1797_v45 = vpop.eup %1796  ;;  %v1245_v22 = vadd.f32 1.0, %v1795_v31 }
 0xb26   : > { %v1799_v34 = vpop.eup %1798  ;;  %v1246_v35 = vadd.f32 1.0, %v1797_v45 }
 0xb27   : > { %v1801_v36 = vpop.eup %1800  ;;  %1802 = vrcp.f32 %v1245_v22  ;;  %v1247_v37 = vadd.f32 1.0, %v1799_v34 }
 0xb28   : > { %1804 = vrcp.f32 %v1246_v35  ;;  %v1248_v38 = vadd.f32 1.0, %v1801_v36 }
 0xb29   : > { %1806 = vrcp.f32 %v1247_v37 }
 0xb2a   : > { %1808 = vrcp.f32 %v1248_v38 }
 0xb31   : > { %v1803_v2 = vpop.eup %1802 }
 0xb32   : > { %v1805_v39 = vpop.eup %1804  ;;  %v1257_v43 = vmul.f32 %v1803_v2, %v1221_v1 }
 0xb33   : > { %v1807_v40 = vpop.eup %1806  ;;  %v1258_v46 = vmul.f32 %v1805_v39, %v1223_v20 }
 0xb34   : > { %v1809_v42 = vpop.eup %1808  ;;  %v1259_v44 = vmul.f32 %v1807_v40, %v1225_v23 }
 0xb35   : > { %v1260_v47 = vmul.f32 %v1809_v42, %v1227_v25 }
 0xb36   : > { %v1261_v19 = vpack.c.bf16 %v1259_v44, %v1257_v43 }
 0xb37   : > { %v1262_v48 = vpack.c.bf16 %v1260_v47, %v1258_v46 }
 0xb39   : > { %1427 = vmatprep.mubr.bf16.mxu0 %v1262_v48 }
 0xb3a   : > { %1428 = vmatmul.mubr.bf16.vlgmr.msra.gmra.mrb[16].mxu0 %v1261_v19 }
 0xc0d   : > { %v1640_v49 = vpop.f32.mrb[16].mxu0 }
 0xc0e   : > { %v1641_v51 = vpop.f32.mrb[17].mxu0 }
 0xc0f   : > { %v1642_v52 = vadd.f32 %v1641_v51, %v1640_v49  ;;  %v1643_v53 = vpop.f32.mrb[18].mxu0 }
 0xc10   : > { %v1644_v55 = vpop.f32.mrb[19].mxu0 }
 0xc11   : > { %v1430_v56 = vadd.f32 %v1642_v52, %v1579_v50  ;;  %v1645_v57 = vadd.f32 %v1644_v55, %v1643_v53 }
 0xc13   : > { %v1436_v58 = vadd.f32 %v1430_v56, %v2061_v15  ;;  %v1433_v59 = vadd.f32 %v1645_v57, %v1579_v50 }
 0xc15   : > { %1438 = vst.msk [vmem:[%s2129_s7] sm:$0xff] %vm383_vm3, %v1436_v58  ;;  %v1437_v29 = vadd.f32 %v1433_v59, %v2064_v6 }
 0xc17   : > { %1439 = vst.msk [vmem:[%s2129_s7 + $0x8] sm:$0xff] %vm383_vm3, %v1437_v29 }
 0xc18 PF: > { %s17_s24 = sadd.s32 1, %s1816_s24  }
 0xc19   : > { %p14_p5 = scmp.ge.s32.totalorder %s17_s24, 4  }
 0xc1b   :  { %16 = sbr.rel (!%p14_p5) target bundleno = 1 (0x1), region = 93 }

</bundles_post_ra>
